<compile_context>
chip_gen: v7x
topology: tpu7x:2x2x1
jax: 0.10.0
libtpu: 0.0.40
codegen_flags: <defaults>
</compile_context>

<pallas_src>
import math
import functools

import jax
import jax.numpy as jnp
from jax.experimental import pallas as pl
from jax.experimental.pallas import tpu as pltpu

MAX_SEQ = 72  # hard-coded max_seq_length in the reference module


def _mha_kernel(q_ref, k_ref, v_ref, mask_ref,
                wqkv_ref, bqkv_ref, wo_ref, bo_ref,
                out_ref, *, nheads, dk, block_b):
    """One batch-block per grid step. All tiles live in VMEM."""
    S = MAX_SEQ
    D = nheads * dk
    rows = block_b * S

    # Merging (block_b, 72) -> block_b*72 keeps the lane dim untouched and the
    # sublane split on a multiple of 8, so these reshapes are layout-friendly.
    qf = q_ref[...].reshape(rows, D)
    kf = k_ref[...].reshape(rows, D)
    vf = v_ref[...].reshape(rows, D)
    mask = mask_ref[...].astype(jnp.float32)       # (block_b, 72, 72), hoisted cast

    inv_sqrt_dk = 1.0 / math.sqrt(dk)
    acc = jnp.zeros((rows, D), jnp.float32)

    for h in range(nheads):  # static unroll; head index only touches major dims
        Qh = jnp.dot(qf, wqkv_ref[0, h], preferred_element_type=jnp.float32) + bqkv_ref[0, h]
        Kh = jnp.dot(kf, wqkv_ref[1, h], preferred_element_type=jnp.float32) + bqkv_ref[1, h]
        Vh = jnp.dot(vf, wqkv_ref[2, h], preferred_element_type=jnp.float32) + bqkv_ref[2, h]

        Qh = Qh.reshape(block_b, S, dk)
        Kh = Kh.reshape(block_b, S, dk)
        Vh = Vh.reshape(block_b, S, dk)

        # Batched scores; contraction on the last axes => no materialized Kh.T.
        s = jnp.einsum('bqd,bkd->bqk', Qh, Kh,
                       preferred_element_type=jnp.float32) * inv_sqrt_dk

        # NOTE: reference's masked_fill is non-in-place & discarded -> softmax
        # sees the UNMASKED scores (bug reproduced on purpose).
        m = jnp.max(s, axis=-1, keepdims=True)
        e = jnp.exp(s - m)
        l = jnp.sum(e, axis=-1, keepdims=True)
        p = e * pl.reciprocal(l, approx=True)      # EUP instead of VPU divide

        # Reference: attention = attention * mask (mask broadcast over heads).
        p = p * mask
        # TODO(synk): nn.Dropout(0.1) on `p` omitted (stochastic, training-mode).

        z = jnp.einsum('bqk,bkd->bqd', p, Vh, preferred_element_type=jnp.float32)

        # Output projection: Wo applied to the head-concat == sum over heads of
        # z_h @ Wo_rows_h, so accumulate instead of concatenating.
        acc = acc + jnp.dot(z.reshape(rows, dk), wo_ref[h],
                            preferred_element_type=jnp.float32)

    out_ref[...] = (acc + bo_ref[...]).reshape(block_b, S, D)


def multi_headed_attention(query, key, value, mask, params, *, nheads, block_b=32):
    """Glue: padding + weight packing + pallas_call. Hot path is in-kernel."""
    B, S, D = query.shape
    assert D % nheads == 0
    dk = D // nheads

    # Batch blocking (sized well under the 32 MiB scoped-VMEM default even on v7x).
    block_b = max(1, min(block_b, B))
    num_blocks = pl.cdiv(B, block_b)
    B_pad = num_blocks * block_b

    # Pad seq to 72 (zeros), mask to (72, 72) with value 0 — as in the reference.
    pad_s = MAX_SEQ - S
    q_p = jnp.pad(query, ((0, B_pad - B), (0, pad_s), (0, 0)))
    k_p = jnp.pad(key,   ((0, B_pad - B), (0, pad_s), (0, 0)))
    v_p = jnp.pad(value, ((0, B_pad - B), (0, pad_s), (0, 0)))
    mask_p = jnp.pad(mask.astype(jnp.bfloat16),   # 0/1 mask is exact in bf16
                     ((0, B_pad - B),
                      (0, MAX_SEQ - mask.shape[-2]),
                      (0, MAX_SEQ - mask.shape[-1])))

    # Pre-split per-head weight slices (head axis = major dim inside kernel).
    def split_cols(w_t):              # (D, D) -> (H, D, dk)  : W^T columns per head
        return w_t.reshape(D, nheads, dk).transpose(1, 0, 2)

    def split_bias(b):                # (1, D) -> (H, 1, dk)
        return b.reshape(1, nheads, dk).transpose(1, 0, 2)

    wqkv = jnp.stack([split_cols(params["wq_t"]),
                      split_cols(params["wk_t"]),
                      split_cols(params["wv_t"])], axis=0)          # (3, H, D, dk)
    bqkv = jnp.stack([split_bias(params["bq"]),
                      split_bias(params["bk"]),
                      split_bias(params["bv"])], axis=0)            # (3, H, 1, dk)
    wo = params["wo_t"].reshape(nheads, dk, D)                      # (H, dk, D)
    bo = params["bo"]                                               # (1, D)

    act_spec = pl.BlockSpec((block_b, MAX_SEQ, D), lambda b: (b, 0, 0))
    mask_spec = pl.BlockSpec((block_b, MAX_SEQ, MAX_SEQ), lambda b: (b, 0, 0))
    wqkv_spec = pl.BlockSpec((3, nheads, D, dk), lambda b: (0, 0, 0, 0))
    bqkv_spec = pl.BlockSpec((3, nheads, 1, dk), lambda b: (0, 0, 0, 0))
    wo_spec = pl.BlockSpec((nheads, dk, D), lambda b: (0, 0, 0))
    bo_spec = pl.BlockSpec((1, D), lambda b: (0, 0))

    kernel = functools.partial(_mha_kernel, nheads=nheads, dk=dk, block_b=block_b)

    flops = B_pad * (8 * MAX_SEQ * D * D + 4 * MAX_SEQ * MAX_SEQ * D)
    transcendentals = B_pad * nheads * MAX_SEQ * MAX_SEQ
    bytes_accessed = (4 * 4 * B_pad * MAX_SEQ * D          # q, k, v, out (f32)
                      + 2 * B_pad * MAX_SEQ * MAX_SEQ      # mask (bf16)
                      + 4 * (4 * D * D + 4 * D))           # weights + biases

    out = pl.pallas_call(
        kernel,
        out_shape=jax.ShapeDtypeStruct((B_pad, MAX_SEQ, D), jnp.float32),
        grid_spec=pltpu.PrefetchScalarGridSpec(
            num_scalar_prefetch=0,
            grid=(num_blocks,),
            in_specs=[act_spec, act_spec, act_spec, mask_spec,
                      wqkv_spec, bqkv_spec, wo_spec, bo_spec],
            out_specs=act_spec,
        ),
        compiler_params=pltpu.CompilerParams(dimension_semantics=("parallel",)),
        cost_estimate=pl.CostEstimate(flops=flops,
                                      transcendentals=transcendentals,
                                      bytes_accessed=bytes_accessed),
    )(q_p, k_p, v_p, mask_p, wqkv, bqkv, wo, bo)
    return out[:B]


def _reference_jnp(query, key, value, mask, params, *, nheads):
    """Pure-JAX mirror of the same (buggy-masking) semantics, for sanity check."""
    B, S, D = query.shape
    dk = D // nheads
    pad_s = MAX_SEQ - S
    q = jnp.pad(query, ((0, 0), (0, pad_s), (0, 0)))
    k = jnp.pad(key,   ((0, 0), (0, pad_s), (0, 0)))
    v = jnp.pad(value, ((0, 0), (0, pad_s), (0, 0)))
    m = jnp.pad(mask.astype(jnp.float32),
                ((0, 0), (0, MAX_SEQ - mask.shape[-2]), (0, MAX_SEQ - mask.shape[-1])))
    Q = q @ params["wq_t"] + params["bq"]
    K = k @ params["wk_t"] + params["bk"]
    V = v @ params["wv_t"] + params["bv"]
    Q = Q.reshape(B, MAX_SEQ, nheads, dk).transpose(0, 2, 1, 3)
    K = K.reshape(B, MAX_SEQ, nheads, dk).transpose(0, 2, 1, 3)
    V = V.reshape(B, MAX_SEQ, nheads, dk).transpose(0, 2, 1, 3)
    s = jnp.einsum("bhqd,bhkd->bhqk", Q, K) / math.sqrt(dk)
    p = jax.nn.softmax(s, axis=-1)
    p = p * m[:, None, :, :]
    z = jnp.einsum("bhqk,bhkd->bhqd", p, V)
    z = z.transpose(0, 2, 1, 3).reshape(B, MAX_SEQ, D)
    return z @ params["wo_t"] + params["bo"]


def init_params(key, dmodel):
    """Deterministic synthetic params (nn.Linear(dmodel, dmodel) x4)."""
    ks = jax.random.split(key, 8)
    scale = 1.0 / math.sqrt(dmodel)

    def lin(kw, kb):
        w = jax.random.uniform(kw, (dmodel, dmodel), jnp.float32, -scale, scale)  # (out, in)
        b = jax.random.uniform(kb, (1, dmodel), jnp.float32, -scale, scale)
        return w.T, b  # pass W already transposed: y = x @ W.T + b

    wq_t, bq = lin(ks[0], ks[1])
    wk_t, bk = lin(ks[2], ks[3])
    wv_t, bv = lin(ks[4], ks[5])
    wo_t, bo = lin(ks[6], ks[7])
    return dict(wq_t=wq_t, bq=bq, wk_t=wk_t, bk=bk,
                wv_t=wv_t, bv=bv, wo_t=wo_t, bo=bo)


if __name__ == "__main__":
    B, S, D, H = 2, 8, 32, 4  # batch, seq (padded to 72 internally), dmodel, nheads
    root = jax.random.PRNGKey(0)
    kq, kk, kv, km, kp = jax.random.split(root, 5)

    query = jax.random.normal(kq, (B, S, D), jnp.float32)
    key_in = jax.random.normal(kk, (B, S, D), jnp.float32)
    value = jax.random.normal(kv, (B, S, D), jnp.float32)
    mask = (jax.random.uniform(km, (B, S, S)) > 0.2).astype(jnp.float32)
    params = init_params(kp, D)

    out = multi_headed_attention(query, key_in, value, mask, params, nheads=H)
    out = jax.block_until_ready(out)
    assert out.shape == (B, MAX_SEQ, D) and out.dtype == jnp.float32

    ref = _reference_jnp(query, key_in, value, mask, params, nheads=H)
    # 2e-3 tolerance: approx-EUP reciprocal in the softmax denominator.
    assert jnp.allclose(out, ref, rtol=2e-3, atol=2e-3), "mismatch vs pure-JAX reference"

    print("KERNEL_OK")
</pallas_src>

<mosaic_0001>
module attributes {stable_mosaic.version = 11 : i64} {
  func.func @_mha_kernel(%arg0: i32, %arg1: memref<2x72x32xf32, #tpu.memory_space<vmem>>, %arg2: memref<2x72x32xf32, #tpu.memory_space<vmem>>, %arg3: memref<2x72x32xf32, #tpu.memory_space<vmem>>, %arg4: memref<2x72x72xbf16, #tpu.memory_space<vmem>>, %arg5: memref<3x4x32x8xf32, #tpu.memory_space<vmem>>, %arg6: memref<3x4x1x8xf32, #tpu.memory_space<vmem>>, %arg7: memref<4x8x32xf32, #tpu.memory_space<vmem>>, %arg8: memref<1x32xf32, #tpu.memory_space<vmem>>, %arg9: memref<2x72x32xf32, #tpu.memory_space<vmem>>) attributes {dimension_semantics = [#tpu.dimension_semantics<parallel>], iteration_bounds = array<i64: 1>, scalar_prefetch = 0 : i64, scratch_operands = 0 : i64, tpu.core_type = #tpu.core_type<tc>, window_params = [{transform_indices = @transform_0, window_bounds = array<i64: 2, 72, 32>}, {transform_indices = @transform_1, window_bounds = array<i64: 2, 72, 32>}, {transform_indices = @transform_2, window_bounds = array<i64: 2, 72, 32>}, {transform_indices = @transform_3, window_bounds = array<i64: 2, 72, 72>}, {pipeline_mode = #tpu.pipeline_mode<synchronous>, transform_indices = @transform_4, window_bounds = array<i64: 3, 4, 32, 8>}, {pipeline_mode = #tpu.pipeline_mode<synchronous>, transform_indices = @transform_5, window_bounds = array<i64: 3, 4, 1, 8>}, {pipeline_mode = #tpu.pipeline_mode<synchronous>, transform_indices = @transform_6, window_bounds = array<i64: 4, 8, 32>}, {pipeline_mode = #tpu.pipeline_mode<synchronous>, transform_indices = @transform_7, window_bounds = array<i64: 1, 32>}, {transform_indices = @transform_8, window_bounds = array<i64: 2, 72, 32>}]} {
    %c0 = arith.constant 0 : index
    %c0_0 = arith.constant 0 : index
    %c0_1 = arith.constant 0 : index
    %0 = vector.load %arg1[%c0, %c0_0, %c0_1] : memref<2x72x32xf32, #tpu.memory_space<vmem>>, vector<2x72x32xf32>
    %1 = vector.shape_cast %0 : vector<2x72x32xf32> to vector<144x32xf32>
    %c0_2 = arith.constant 0 : index
    %c0_3 = arith.constant 0 : index
    %c0_4 = arith.constant 0 : index
    %2 = vector.load %arg2[%c0_2, %c0_3, %c0_4] : memref<2x72x32xf32, #tpu.memory_space<vmem>>, vector<2x72x32xf32>
    %3 = vector.shape_cast %2 : vector<2x72x32xf32> to vector<144x32xf32>
    %c0_5 = arith.constant 0 : index
    %c0_6 = arith.constant 0 : index
    %c0_7 = arith.constant 0 : index
    %4 = vector.load %arg3[%c0_5, %c0_6, %c0_7] : memref<2x72x32xf32, #tpu.memory_space<vmem>>, vector<2x72x32xf32>
    %5 = vector.shape_cast %4 : vector<2x72x32xf32> to vector<144x32xf32>
    %c0_8 = arith.constant 0 : index
    %c0_9 = arith.constant 0 : index
    %c0_10 = arith.constant 0 : index
    %6 = vector.load %arg4[%c0_8, %c0_9, %c0_10] : memref<2x72x72xbf16, #tpu.memory_space<vmem>>, vector<2x72x72xbf16>
    %7 = arith.extf %6 : vector<2x72x72xbf16> to vector<2x72x72xf32>
    %cst = arith.constant 0.000000e+00 : f32
    %8 = vector.broadcast %cst : f32 to vector<144x32xf32>
    %c0_11 = arith.constant 0 : index
    %c0_12 = arith.constant 0 : index
    %c0_13 = arith.constant 0 : index
    %c0_14 = arith.constant 0 : index
    %9 = vector.load %arg5[%c0_11, %c0_12, %c0_13, %c0_14] : memref<3x4x32x8xf32, #tpu.memory_space<vmem>>, vector<1x1x32x8xf32>
    %10 = vector.shape_cast %9 : vector<1x1x32x8xf32> to vector<32x8xf32>
    %cst_15 = arith.constant dense<0.000000e+00> : vector<144x8xf32>
    %11 = tpu.matmul %1, %10, %cst_15 {dimension_numbers = #tpu.dot_dimension_numbers<[1], [0], [0], [1], [0, 0, 1, 1], [], []>} : vector<144x32xf32>, vector<32x8xf32>, vector<144x8xf32> -> vector<144x8xf32>
    %c0_16 = arith.constant 0 : index
    %c0_17 = arith.constant 0 : index
    %c0_18 = arith.constant 0 : index
    %c0_19 = arith.constant 0 : index
    %12 = vector.load %arg6[%c0_16, %c0_17, %c0_18, %c0_19] : memref<3x4x1x8xf32, #tpu.memory_space<vmem>>, vector<1x1x1x8xf32>
    %13 = vector.shape_cast %12 : vector<1x1x1x8xf32> to vector<1x8xf32>
    %14 = vector.broadcast %13 : vector<1x8xf32> to vector<144x8xf32>
    %15 = arith.addf %11, %14 : vector<144x8xf32>
    %c1 = arith.constant 1 : index
    %c0_20 = arith.constant 0 : index
    %c0_21 = arith.constant 0 : index
    %c0_22 = arith.constant 0 : index
    %16 = vector.load %arg5[%c1, %c0_20, %c0_21, %c0_22] : memref<3x4x32x8xf32, #tpu.memory_space<vmem>>, vector<1x1x32x8xf32>
    %17 = vector.shape_cast %16 : vector<1x1x32x8xf32> to vector<32x8xf32>
    %cst_23 = arith.constant dense<0.000000e+00> : vector<144x8xf32>
    %18 = tpu.matmul %3, %17, %cst_23 {dimension_numbers = #tpu.dot_dimension_numbers<[1], [0], [0], [1], [0, 0, 1, 1], [], []>} : vector<144x32xf32>, vector<32x8xf32>, vector<144x8xf32> -> vector<144x8xf32>
    %c1_24 = arith.constant 1 : index
    %c0_25 = arith.constant 0 : index
    %c0_26 = arith.constant 0 : index
    %c0_27 = arith.constant 0 : index
    %19 = vector.load %arg6[%c1_24, %c0_25, %c0_26, %c0_27] : memref<3x4x1x8xf32, #tpu.memory_space<vmem>>, vector<1x1x1x8xf32>
    %20 = vector.shape_cast %19 : vector<1x1x1x8xf32> to vector<1x8xf32>
    %21 = vector.broadcast %20 : vector<1x8xf32> to vector<144x8xf32>
    %22 = arith.addf %18, %21 : vector<144x8xf32>
    %c2 = arith.constant 2 : index
    %c0_28 = arith.constant 0 : index
    %c0_29 = arith.constant 0 : index
    %c0_30 = arith.constant 0 : index
    %23 = vector.load %arg5[%c2, %c0_28, %c0_29, %c0_30] : memref<3x4x32x8xf32, #tpu.memory_space<vmem>>, vector<1x1x32x8xf32>
    %24 = vector.shape_cast %23 : vector<1x1x32x8xf32> to vector<32x8xf32>
    %cst_31 = arith.constant dense<0.000000e+00> : vector<144x8xf32>
    %25 = tpu.matmul %5, %24, %cst_31 {dimension_numbers = #tpu.dot_dimension_numbers<[1], [0], [0], [1], [0, 0, 1, 1], [], []>} : vector<144x32xf32>, vector<32x8xf32>, vector<144x8xf32> -> vector<144x8xf32>
    %c2_32 = arith.constant 2 : index
    %c0_33 = arith.constant 0 : index
    %c0_34 = arith.constant 0 : index
    %c0_35 = arith.constant 0 : index
    %26 = vector.load %arg6[%c2_32, %c0_33, %c0_34, %c0_35] : memref<3x4x1x8xf32, #tpu.memory_space<vmem>>, vector<1x1x1x8xf32>
    %27 = vector.shape_cast %26 : vector<1x1x1x8xf32> to vector<1x8xf32>
    %28 = vector.broadcast %27 : vector<1x8xf32> to vector<144x8xf32>
    %29 = arith.addf %25, %28 : vector<144x8xf32>
    %30 = vector.shape_cast %15 : vector<144x8xf32> to vector<2x72x8xf32>
    %31 = vector.shape_cast %22 : vector<144x8xf32> to vector<2x72x8xf32>
    %32 = vector.shape_cast %29 : vector<144x8xf32> to vector<2x72x8xf32>
    "tpu.trace_start"() <{level = 10 : i32, message = "bqd,bkd->bqk"}> : () -> ()
    %cst_36 = arith.constant dense<0.000000e+00> : vector<2x72x72xf32>
    %33 = tpu.matmul %30, %31, %cst_36 {dimension_numbers = #tpu.dot_dimension_numbers<[2], [2], [1], [1], [0, 0, 0, 1, 1, 1], [0], [0]>} : vector<2x72x8xf32>, vector<2x72x8xf32>, vector<2x72x72xf32> -> vector<2x72x72xf32>
    "tpu.trace_stop"() : () -> ()
    %cst_37 = arith.constant 0.353553385 : f32
    %34 = vector.broadcast %cst_37 : f32 to vector<2x72x72xf32>
    %35 = arith.mulf %33, %34 : vector<2x72x72xf32>
    %cst_38 = arith.constant dense<0xFF800000> : vector<2x72xf32>
    %36 = vector.multi_reduction <maximumf>, %35, %cst_38 [2] : vector<2x72x72xf32> to vector<2x72xf32>
    %37 = vector.shape_cast %36 : vector<2x72xf32> to vector<2x72x1xf32>
    %38 = vector.broadcast %37 : vector<2x72x1xf32> to vector<2x72x72xf32>
    %39 = arith.subf %35, %38 : vector<2x72x72xf32>
    %40 = math.exp %39 : vector<2x72x72xf32>
    %cst_39 = arith.constant dense<0.000000e+00> : vector<2x72xf32>
    %41 = vector.multi_reduction <add>, %40, %cst_39 [2] : vector<2x72x72xf32> to vector<2x72xf32>
    %42 = vector.shape_cast %41 : vector<2x72xf32> to vector<2x72x1xf32>
    %43 = tpu.reciprocal %42 {approx = true} : vector<2x72x1xf32> -> vector<2x72x1xf32>
    %44 = vector.broadcast %43 : vector<2x72x1xf32> to vector<2x72x72xf32>
    %45 = arith.mulf %40, %44 : vector<2x72x72xf32>
    %46 = arith.mulf %45, %7 : vector<2x72x72xf32>
    "tpu.trace_start"() <{level = 10 : i32, message = "bqk,bkd->bqd"}> : () -> ()
    %cst_40 = arith.constant dense<0.000000e+00> : vector<2x72x8xf32>
    %47 = tpu.matmul %46, %32, %cst_40 {dimension_numbers = #tpu.dot_dimension_numbers<[2], [1], [1], [2], [0, 0, 0, 1, 1, 2], [0], [0]>} : vector<2x72x72xf32>, vector<2x72x8xf32>, vector<2x72x8xf32> -> vector<2x72x8xf32>
    "tpu.trace_stop"() : () -> ()
    %48 = vector.shape_cast %47 : vector<2x72x8xf32> to vector<144x8xf32>
    %c0_41 = arith.constant 0 : index
    %c0_42 = arith.constant 0 : index
    %c0_43 = arith.constant 0 : index
    %49 = vector.load %arg7[%c0_41, %c0_42, %c0_43] : memref<4x8x32xf32, #tpu.memory_space<vmem>>, vector<1x8x32xf32>
    %50 = vector.shape_cast %49 : vector<1x8x32xf32> to vector<8x32xf32>
    %cst_44 = arith.constant dense<0.000000e+00> : vector<144x32xf32>
    %51 = tpu.matmul %48, %50, %cst_44 {dimension_numbers = #tpu.dot_dimension_numbers<[1], [0], [0], [1], [0, 0, 1, 1], [], []>} : vector<144x8xf32>, vector<8x32xf32>, vector<144x32xf32> -> vector<144x32xf32>
    %52 = arith.addf %8, %51 : vector<144x32xf32>
    %c0_45 = arith.constant 0 : index
    %c1_46 = arith.constant 1 : index
    %c0_47 = arith.constant 0 : index
    %c0_48 = arith.constant 0 : index
    %53 = vector.load %arg5[%c0_45, %c1_46, %c0_47, %c0_48] : memref<3x4x32x8xf32, #tpu.memory_space<vmem>>, vector<1x1x32x8xf32>
    %54 = vector.shape_cast %53 : vector<1x1x32x8xf32> to vector<32x8xf32>
    %cst_49 = arith.constant dense<0.000000e+00> : vector<144x8xf32>
    %55 = tpu.matmul %1, %54, %cst_49 {dimension_numbers = #tpu.dot_dimension_numbers<[1], [0], [0], [1], [0, 0, 1, 1], [], []>} : vector<144x32xf32>, vector<32x8xf32>, vector<144x8xf32> -> vector<144x8xf32>
    %c0_50 = arith.constant 0 : index
    %c1_51 = arith.constant 1 : index
    %c0_52 = arith.constant 0 : index
    %c0_53 = arith.constant 0 : index
    %56 = vector.load %arg6[%c0_50, %c1_51, %c0_52, %c0_53] : memref<3x4x1x8xf32, #tpu.memory_space<vmem>>, vector<1x1x1x8xf32>
    %57 = vector.shape_cast %56 : vector<1x1x1x8xf32> to vector<1x8xf32>
    %58 = vector.broadcast %57 : vector<1x8xf32> to vector<144x8xf32>
    %59 = arith.addf %55, %58 : vector<144x8xf32>
    %c1_54 = arith.constant 1 : index
    %c1_55 = arith.constant 1 : index
    %c0_56 = arith.constant 0 : index
    %c0_57 = arith.constant 0 : index
    %60 = vector.load %arg5[%c1_54, %c1_55, %c0_56, %c0_57] : memref<3x4x32x8xf32, #tpu.memory_space<vmem>>, vector<1x1x32x8xf32>
    %61 = vector.shape_cast %60 : vector<1x1x32x8xf32> to vector<32x8xf32>
    %cst_58 = arith.constant dense<0.000000e+00> : vector<144x8xf32>
    %62 = tpu.matmul %3, %61, %cst_58 {dimension_numbers = #tpu.dot_dimension_numbers<[1], [0], [0], [1], [0, 0, 1, 1], [], []>} : vector<144x32xf32>, vector<32x8xf32>, vector<144x8xf32> -> vector<144x8xf32>
    %c1_59 = arith.constant 1 : index
    %c1_60 = arith.constant 1 : index
    %c0_61 = arith.constant 0 : index
    %c0_62 = arith.constant 0 : index
    %63 = vector.load %arg6[%c1_59, %c1_60, %c0_61, %c0_62] : memref<3x4x1x8xf32, #tpu.memory_space<vmem>>, vector<1x1x1x8xf32>
    %64 = vector.shape_cast %63 : vector<1x1x1x8xf32> to vector<1x8xf32>
    %65 = vector.broadcast %64 : vector<1x8xf32> to vector<144x8xf32>
    %66 = arith.addf %62, %65 : vector<144x8xf32>
    %c2_63 = arith.constant 2 : index
    %c1_64 = arith.constant 1 : index
    %c0_65 = arith.constant 0 : index
    %c0_66 = arith.constant 0 : index
    %67 = vector.load %arg5[%c2_63, %c1_64, %c0_65, %c0_66] : memref<3x4x32x8xf32, #tpu.memory_space<vmem>>, vector<1x1x32x8xf32>
    %68 = vector.shape_cast %67 : vector<1x1x32x8xf32> to vector<32x8xf32>
    %cst_67 = arith.constant dense<0.000000e+00> : vector<144x8xf32>
    %69 = tpu.matmul %5, %68, %cst_67 {dimension_numbers = #tpu.dot_dimension_numbers<[1], [0], [0], [1], [0, 0, 1, 1], [], []>} : vector<144x32xf32>, vector<32x8xf32>, vector<144x8xf32> -> vector<144x8xf32>
    %c2_68 = arith.constant 2 : index
    %c1_69 = arith.constant 1 : index
    %c0_70 = arith.constant 0 : index
    %c0_71 = arith.constant 0 : index
    %70 = vector.load %arg6[%c2_68, %c1_69, %c0_70, %c0_71] : memref<3x4x1x8xf32, #tpu.memory_space<vmem>>, vector<1x1x1x8xf32>
    %71 = vector.shape_cast %70 : vector<1x1x1x8xf32> to vector<1x8xf32>
    %72 = vector.broadcast %71 : vector<1x8xf32> to vector<144x8xf32>
    %73 = arith.addf %69, %72 : vector<144x8xf32>
    %74 = vector.shape_cast %59 : vector<144x8xf32> to vector<2x72x8xf32>
    %75 = vector.shape_cast %66 : vector<144x8xf32> to vector<2x72x8xf32>
    %76 = vector.shape_cast %73 : vector<144x8xf32> to vector<2x72x8xf32>
    "tpu.trace_start"() <{level = 10 : i32, message = "bqd,bkd->bqk"}> : () -> ()
    %cst_72 = arith.constant dense<0.000000e+00> : vector<2x72x72xf32>
    %77 = tpu.matmul %74, %75, %cst_72 {dimension_numbers = #tpu.dot_dimension_numbers<[2], [2], [1], [1], [0, 0, 0, 1, 1, 1], [0], [0]>} : vector<2x72x8xf32>, vector<2x72x8xf32>, vector<2x72x72xf32> -> vector<2x72x72xf32>
    "tpu.trace_stop"() : () -> ()
    %cst_73 = arith.constant 0.353553385 : f32
    %78 = vector.broadcast %cst_73 : f32 to vector<2x72x72xf32>
    %79 = arith.mulf %77, %78 : vector<2x72x72xf32>
    %cst_74 = arith.constant dense<0xFF800000> : vector<2x72xf32>
    %80 = vector.multi_reduction <maximumf>, %79, %cst_74 [2] : vector<2x72x72xf32> to vector<2x72xf32>
    %81 = vector.shape_cast %80 : vector<2x72xf32> to vector<2x72x1xf32>
    %82 = vector.broadcast %81 : vector<2x72x1xf32> to vector<2x72x72xf32>
    %83 = arith.subf %79, %82 : vector<2x72x72xf32>
    %84 = math.exp %83 : vector<2x72x72xf32>
    %cst_75 = arith.constant dense<0.000000e+00> : vector<2x72xf32>
    %85 = vector.multi_reduction <add>, %84, %cst_75 [2] : vector<2x72x72xf32> to vector<2x72xf32>
    %86 = vector.shape_cast %85 : vector<2x72xf32> to vector<2x72x1xf32>
    %87 = tpu.reciprocal %86 {approx = true} : vector<2x72x1xf32> -> vector<2x72x1xf32>
    %88 = vector.broadcast %87 : vector<2x72x1xf32> to vector<2x72x72xf32>
    %89 = arith.mulf %84, %88 : vector<2x72x72xf32>
    %90 = arith.mulf %89, %7 : vector<2x72x72xf32>
    "tpu.trace_start"() <{level = 10 : i32, message = "bqk,bkd->bqd"}> : () -> ()
    %cst_76 = arith.constant dense<0.000000e+00> : vector<2x72x8xf32>
    %91 = tpu.matmul %90, %76, %cst_76 {dimension_numbers = #tpu.dot_dimension_numbers<[2], [1], [1], [2], [0, 0, 0, 1, 1, 2], [0], [0]>} : vector<2x72x72xf32>, vector<2x72x8xf32>, vector<2x72x8xf32> -> vector<2x72x8xf32>
    "tpu.trace_stop"() : () -> ()
    %92 = vector.shape_cast %91 : vector<2x72x8xf32> to vector<144x8xf32>
    %c1_77 = arith.constant 1 : index
    %c0_78 = arith.constant 0 : index
    %c0_79 = arith.constant 0 : index
    %93 = vector.load %arg7[%c1_77, %c0_78, %c0_79] : memref<4x8x32xf32, #tpu.memory_space<vmem>>, vector<1x8x32xf32>
    %94 = vector.shape_cast %93 : vector<1x8x32xf32> to vector<8x32xf32>
    %cst_80 = arith.constant dense<0.000000e+00> : vector<144x32xf32>
    %95 = tpu.matmul %92, %94, %cst_80 {dimension_numbers = #tpu.dot_dimension_numbers<[1], [0], [0], [1], [0, 0, 1, 1], [], []>} : vector<144x8xf32>, vector<8x32xf32>, vector<144x32xf32> -> vector<144x32xf32>
    %96 = arith.addf %52, %95 : vector<144x32xf32>
    %c0_81 = arith.constant 0 : index
    %c2_82 = arith.constant 2 : index
    %c0_83 = arith.constant 0 : index
    %c0_84 = arith.constant 0 : index
    %97 = vector.load %arg5[%c0_81, %c2_82, %c0_83, %c0_84] : memref<3x4x32x8xf32, #tpu.memory_space<vmem>>, vector<1x1x32x8xf32>
    %98 = vector.shape_cast %97 : vector<1x1x32x8xf32> to vector<32x8xf32>
    %cst_85 = arith.constant dense<0.000000e+00> : vector<144x8xf32>
    %99 = tpu.matmul %1, %98, %cst_85 {dimension_numbers = #tpu.dot_dimension_numbers<[1], [0], [0], [1], [0, 0, 1, 1], [], []>} : vector<144x32xf32>, vector<32x8xf32>, vector<144x8xf32> -> vector<144x8xf32>
    %c0_86 = arith.constant 0 : index
    %c2_87 = arith.constant 2 : index
    %c0_88 = arith.constant 0 : index
    %c0_89 = arith.constant 0 : index
    %100 = vector.load %arg6[%c0_86, %c2_87, %c0_88, %c0_89] : memref<3x4x1x8xf32, #tpu.memory_space<vmem>>, vector<1x1x1x8xf32>
    %101 = vector.shape_cast %100 : vector<1x1x1x8xf32> to vector<1x8xf32>
    %102 = vector.broadcast %101 : vector<1x8xf32> to vector<144x8xf32>
    %103 = arith.addf %99, %102 : vector<144x8xf32>
    %c1_90 = arith.constant 1 : index
    %c2_91 = arith.constant 2 : index
    %c0_92 = arith.constant 0 : index
    %c0_93 = arith.constant 0 : index
    %104 = vector.load %arg5[%c1_90, %c2_91, %c0_92, %c0_93] : memref<3x4x32x8xf32, #tpu.memory_space<vmem>>, vector<1x1x32x8xf32>
    %105 = vector.shape_cast %104 : vector<1x1x32x8xf32> to vector<32x8xf32>
    %cst_94 = arith.constant dense<0.000000e+00> : vector<144x8xf32>
    %106 = tpu.matmul %3, %105, %cst_94 {dimension_numbers = #tpu.dot_dimension_numbers<[1], [0], [0], [1], [0, 0, 1, 1], [], []>} : vector<144x32xf32>, vector<32x8xf32>, vector<144x8xf32> -> vector<144x8xf32>
    %c1_95 = arith.constant 1 : index
    %c2_96 = arith.constant 2 : index
    %c0_97 = arith.constant 0 : index
    %c0_98 = arith.constant 0 : index
    %107 = vector.load %arg6[%c1_95, %c2_96, %c0_97, %c0_98] : memref<3x4x1x8xf32, #tpu.memory_space<vmem>>, vector<1x1x1x8xf32>
    %108 = vector.shape_cast %107 : vector<1x1x1x8xf32> to vector<1x8xf32>
    %109 = vector.broadcast %108 : vector<1x8xf32> to vector<144x8xf32>
    %110 = arith.addf %106, %109 : vector<144x8xf32>
    %c2_99 = arith.constant 2 : index
    %c2_100 = arith.constant 2 : index
    %c0_101 = arith.constant 0 : index
    %c0_102 = arith.constant 0 : index
    %111 = vector.load %arg5[%c2_99, %c2_100, %c0_101, %c0_102] : memref<3x4x32x8xf32, #tpu.memory_space<vmem>>, vector<1x1x32x8xf32>
    %112 = vector.shape_cast %111 : vector<1x1x32x8xf32> to vector<32x8xf32>
    %cst_103 = arith.constant dense<0.000000e+00> : vector<144x8xf32>
    %113 = tpu.matmul %5, %112, %cst_103 {dimension_numbers = #tpu.dot_dimension_numbers<[1], [0], [0], [1], [0, 0, 1, 1], [], []>} : vector<144x32xf32>, vector<32x8xf32>, vector<144x8xf32> -> vector<144x8xf32>
    %c2_104 = arith.constant 2 : index
    %c2_105 = arith.constant 2 : index
    %c0_106 = arith.constant 0 : index
    %c0_107 = arith.constant 0 : index
    %114 = vector.load %arg6[%c2_104, %c2_105, %c0_106, %c0_107] : memref<3x4x1x8xf32, #tpu.memory_space<vmem>>, vector<1x1x1x8xf32>
    %115 = vector.shape_cast %114 : vector<1x1x1x8xf32> to vector<1x8xf32>
    %116 = vector.broadcast %115 : vector<1x8xf32> to vector<144x8xf32>
    %117 = arith.addf %113, %116 : vector<144x8xf32>
    %118 = vector.shape_cast %103 : vector<144x8xf32> to vector<2x72x8xf32>
    %119 = vector.shape_cast %110 : vector<144x8xf32> to vector<2x72x8xf32>
    %120 = vector.shape_cast %117 : vector<144x8xf32> to vector<2x72x8xf32>
    "tpu.trace_start"() <{level = 10 : i32, message = "bqd,bkd->bqk"}> : () -> ()
    %cst_108 = arith.constant dense<0.000000e+00> : vector<2x72x72xf32>
    %121 = tpu.matmul %118, %119, %cst_108 {dimension_numbers = #tpu.dot_dimension_numbers<[2], [2], [1], [1], [0, 0, 0, 1, 1, 1], [0], [0]>} : vector<2x72x8xf32>, vector<2x72x8xf32>, vector<2x72x72xf32> -> vector<2x72x72xf32>
    "tpu.trace_stop"() : () -> ()
    %cst_109 = arith.constant 0.353553385 : f32
    %122 = vector.broadcast %cst_109 : f32 to vector<2x72x72xf32>
    %123 = arith.mulf %121, %122 : vector<2x72x72xf32>
    %cst_110 = arith.constant dense<0xFF800000> : vector<2x72xf32>
    %124 = vector.multi_reduction <maximumf>, %123, %cst_110 [2] : vector<2x72x72xf32> to vector<2x72xf32>
    %125 = vector.shape_cast %124 : vector<2x72xf32> to vector<2x72x1xf32>
    %126 = vector.broadcast %125 : vector<2x72x1xf32> to vector<2x72x72xf32>
    %127 = arith.subf %123, %126 : vector<2x72x72xf32>
    %128 = math.exp %127 : vector<2x72x72xf32>
    %cst_111 = arith.constant dense<0.000000e+00> : vector<2x72xf32>
    %129 = vector.multi_reduction <add>, %128, %cst_111 [2] : vector<2x72x72xf32> to vector<2x72xf32>
    %130 = vector.shape_cast %129 : vector<2x72xf32> to vector<2x72x1xf32>
    %131 = tpu.reciprocal %130 {approx = true} : vector<2x72x1xf32> -> vector<2x72x1xf32>
    %132 = vector.broadcast %131 : vector<2x72x1xf32> to vector<2x72x72xf32>
    %133 = arith.mulf %128, %132 : vector<2x72x72xf32>
    %134 = arith.mulf %133, %7 : vector<2x72x72xf32>
    "tpu.trace_start"() <{level = 10 : i32, message = "bqk,bkd->bqd"}> : () -> ()
    %cst_112 = arith.constant dense<0.000000e+00> : vector<2x72x8xf32>
    %135 = tpu.matmul %134, %120, %cst_112 {dimension_numbers = #tpu.dot_dimension_numbers<[2], [1], [1], [2], [0, 0, 0, 1, 1, 2], [0], [0]>} : vector<2x72x72xf32>, vector<2x72x8xf32>, vector<2x72x8xf32> -> vector<2x72x8xf32>
    "tpu.trace_stop"() : () -> ()
    %136 = vector.shape_cast %135 : vector<2x72x8xf32> to vector<144x8xf32>
    %c2_113 = arith.constant 2 : index
    %c0_114 = arith.constant 0 : index
    %c0_115 = arith.constant 0 : index
    %137 = vector.load %arg7[%c2_113, %c0_114, %c0_115] : memref<4x8x32xf32, #tpu.memory_space<vmem>>, vector<1x8x32xf32>
    %138 = vector.shape_cast %137 : vector<1x8x32xf32> to vector<8x32xf32>
    %cst_116 = arith.constant dense<0.000000e+00> : vector<144x32xf32>
    %139 = tpu.matmul %136, %138, %cst_116 {dimension_numbers = #tpu.dot_dimension_numbers<[1], [0], [0], [1], [0, 0, 1, 1], [], []>} : vector<144x8xf32>, vector<8x32xf32>, vector<144x32xf32> -> vector<144x32xf32>
    %140 = arith.addf %96, %139 : vector<144x32xf32>
    %c0_117 = arith.constant 0 : index
    %c3 = arith.constant 3 : index
    %c0_118 = arith.constant 0 : index
    %c0_119 = arith.constant 0 : index
    %141 = vector.load %arg5[%c0_117, %c3, %c0_118, %c0_119] : memref<3x4x32x8xf32, #tpu.memory_space<vmem>>, vector<1x1x32x8xf32>
    %142 = vector.shape_cast %141 : vector<1x1x32x8xf32> to vector<32x8xf32>
    %cst_120 = arith.constant dense<0.000000e+00> : vector<144x8xf32>
    %143 = tpu.matmul %1, %142, %cst_120 {dimension_numbers = #tpu.dot_dimension_numbers<[1], [0], [0], [1], [0, 0, 1, 1], [], []>} : vector<144x32xf32>, vector<32x8xf32>, vector<144x8xf32> -> vector<144x8xf32>
    %c0_121 = arith.constant 0 : index
    %c3_122 = arith.constant 3 : index
    %c0_123 = arith.constant 0 : index
    %c0_124 = arith.constant 0 : index
    %144 = vector.load %arg6[%c0_121, %c3_122, %c0_123, %c0_124] : memref<3x4x1x8xf32, #tpu.memory_space<vmem>>, vector<1x1x1x8xf32>
    %145 = vector.shape_cast %144 : vector<1x1x1x8xf32> to vector<1x8xf32>
    %146 = vector.broadcast %145 : vector<1x8xf32> to vector<144x8xf32>
    %147 = arith.addf %143, %146 : vector<144x8xf32>
    %c1_125 = arith.constant 1 : index
    %c3_126 = arith.constant 3 : index
    %c0_127 = arith.constant 0 : index
    %c0_128 = arith.constant 0 : index
    %148 = vector.load %arg5[%c1_125, %c3_126, %c0_127, %c0_128] : memref<3x4x32x8xf32, #tpu.memory_space<vmem>>, vector<1x1x32x8xf32>
    %149 = vector.shape_cast %148 : vector<1x1x32x8xf32> to vector<32x8xf32>
    %cst_129 = arith.constant dense<0.000000e+00> : vector<144x8xf32>
    %150 = tpu.matmul %3, %149, %cst_129 {dimension_numbers = #tpu.dot_dimension_numbers<[1], [0], [0], [1], [0, 0, 1, 1], [], []>} : vector<144x32xf32>, vector<32x8xf32>, vector<144x8xf32> -> vector<144x8xf32>
    %c1_130 = arith.constant 1 : index
    %c3_131 = arith.constant 3 : index
    %c0_132 = arith.constant 0 : index
    %c0_133 = arith.constant 0 : index
    %151 = vector.load %arg6[%c1_130, %c3_131, %c0_132, %c0_133] : memref<3x4x1x8xf32, #tpu.memory_space<vmem>>, vector<1x1x1x8xf32>
    %152 = vector.shape_cast %151 : vector<1x1x1x8xf32> to vector<1x8xf32>
    %153 = vector.broadcast %152 : vector<1x8xf32> to vector<144x8xf32>
    %154 = arith.addf %150, %153 : vector<144x8xf32>
    %c2_134 = arith.constant 2 : index
    %c3_135 = arith.constant 3 : index
    %c0_136 = arith.constant 0 : index
    %c0_137 = arith.constant 0 : index
    %155 = vector.load %arg5[%c2_134, %c3_135, %c0_136, %c0_137] : memref<3x4x32x8xf32, #tpu.memory_space<vmem>>, vector<1x1x32x8xf32>
    %156 = vector.shape_cast %155 : vector<1x1x32x8xf32> to vector<32x8xf32>
    %cst_138 = arith.constant dense<0.000000e+00> : vector<144x8xf32>
    %157 = tpu.matmul %5, %156, %cst_138 {dimension_numbers = #tpu.dot_dimension_numbers<[1], [0], [0], [1], [0, 0, 1, 1], [], []>} : vector<144x32xf32>, vector<32x8xf32>, vector<144x8xf32> -> vector<144x8xf32>
    %c2_139 = arith.constant 2 : index
    %c3_140 = arith.constant 3 : index
    %c0_141 = arith.constant 0 : index
    %c0_142 = arith.constant 0 : index
    %158 = vector.load %arg6[%c2_139, %c3_140, %c0_141, %c0_142] : memref<3x4x1x8xf32, #tpu.memory_space<vmem>>, vector<1x1x1x8xf32>
    %159 = vector.shape_cast %158 : vector<1x1x1x8xf32> to vector<1x8xf32>
    %160 = vector.broadcast %159 : vector<1x8xf32> to vector<144x8xf32>
    %161 = arith.addf %157, %160 : vector<144x8xf32>
    %162 = vector.shape_cast %147 : vector<144x8xf32> to vector<2x72x8xf32>
    %163 = vector.shape_cast %154 : vector<144x8xf32> to vector<2x72x8xf32>
    %164 = vector.shape_cast %161 : vector<144x8xf32> to vector<2x72x8xf32>
    "tpu.trace_start"() <{level = 10 : i32, message = "bqd,bkd->bqk"}> : () -> ()
    %cst_143 = arith.constant dense<0.000000e+00> : vector<2x72x72xf32>
    %165 = tpu.matmul %162, %163, %cst_143 {dimension_numbers = #tpu.dot_dimension_numbers<[2], [2], [1], [1], [0, 0, 0, 1, 1, 1], [0], [0]>} : vector<2x72x8xf32>, vector<2x72x8xf32>, vector<2x72x72xf32> -> vector<2x72x72xf32>
    "tpu.trace_stop"() : () -> ()
    %cst_144 = arith.constant 0.353553385 : f32
    %166 = vector.broadcast %cst_144 : f32 to vector<2x72x72xf32>
    %167 = arith.mulf %165, %166 : vector<2x72x72xf32>
    %cst_145 = arith.constant dense<0xFF800000> : vector<2x72xf32>
    %168 = vector.multi_reduction <maximumf>, %167, %cst_145 [2] : vector<2x72x72xf32> to vector<2x72xf32>
    %169 = vector.shape_cast %168 : vector<2x72xf32> to vector<2x72x1xf32>
    %170 = vector.broadcast %169 : vector<2x72x1xf32> to vector<2x72x72xf32>
    %171 = arith.subf %167, %170 : vector<2x72x72xf32>
    %172 = math.exp %171 : vector<2x72x72xf32>
    %cst_146 = arith.constant dense<0.000000e+00> : vector<2x72xf32>
    %173 = vector.multi_reduction <add>, %172, %cst_146 [2] : vector<2x72x72xf32> to vector<2x72xf32>
    %174 = vector.shape_cast %173 : vector<2x72xf32> to vector<2x72x1xf32>
    %175 = tpu.reciprocal %174 {approx = true} : vector<2x72x1xf32> -> vector<2x72x1xf32>
    %176 = vector.broadcast %175 : vector<2x72x1xf32> to vector<2x72x72xf32>
    %177 = arith.mulf %172, %176 : vector<2x72x72xf32>
    %178 = arith.mulf %177, %7 : vector<2x72x72xf32>
    "tpu.trace_start"() <{level = 10 : i32, message = "bqk,bkd->bqd"}> : () -> ()
    %cst_147 = arith.constant dense<0.000000e+00> : vector<2x72x8xf32>
    %179 = tpu.matmul %178, %164, %cst_147 {dimension_numbers = #tpu.dot_dimension_numbers<[2], [1], [1], [2], [0, 0, 0, 1, 1, 2], [0], [0]>} : vector<2x72x72xf32>, vector<2x72x8xf32>, vector<2x72x8xf32> -> vector<2x72x8xf32>
    "tpu.trace_stop"() : () -> ()
    %180 = vector.shape_cast %179 : vector<2x72x8xf32> to vector<144x8xf32>
    %c3_148 = arith.constant 3 : index
    %c0_149 = arith.constant 0 : index
    %c0_150 = arith.constant 0 : index
    %181 = vector.load %arg7[%c3_148, %c0_149, %c0_150] : memref<4x8x32xf32, #tpu.memory_space<vmem>>, vector<1x8x32xf32>
    %182 = vector.shape_cast %181 : vector<1x8x32xf32> to vector<8x32xf32>
    %cst_151 = arith.constant dense<0.000000e+00> : vector<144x32xf32>
    %183 = tpu.matmul %180, %182, %cst_151 {dimension_numbers = #tpu.dot_dimension_numbers<[1], [0], [0], [1], [0, 0, 1, 1], [], []>} : vector<144x8xf32>, vector<8x32xf32>, vector<144x32xf32> -> vector<144x32xf32>
    %184 = arith.addf %140, %183 : vector<144x32xf32>
    %c0_152 = arith.constant 0 : index
    %c0_153 = arith.constant 0 : index
    %185 = vector.load %arg8[%c0_152, %c0_153] : memref<1x32xf32, #tpu.memory_space<vmem>>, vector<1x32xf32>
    %186 = vector.broadcast %185 : vector<1x32xf32> to vector<144x32xf32>
    %187 = arith.addf %184, %186 : vector<144x32xf32>
    %188 = vector.shape_cast %187 : vector<144x32xf32> to vector<2x72x32xf32>
    %c0_154 = arith.constant 0 : index
    %c0_155 = arith.constant 0 : index
    %c0_156 = arith.constant 0 : index
    %189 = vector.load %arg9[%c0_154, %c0_155, %c0_156] : memref<2x72x32xf32, #tpu.memory_space<vmem>>, vector<2x72x32xf32>
    tpu.vector_store %arg9[%c0_154, %c0_155, %c0_156], %188 {strides = array<i32>} : memref<2x72x32xf32, #tpu.memory_space<vmem>>, vector<2x72x32xf32>,
    return
  }
  func.func @transform_0(%arg0: i32) -> (i32, i32, i32) {
    %c0_i32 = arith.constant 0 : i32
    %c0_i32_0 = arith.constant 0 : i32
    %c0_i32_1 = arith.constant 0 : i32
    return %arg0, %c0_i32, %c0_i32_0 : i32, i32, i32
  }
  func.func @transform_1(%arg0: i32) -> (i32, i32, i32) {
    %c0_i32 = arith.constant 0 : i32
    %c0_i32_0 = arith.constant 0 : i32
    %c0_i32_1 = arith.constant 0 : i32
    return %arg0, %c0_i32, %c0_i32_0 : i32, i32, i32
  }
  func.func @transform_2(%arg0: i32) -> (i32, i32, i32) {
    %c0_i32 = arith.constant 0 : i32
    %c0_i32_0 = arith.constant 0 : i32
    %c0_i32_1 = arith.constant 0 : i32
    return %arg0, %c0_i32, %c0_i32_0 : i32, i32, i32
  }
  func.func @transform_3(%arg0: i32) -> (i32, i32, i32) {
    %c0_i32 = arith.constant 0 : i32
    %c0_i32_0 = arith.constant 0 : i32
    %c0_i32_1 = arith.constant 0 : i32
    return %arg0, %c0_i32, %c0_i32_0 : i32, i32, i32
  }
  func.func @transform_4(%arg0: i32) -> (i32, i32, i32, i32) {
    %c0_i32 = arith.constant 0 : i32
    %c0_i32_0 = arith.constant 0 : i32
    %c0_i32_1 = arith.constant 0 : i32
    %c0_i32_2 = arith.constant 0 : i32
    %c0_i32_3 = arith.constant 0 : i32
    return %c0_i32, %c0_i32_0, %c0_i32_1, %c0_i32_2 : i32, i32, i32, i32
  }
  func.func @transform_5(%arg0: i32) -> (i32, i32, i32, i32) {
    %c0_i32 = arith.constant 0 : i32
    %c0_i32_0 = arith.constant 0 : i32
    %c0_i32_1 = arith.constant 0 : i32
    %c0_i32_2 = arith.constant 0 : i32
    %c0_i32_3 = arith.constant 0 : i32
    return %c0_i32, %c0_i32_0, %c0_i32_1, %c0_i32_2 : i32, i32, i32, i32
  }
  func.func @transform_6(%arg0: i32) -> (i32, i32, i32) {
    %c0_i32 = arith.constant 0 : i32
    %c0_i32_0 = arith.constant 0 : i32
    %c0_i32_1 = arith.constant 0 : i32
    %c0_i32_2 = arith.constant 0 : i32
    return %c0_i32, %c0_i32_0, %c0_i32_1 : i32, i32, i32
  }
  func.func @transform_7(%arg0: i32) -> (i32, i32) {
    %c0_i32 = arith.constant 0 : i32
    %c0_i32_0 = arith.constant 0 : i32
    %c0_i32_1 = arith.constant 0 : i32
    return %c0_i32, %c0_i32_0 : i32, i32
  }
  func.func @transform_8(%arg0: i32) -> (i32, i32, i32) {
    %c0_i32 = arith.constant 0 : i32
    %c0_i32_0 = arith.constant 0 : i32
    %c0_i32_1 = arith.constant 0 : i32
    return %arg0, %c0_i32, %c0_i32_0 : i32, i32, i32
  }
}

</mosaic_0001>

<bundles_post_ra>
// kernel: tpu_custom_call.1
= control target key start
LH: loop header
LB: loop body
LE: loop exit
PB: predicated region body
PF: predicated region fallthrough
CT: control target
= control target key end

     0   :  { %vm130_vm0 = vcmask 261120   ;;  %v13101_v48 = vmov 0.0|0.0   ;;  %vm9899_vm1 = vmmov 0   ;;  %vm784_vm2 = vcmask 64512   ;;  %s13092_s4 = inlined_call_operand.vmem [shape: f32[3,4,32,8], index: 4, kind: input, shape index: {}]   ;;  %s13093_s0 = inlined_call_operand.vmem [shape: f32[2,72,32], index: 0, kind: input, shape index: {}]   ;;  %s13094_s1 = inlined_call_operand.vmem [shape: f32[2,72,32], index: 1, kind: input, shape index: {}]   ;;  %s13095_s2 = inlined_call_operand.vmem [shape: f32[2,72,32], index: 2, kind: input, shape index: {}]   ;;  %s13096_s5 = inlined_call_operand.vmem [shape: f32[3,4,1,8], index: 5, kind: input, shape index: {}]   ;;  %s13097_s3 = inlined_call_operand.vmem [shape: bf16[2,72,72], index: 3, kind: input, shape index: {}]   ;;  %s13098_s6 = inlined_call_operand.vmem [shape: f32[4,8,32], index: 6, kind: input, shape index: {}]   ;;  %s13099_s7 = inlined_call_operand.vmem [shape: f32[1,32], index: 7, kind: input, shape index: {}]   ;;  %s13100_s8 = inlined_call_operand.vmem [shape: f32[2,72,32], index: 8, kind: output, shape index: {}]  }
   0x1   :  { %v119_v0 = vld [vmem:[%s13092_s4] sm:$0xff]  ;;  %v120_v1 = vld [vmem:[%s13092_s4 + $0x8] sm:$0xff]  ;;  %v121_v2 = vld [vmem:[%s13092_s4 + $0x10] sm:$0xff]  ;;  %vm1131_vm4 = vcmask 588800  }
   0x2   :  { %v9071_v3 = vpack.c.bf16 %v120_v1, %v119_v0  ;;  %v122_v4 = vld [vmem:[%s13092_s4 + $0x18] sm:$0xff]  ;;  %v29_v5 = vld [vmem:[%s13093_s0] sm:$0xff]  ;;  %v6588_v8 = vld [vmem:[%s13092_s4 + $0x88] sm:$0xff] }
   0x3   :  { %v9075_v6 = vpack.c.bf16 %v122_v4, %v121_v2  ;;  %7823 = vmatprep.mubr.msk.f32.mxu1 %vm130_vm0, %v29_v5  ;;  %v6587_v7 = vld [vmem:[%s13092_s4 + $0x80] sm:$0xff]  ;;  %v6589_v10 = vld [vmem:[%s13092_s4 + $0x90] sm:$0xff]  ;;  %v6590_v11 = vld [vmem:[%s13092_s4 + $0x98] sm:$0xff]  ;;  %v13103_v4 = vmov 0.0  }
   0x4   :  { %9072 = vmatprep.subr.bf16.mxu1 %v9071_v3  ;;  %v9079_v9 = vpack.c.bf16 %v6588_v8, %v6587_v7  ;;  %v30_v12 = vld [vmem:[%s13093_s0 + $0x8] sm:$0xff]  ;;  %v31_v13 = vld [vmem:[%s13093_s0 + $0x10] sm:$0xff]  ;;  %v9083_v14 = vpack.c.bf16 %v6590_v11, %v6589_v10  ;;  %v32_v15 = vld [vmem:[%s13093_s0 + $0x18] sm:$0xff] }
   0x5   :  { %9074 = vmatpush3.bf16.msra.mxu1 %v9071_v3  ;;  %v33_v16 = vld [vmem:[%s13093_s0 + $0x20] sm:$0xff]  ;;  %v34_v17 = vld [vmem:[%s13093_s0 + $0x28] sm:$0xff]  ;;  %v35_v18 = vld [vmem:[%s13093_s0 + $0x30] sm:$0xff] }
   0x6   :  { %9076 = vmatprep.subr.bf16.mxu1 %v9075_v6  ;;  %v36_v19 = vld [vmem:[%s13093_s0 + $0x38] sm:$0xff]  ;;  %v37_v20 = vld [vmem:[%s13093_s0 + $0x40] sm:$0xff]  ;;  %v38_v21 = vld [vmem:[%s13093_s0 + $0x48] sm:$0xff] }
   0x7   :  { %v39_v22 = vld [vmem:[%s13093_s0 + $0x50] sm:$0xff]  ;;  %v40_v23 = vld [vmem:[%s13093_s0 + $0x58] sm:$0xff]  ;;  %v41_v24 = vld [vmem:[%s13093_s0 + $0x60] sm:$0xff] }
   0x8   :  { %v42_v25 = vld [vmem:[%s13093_s0 + $0x68] sm:$0xff]  ;;  %v43_v26 = vld [vmem:[%s13093_s0 + $0x70] sm:$0xff]  ;;  %v44_v27 = vld [vmem:[%s13093_s0 + $0x78] sm:$0xff] }
   0x9   :  { %9078 = vmatpush3.bf16.msra.mxu1 %v9075_v6  ;;  %v45_v28 = vld [vmem:[%s13093_s0 + $0x80] sm:$0xff]  ;;  %v46_v29 = vld [vmem:[%s13093_s0 + $0x88] sm:$0xff]  ;;  %v49_v32 = vld [vmem:[%s13094_s1 + $0x10] sm:$0xff] }
   0xa   :  { %9080 = vmatprep.subr.bf16.mxu1 %v9079_v9  ;;  %v47_v30 = vld [vmem:[%s13094_s1] sm:$0xff]  ;;  %v48_v31 = vld [vmem:[%s13094_s1 + $0x8] sm:$0xff]  ;;  %v50_v33 = vld [vmem:[%s13094_s1 + $0x18] sm:$0xff] }
   0xb   :  { %v51_v34 = vld [vmem:[%s13094_s1 + $0x20] sm:$0xff]  ;;  %v52_v35 = vld [vmem:[%s13094_s1 + $0x28] sm:$0xff]  ;;  %v53_v36 = vld [vmem:[%s13094_s1 + $0x30] sm:$0xff] }
   0xc   :  { %7824 = vmatmul.mubr.msk.f32.vlgmr.msra.gmra.mrb[0].mxu1 %vm130_vm0, %v30_v12  ;;  %v54_v37 = vld [vmem:[%s13094_s1 + $0x38] sm:$0xff]  ;;  %v55_v38 = vld [vmem:[%s13094_s1 + $0x40] sm:$0xff]  ;;  %v56_v39 = vld [vmem:[%s13094_s1 + $0x48] sm:$0xff] }
   0xd   :  { %7826 = vmatprep.mubr.msk.f32.mxu1 %vm130_vm0, %v31_v13  ;;  %9082 = vmatpush3.bf16.msra.mxu1 %v9079_v9  ;;  %v57_v40 = vld [vmem:[%s13094_s1 + $0x50] sm:$0xff]  ;;  %v58_v41 = vld [vmem:[%s13094_s1 + $0x58] sm:$0xff]  ;;  %v59_v42 = vld [vmem:[%s13094_s1 + $0x60] sm:$0xff] }
   0xe   :  { %9084 = vmatprep.subr.bf16.mxu1 %v9083_v14  ;;  %v60_v43 = vld [vmem:[%s13094_s1 + $0x68] sm:$0xff]  ;;  %v61_v44 = vld [vmem:[%s13094_s1 + $0x70] sm:$0xff]  ;;  %v62_v45 = vld [vmem:[%s13094_s1 + $0x78] sm:$0xff] }
   0xf   :  { %v63_v46 = vld [vmem:[%s13094_s1 + $0x80] sm:$0xff]  ;;  %v64_v47 = vld [vmem:[%s13094_s1 + $0x88] sm:$0xff]  ;;  %v6613_v52 = vld [vmem:[%s13092_s4 + $0x110] sm:$0xff] }
  0x10   :  { %7827 = vmatmul.mubr.msk.f32.gmra.mrb[2].mxu1 %vm130_vm0, %v32_v15  ;;  %v6611_v49 = vld [vmem:[%s13092_s4 + $0x100] sm:$0xff]  ;;  %v6612_v50 = vld [vmem:[%s13092_s4 + $0x108] sm:$0xff]  ;;  %v6614_v53 = vld [vmem:[%s13092_s4 + $0x118] sm:$0xff] }
  0x11   :  { %7829 = vmatprep.mubr.msk.f32.mxu1 %vm130_vm0, %v33_v16  ;;  %9086 = vmatpush3.bf16.msra.mxu1 %v9083_v14  ;;  %v9087_v51 = vpack.c.bf16 %v6612_v50, %v6611_v49  ;;  %v9091_v54 = vpack.c.bf16 %v6614_v53, %v6613_v52  ;;  %v65_v55 = vld [vmem:[%s13095_s2] sm:$0xff]  ;;  %v66_v56 = vld [vmem:[%s13095_s2 + $0x8] sm:$0xff]  ;;  %v67_v57 = vld [vmem:[%s13095_s2 + $0x10] sm:$0xff] }
  0x12   :  { %9095 = vmatprep.subr.bf16.mxu1 %v13101_v48  ;;  %7893 = vmatprep.mubr.msk.f32.mxu0 %vm130_vm0, %v65_v55  ;;  %v68_v58 = vld [vmem:[%s13095_s2 + $0x18] sm:$0xff]  ;;  %v69_v59 = vld [vmem:[%s13095_s2 + $0x20] sm:$0xff]  ;;  %v70_v60 = vld [vmem:[%s13095_s2 + $0x28] sm:$0xff] }
  0x13   :  { %9088 = vmatprep.subr.bf16.mxu0 %v9087_v51  ;;  %v71_v61 = vld [vmem:[%s13095_s2 + $0x30] sm:$0xff]  ;;  %v72_v62 = vld [vmem:[%s13095_s2 + $0x38] sm:$0xff]  ;;  %v73_v63 = vld [vmem:[%s13095_s2 + $0x40] sm:$0xff] }
  0x14   :  { %7830 = vmatmul.mubr.msk.f32.gmra.mrb[4].mxu1 %vm130_vm0, %v34_v17  ;;  %9090 = vmatpush3.bf16.msra.mxu0 %v9087_v51  ;;  %v74_v0 = vld [vmem:[%s13095_s2 + $0x48] sm:$0xff]  ;;  %v75_v1 = vld [vmem:[%s13095_s2 + $0x50] sm:$0xff]  ;;  %v76_v2 = vld [vmem:[%s13095_s2 + $0x58] sm:$0xff] }
  0x15   :  { %7832 = vmatprep.mubr.msk.f32.mxu1 %vm130_vm0, %v35_v18  ;;  %9092 = vmatprep.subr.bf16.mxu0 %v9091_v54  ;;  %v77_v3 = vld [vmem:[%s13095_s2 + $0x60] sm:$0xff]  ;;  %v78_v5 = vld [vmem:[%s13095_s2 + $0x68] sm:$0xff]  ;;  %v79_v6 = vld [vmem:[%s13095_s2 + $0x70] sm:$0xff] }
  0x16   :  { %v80_v7 = vld [vmem:[%s13095_s2 + $0x78] sm:$0xff]  ;;  %v81_v8 = vld [vmem:[%s13095_s2 + $0x80] sm:$0xff]  ;;  %v82_v9 = vld [vmem:[%s13095_s2 + $0x88] sm:$0xff] }
  0x17   :  { %vm10249_vm3 = vmpackc.low %vm784_vm2, %vm784_vm2 }
  0x18   :  { %7833 = vmatmul.mubr.msk.f32.gmra.mrb[6].mxu1 %vm130_vm0, %v36_v19  ;;  %9094 = vmatpush3.bf16.msra.mxu0 %v9091_v54 }
  0x19   :  { %7835 = vmatprep.mubr.msk.f32.mxu1 %vm130_vm0, %v37_v20  ;;  %9111 = vmatprep.subr.bf16.mxu0 %v13101_v48 }
  0x1b   :  { %7894 = vmatmul.mubr.msk.f32.vlgmr.msra.gmra.mrb[0].mxu0 %vm130_vm0, %v66_v56 }
  0x1c   :  { %7836 = vmatmul.mubr.msk.f32.gmra.mrb[8].mxu1 %vm130_vm0, %v38_v21  ;;  %7896 = vmatprep.mubr.msk.f32.mxu0 %vm130_vm0, %v67_v57 }
  0x1d   :  { %7838 = vmatprep.mubr.msk.f32.mxu1 %vm130_vm0, %v39_v22 }
  0x1f   :  { %7897 = vmatmul.mubr.msk.f32.gmra.mrb[2].mxu0 %vm130_vm0, %v68_v58 }
  0x20   :  { %7839 = vmatmul.mubr.msk.f32.gmra.mrb[10].mxu1 %vm130_vm0, %v40_v23  ;;  %7899 = vmatprep.mubr.msk.f32.mxu0 %vm130_vm0, %v69_v59 }
  0x21   :  { %7841 = vmatprep.mubr.msk.f32.mxu1 %vm130_vm0, %v41_v24 }
  0x23   :  { %7900 = vmatmul.mubr.msk.f32.gmra.mrb[4].mxu0 %vm130_vm0, %v70_v60 }
  0x24   :  { %7842 = vmatmul.mubr.msk.f32.gmra.mrb[12].mxu1 %vm130_vm0, %v42_v25  ;;  %7902 = vmatprep.mubr.msk.f32.mxu0 %vm130_vm0, %v71_v61 }
  0x25   :  { %7844 = vmatprep.mubr.msk.f32.mxu1 %vm130_vm0, %v43_v26 }
  0x27   :  { %7903 = vmatmul.mubr.msk.f32.gmra.mrb[6].mxu0 %vm130_vm0, %v72_v62 }
  0x28   :  { %7845 = vmatmul.mubr.msk.f32.gmra.mrb[14].mxu1 %vm130_vm0, %v44_v27  ;;  %7905 = vmatprep.mubr.msk.f32.mxu0 %vm130_vm0, %v73_v63 }
  0x29   :  { %7847 = vmatprep.mubr.msk.f32.mxu1 %vm130_vm0, %v45_v28  ;;  %v10243_v28 = vld [vmem:[%s13096_s5 + $0x4] ss:$0 sm:$0xff] }
  0x2b   :  { %7906 = vmatmul.mubr.msk.f32.gmra.mrb[8].mxu0 %vm130_vm0, %v74_v0 }
  0x2c   :  { %7848 = vmatmul.mubr.msk.f32.gmra.mrb[16].mxu1 %vm130_vm0, %v46_v29  ;;  %7908 = vmatprep.mubr.msk.f32.mxu0 %vm130_vm0, %v75_v1 }
  0x2d   :  { %7858 = vmatprep.mubr.msk.f32.mxu1 %vm130_vm0, %v47_v30 }
  0x2f   :  { %7909 = vmatmul.mubr.msk.f32.gmra.mrb[10].mxu0 %vm130_vm0, %v76_v2 }
  0x30   :  { %7859 = vmatmul.mubr.msk.f32.vlgmr.msra.gmra.mrb[18].mxu1 %vm130_vm0, %v48_v31  ;;  %7911 = vmatprep.mubr.msk.f32.mxu0 %vm130_vm0, %v77_v3 }
  0x31   :  { %7861 = vmatprep.mubr.msk.f32.mxu1 %vm130_vm0, %v49_v32 }
  0x33   :  { %7912 = vmatmul.mubr.msk.f32.gmra.mrb[12].mxu0 %vm130_vm0, %v78_v5 }
  0x34   :  { %7862 = vmatmul.mubr.msk.f32.gmra.mrb[20].mxu1 %vm130_vm0, %v50_v33  ;;  %7914 = vmatprep.mubr.msk.f32.mxu0 %vm130_vm0, %v79_v6 }
  0x35   :  { %7864 = vmatprep.mubr.msk.f32.mxu1 %vm130_vm0, %v51_v34 }
  0x37   :  { %7915 = vmatmul.mubr.msk.f32.gmra.mrb[14].mxu0 %vm130_vm0, %v80_v7 }
  0x38   :  { %7865 = vmatmul.mubr.msk.f32.gmra.mrb[22].mxu1 %vm130_vm0, %v52_v35  ;;  %7917 = vmatprep.mubr.msk.f32.mxu0 %vm130_vm0, %v81_v8 }
  0x39   :  { %7867 = vmatprep.mubr.msk.f32.mxu1 %vm130_vm0, %v53_v36 }
  0x3b   :  { %7918 = vmatmul.mubr.msk.f32.gmra.mrb[16].mxu0 %vm130_vm0, %v82_v9  ;;  %v10288_v9 = vld [vmem:[%s13096_s5] ss:$0 sm:$0xff] }
  0x3c   :  { %7868 = vmatmul.mubr.msk.f32.gmra.mrb[24].mxu1 %vm130_vm0, %v54_v37  ;;  %7983 = vmatprep.mubr.msk.f32.mxu0 %vm9899_vm1, %v13103_v4 }
  0x3d   :  { %7870 = vmatprep.mubr.msk.f32.mxu1 %vm130_vm0, %v55_v38 }
  0x40   :  { %7871 = vmatmul.mubr.msk.f32.gmra.mrb[26].mxu1 %vm130_vm0, %v56_v39 }
  0x41   :  { %7873 = vmatprep.mubr.msk.f32.mxu1 %vm130_vm0, %v57_v40 }
  0x44   :  { %7874 = vmatmul.mubr.msk.f32.gmra.mrb[28].mxu1 %vm130_vm0, %v58_v41 }
  0x45   :  { %7876 = vmatprep.mubr.msk.f32.mxu1 %vm130_vm0, %v59_v42 }
  0x48   :  { %7877 = vmatmul.mubr.msk.f32.gmra.mrb[30].mxu1 %vm130_vm0, %v60_v43 }
  0x49   :  { %7879 = vmatprep.mubr.msk.f32.mxu1 %vm130_vm0, %v61_v44 }
  0x4c   :  { %7880 = vmatmul.mubr.msk.f32.gmra.mrb[32].mxu1 %vm130_vm0, %v62_v45 }
  0x4d   :  { %7882 = vmatprep.mubr.msk.f32.mxu1 %vm130_vm0, %v63_v46 }
  0x50   :  { %7883 = vmatmul.mubr.msk.f32.gmra.mrb[34].mxu1 %vm130_vm0, %v64_v47 }
  0x51   :  { %7938 = vmatprep.mubr.msk.f32.mxu1 %vm9899_vm1, %v13103_v4 }
  0xdf   :  { %v10204_v10 = vpop.f32.mrb[0].mxu1 }
  0xe0   :  { %v10206_v11 = vpop.f32.mrb[1].mxu1 }
  0xe3   :  { %v10208_v12 = vpop.f32.mrb[2].mxu1 }
  0xe4   :  { %v10210_v13 = vpop.f32.mrb[3].mxu1 }
  0xe7   :  { %v10212_v14 = vpop.f32.mrb[4].mxu1 }
  0xe8   :  { %v10214_v15 = vpop.f32.mrb[5].mxu1 }
  0xeb   :  { %v10216_v16 = vpop.f32.mrb[6].mxu1 }
  0xec   :  { %v10218_v17 = vpop.f32.mrb[7].mxu1 }
  0xef   :  { %v10220_v18 = vpop.f32.mrb[8].mxu1 }
  0xf0   :  { %v10222_v19 = vpop.f32.mrb[9].mxu1 }
  0xf3   :  { %v10224_v20 = vpop.f32.mrb[10].mxu1 }
  0xf4   :  { %v10226_v21 = vpop.f32.mrb[11].mxu1 }
  0xf7   :  { %v10228_v22 = vpop.f32.mrb[12].mxu1 }
  0xf8   :  { %v10230_v23 = vpop.f32.mrb[13].mxu1 }
  0xfb   :  { %v10232_v24 = vpop.f32.mrb[14].mxu1 }
  0xfc   :  { %v10234_v25 = vpop.f32.mrb[15].mxu1 }
  0xff   :  { %v10236_v26 = vpop.f32.mrb[16].mxu1 }
 0x100   :  { %v10238_v27 = vpop.f32.mrb[17].mxu1 }
 0x103   :  { %v7860_v29 = vpop.f32.mrb[18].mxu1 }
 0x104   :  { %v479_v30 = vadd.f32 %v7860_v29, %v10243_v28  ;;  %v473_v31 = vpop.f32.mrb[19].mxu1 }
 0x105   :  { %v474_v32 = vadd.f32 %v10243_v28, %v473_v31  ;;  %v252_v31 = vadd.f32 %v10288_v9, %v10206_v11  ;;  %v262_v11 = vadd.f32 %v10288_v9, %v10210_v13  ;;  %v272_v13 = vadd.f32 %v10288_v9, %v10214_v15 }
 0x106   :  { %v282_v15 = vadd.f32 %v10288_v9, %v10218_v17  ;;  %v292_v17 = vadd.f32 %v10288_v9, %v10222_v19  ;;  %v322_v19 = vadd.f32 %v10288_v9, %v10234_v25  ;;  %v7895_v25 = vpop.f32.mrb[0].mxu0 }
 0x107   :  { %v9096_v34 = vpack.c.bf16 %v479_v30, %v474_v32  ;;  %v7863_v35 = vpop.f32.mrb[20].mxu1  ;;  %v257_v32 = vadd.f32 %v10204_v10, %v10288_v9  ;;  %v267_v10 = vadd.f32 %v10208_v12, %v10288_v9  ;;  %v277_v12 = vadd.f32 %v10212_v14, %v10288_v9 }
 0x108   :  { %v489_v36 = vadd.f32 %v7863_v35, %v10243_v28  ;;  %v483_v37 = vpop.f32.mrb[21].mxu1  ;;  %v297_v35 = vadd.f32 %v10220_v18, %v10288_v9  ;;  %v302_v14 = vadd.f32 %v10288_v9, %v10226_v21  ;;  %v287_v18 = vadd.f32 %v10216_v16, %v10288_v9 }
 0x109   :  { %v484_v38 = vadd.f32 %v10243_v28, %v483_v37  ;;  %9098 = vmatpush3.bf16.xpose.msk.msra.mxu1 %vm10249_vm3, %v9096_v34  ;;  %v312_v21 = vadd.f32 %v10288_v9, %v10230_v23  ;;  %v317_v16 = vadd.f32 %v10228_v22, %v10288_v9  ;;  %v332_v22 = vadd.f32 %v10288_v9, %v10238_v27  ;;  %v695_v27 = vpop.f32.mrb[1].mxu0 }
 0x10a   :  { %9099 = vmatprep.subr.bf16.mxu1 %v13101_v48  ;;  %v337_v23 = vadd.f32 %v10236_v26, %v10288_v9 }
 0x10b   :  { %v9100_v39 = vpack.c.bf16 %v489_v36, %v484_v38  ;;  %v7866_v40 = vpop.f32.mrb[22].mxu1 }
 0x10c   :  { %v499_v41 = vadd.f32 %v7866_v40, %v10243_v28  ;;  %v493_v42 = vpop.f32.mrb[23].mxu1 }
 0x10d   :  { %v494_v43 = vadd.f32 %v10243_v28, %v493_v42 }
 0x10f   :  { %v9104_v44 = vpack.c.bf16 %v499_v41, %v494_v43  ;;  %v7869_v45 = vpop.f32.mrb[24].mxu1 }
 0x110   :  { %v509_v46 = vadd.f32 %v7869_v45, %v10243_v28  ;;  %v503_v47 = vpop.f32.mrb[25].mxu1 }
 0x111   :  { %v504_v49 = vadd.f32 %v10243_v28, %v503_v47  ;;  %9102 = vmatpush3.bf16.xpose.msk.msra.mxu1 %vm10249_vm3, %v9100_v39  ;;  %v7898_v39 = vpop.f32.mrb[2].mxu0 }
 0x112   :  { %9103 = vmatprep.subr.bf16.mxu1 %v13101_v48  ;;  %v705_v41 = vpop.f32.mrb[3].mxu0 }
 0x113   :  { %v9108_v50 = vpack.c.bf16 %v509_v46, %v504_v49  ;;  %v7872_v51 = vpop.f32.mrb[26].mxu1  ;;  %v7901_v43 = vpop.f32.mrb[4].mxu0 }
 0x114   :  { %v513_v52 = vpop.f32.mrb[27].mxu1  ;;  %v519_v55 = vadd.f32 %v7872_v51, %v10243_v28  ;;  %v715_v45 = vpop.f32.mrb[5].mxu0 }
 0x115   :  { %v514_v29 = vadd.f32 %v10243_v28, %v513_v52  ;;  %v7904_v49 = vpop.f32.mrb[6].mxu0 }
 0x116   :  { %v725_v51 = vpop.f32.mrb[7].mxu0 }
 0x117   :  { %v7875_v53 = vpop.f32.mrb[28].mxu1 }
 0x118   :  { %v523_v54 = vpop.f32.mrb[29].mxu1  ;;  %v529_v60 = vadd.f32 %v7875_v53, %v10243_v28 }
 0x119   :  { %v524_v56 = vadd.f32 %v10243_v28, %v523_v54  ;;  %9106 = vmatpush3.bf16.xpose.msk.msra.mxu1 %vm10249_vm3, %v9104_v44  ;;  %v7907_v54 = vpop.f32.mrb[8].mxu0 }
 0x11a   :  { %9107 = vmatprep.subr.bf16.mxu1 %v13101_v48 }
 0x11b   :  { %v9112_v57 = vpack.c.bf16 %v524_v56, %v519_v55  ;;  %v7878_v58 = vpop.f32.mrb[30].mxu1  ;;  %v735_v55 = vpop.f32.mrb[9].mxu0 }
 0x11c   :  { %v533_v59 = vpop.f32.mrb[31].mxu1  ;;  %v539_v62 = vadd.f32 %v7878_v58, %v10243_v28  ;;  %v7910_v58 = vpop.f32.mrb[10].mxu0 }
 0x11d   :  { %v534_v61 = vadd.f32 %v10243_v28, %v533_v59  ;;  %9114 = vmatpush3.bf16.xpose.msk.msra.mxu0 %vm10249_vm3, %v9112_v57  ;;  %v745_v59 = vpop.f32.mrb[11].mxu0 }
 0x11e   :  { %9115 = vmatprep.subr.bf16.mxu0 %v13101_v48 }
 0x11f   :  { %v9116_v63 = vpack.c.bf16 %v534_v61, %v529_v60  ;;  %v7881_v0 = vpop.f32.mrb[32].mxu1 }
 0x120   :  { %v543_v1 = vpop.f32.mrb[33].mxu1  ;;  %v549_v3 = vadd.f32 %v7881_v0, %v10243_v28 }
 0x121   :  { %v544_v2 = vadd.f32 %v10243_v28, %v543_v1  ;;  %9110 = vmatpush3.bf16.xpose.msk.msra.mxu1 %vm10249_vm3, %v9108_v50 }
 0x122   :  { %7936 = vmatprep.subr.mxu1 %v13103_v4 }
 0x123   :  { %v9120_v5 = vpack.c.bf16 %v544_v2, %v539_v62  ;;  %v7884_v6 = vpop.f32.mrb[34].mxu1 }
 0x124   :  { %v553_v7 = vpop.f32.mrb[35].mxu1  ;;  %v559_v34 = vadd.f32 %v7884_v6, %v10243_v28 }
 0x125   :  { %9118 = vmatpush3.bf16.xpose.msk.msra.mxu0 %vm10249_vm3, %v9116_v63  ;;  %v554_v8 = vadd.f32 %v10243_v28, %v553_v7  ;;  %v307_v28 = vadd.f32 %v10224_v20, %v10288_v9  ;;  %v327_v20 = vadd.f32 %v10232_v24, %v10288_v9  ;;  %v6616_v24 = vld [vmem:[%s13096_s5 + $0x8] ss:$0 sm:$0xff]  ;;  %v7913_v63 = vpop.f32.mrb[12].mxu0 }
 0x126   :  { %9119 = vmatprep.subr.bf16.mxu0 %v13101_v48  ;;  %v701_v36 = vadd.f32 %v7895_v25, %v6616_v24  ;;  %v696_v37 = vadd.f32 %v6616_v24, %v695_v27  ;;  %v711_v40 = vadd.f32 %v7898_v39, %v6616_v24  ;;  %v706_v42 = vadd.f32 %v6616_v24, %v705_v41  ;;  %v755_v0 = vpop.f32.mrb[13].mxu0 }
 0x127   :  { %v9124_v30 = vpack.c.bf16 %v554_v8, %v549_v3  ;;  %v721_v44 = vadd.f32 %v7901_v43, %v6616_v24  ;;  %v716_v46 = vadd.f32 %v6616_v24, %v715_v45  ;;  %v731_v50 = vadd.f32 %v7904_v49, %v6616_v24 }
 0x128   :  { %v9128_v38 = vpack.c.bf16 %v701_v36, %v696_v37  ;;  %v9131_v26 = vpack.c.bf16 %v711_v40, %v706_v42  ;;  %v726_v52 = vadd.f32 %v6616_v24, %v725_v51  ;;  %v736_v56 = vadd.f32 %v6616_v24, %v735_v55 }
 0x129   :  { %7937 = vmatpush3.xpose.msk.msra.mxu1 %vm784_vm2, %v514_v29  ;;  %v9134_v47 = vpack.c.bf16 %v721_v44, %v716_v46  ;;  %v741_v57 = vadd.f32 %v7907_v54, %v6616_v24  ;;  %v746_v60 = vadd.f32 %v6616_v24, %v745_v59  ;;  %v751_v61 = vadd.f32 %v7910_v58, %v6616_v24 }
 0x12a   :  { %9127 = vmatprep.subr.bf16.mxu1 %v13101_v48  ;;  %v9137_v53 = vpack.c.bf16 %v731_v50, %v726_v52  ;;  %v756_v1 = vadd.f32 %v6616_v24, %v755_v0  ;;  %v761_v2 = vadd.f32 %v7913_v63, %v6616_v24 }
 0x12b   :  { %v9140_v62 = vpack.c.bf16 %v746_v60, %v741_v57 }
 0x12c   :  { %7939 = vmatmul.mubr.msk.f32.vlgmr.msra.gmra.mrb[36].mxu1 %vm784_vm2, %v252_v31  ;;  %v9143_v3 = vpack.c.bf16 %v756_v1, %v751_v61 }
 0x12d   :  { %9122 = vmatpush3.bf16.xpose.msk.msra.mxu0 %vm10249_vm3, %v9120_v5  ;;  %7941 = vmatprep.mubr.msk.f32.mxu1 %vm9899_vm1, %v13103_v4  ;;  %v7916_v5 = vpop.f32.mrb[14].mxu0 }
 0x12e   :  { %9123 = vmatprep.subr.bf16.mxu0 %v13101_v48  ;;  %9129 = vmatpush3.bf16.msra.mxu1 %v9128_v38  ;;  %v765_v6 = vpop.f32.mrb[15].mxu0  ;;  %v771_v8 = vadd.f32 %v7916_v5, %v6616_v24 }
 0x12f   :  { %9130 = vmatprep.subr.bf16.mxu1 %v13101_v48  ;;  %v766_v7 = vadd.f32 %v6616_v24, %v765_v6  ;;  %v7919_v29 = vpop.f32.mrb[16].mxu0 }
 0x130   :  { %7942 = vmatmul.mubr.msk.f32.gmra.mrb[38].mxu1 %vm784_vm2, %v257_v32 }
 0x131   :  { %7944 = vmatprep.mubr.msk.f32.mxu1 %vm9899_vm1, %v13103_v4  ;;  %v9146_v9 = vpack.c.bf16 %v766_v7, %v761_v2 }
 0x132   :  { %9132 = vmatpush3.bf16.msra.mxu1 %v9131_v26 }
 0x133   :  { %9133 = vmatprep.subr.bf16.mxu1 %v13101_v48 }
 0x134   :  { %7945 = vmatmul.mubr.msk.f32.gmra.mrb[40].mxu1 %vm784_vm2, %v262_v11  ;;  %v781_v11 = vadd.f32 %v7919_v29, %v6616_v24 }
 0x135   :  { %9126 = vmatpush3.bf16.xpose.msk.msra.mxu0 %vm10249_vm3, %v9124_v30  ;;  %7947 = vmatprep.mubr.msk.f32.mxu1 %vm9899_vm1, %v13103_v4  ;;  %v775_v30 = vpop.f32.mrb[17].mxu0 }
 0x136   :  { %7981 = vmatprep.subr.mxu0 %v13103_v4  ;;  %9135 = vmatpush3.bf16.msra.mxu1 %v9134_v47  ;;  %v776_v31 = vadd.f32 %v6616_v24, %v775_v30 }
 0x137   :  { %9136 = vmatprep.subr.bf16.mxu1 %v13101_v48 }
 0x138   :  { %7948 = vmatmul.mubr.msk.f32.gmra.mrb[42].mxu1 %vm784_vm2, %v267_v10  ;;  %v9149_v32 = vpack.c.bf16 %v776_v31, %v771_v8 }
 0x139   :  { %7950 = vmatprep.mubr.msk.f32.mxu1 %vm9899_vm1, %v13103_v4 }
 0x13a   :  { %9138 = vmatpush3.bf16.msra.mxu1 %v9137_v53 }
 0x13b   :  { %8026 = vmatprep.subr.mxu1 %v13103_v4 }
 0x13c   :  { %7951 = vmatmul.mubr.msk.f32.gmra.mrb[44].mxu1 %vm784_vm2, %v272_v13 }
 0x13d   :  { %7982 = vmatpush3.xpose.msk.msra.mxu0 %vm784_vm2, %v559_v34  ;;  %7953 = vmatprep.mubr.msk.f32.mxu1 %vm9899_vm1, %v13103_v4 }
 0x13e   :  { %9139 = vmatprep.subr.bf16.mxu0 %v13101_v48  ;;  %8027 = vmatpush3.msra.mxu1 %v736_v56 }
 0x140   :  { %7954 = vmatmul.mubr.msk.f32.gmra.mrb[46].mxu1 %vm784_vm2, %v277_v12  ;;  %7984 = vmatmul.mubr.msk.f32.vlgmr.msra.gmra.mrb[18].mxu0 %vm784_vm2, %v297_v35 }
 0x141   :  { %7956 = vmatprep.mubr.msk.f32.mxu1 %vm9899_vm1, %v13103_v4  ;;  %7986 = vmatprep.mubr.msk.f32.mxu0 %vm9899_vm1, %v13103_v4 }
 0x142   :  { %9141 = vmatpush3.bf16.msra.mxu0 %v9140_v62 }
 0x143   :  { %9142 = vmatprep.subr.bf16.mxu0 %v13101_v48 }
 0x144   :  { %7957 = vmatmul.mubr.msk.f32.gmra.mrb[48].mxu1 %vm784_vm2, %v282_v15  ;;  %7987 = vmatmul.mubr.msk.f32.gmra.mrb[20].mxu0 %vm784_vm2, %v302_v14 }
 0x145   :  { %7959 = vmatprep.mubr.msk.f32.mxu1 %vm9899_vm1, %v13103_v4  ;;  %7989 = vmatprep.mubr.msk.f32.mxu0 %vm9899_vm1, %v13103_v4 }
 0x146   :  { %9144 = vmatpush3.bf16.msra.mxu0 %v9143_v3 }
 0x147   :  { %9145 = vmatprep.subr.bf16.mxu0 %v13101_v48 }
 0x148   :  { %7960 = vmatmul.mubr.msk.f32.gmra.mrb[50].mxu1 %vm784_vm2, %v287_v18  ;;  %7990 = vmatmul.mubr.msk.f32.gmra.mrb[22].mxu0 %vm784_vm2, %v307_v28 }
 0x149   :  { %7962 = vmatprep.mubr.msk.f32.mxu1 %vm9899_vm1, %v13103_v4  ;;  %7992 = vmatprep.mubr.msk.f32.mxu0 %vm9899_vm1, %v13103_v4 }
 0x14a   :  { %9147 = vmatpush3.bf16.msra.mxu0 %v9146_v9 }
 0x14b   :  { %9148 = vmatprep.subr.bf16.mxu0 %v13101_v48 }
 0x14c   :  { %7963 = vmatmul.mubr.msk.f32.gmra.mrb[52].mxu1 %vm784_vm2, %v292_v17  ;;  %7993 = vmatmul.mubr.msk.f32.gmra.mrb[24].mxu0 %vm784_vm2, %v312_v21 }
 0x14d   :  { %7995 = vmatprep.mubr.msk.f32.mxu0 %vm9899_vm1, %v13103_v4  ;;  %8028 = vmatprep.mubr.msk.f32.mxu1 %vm9899_vm1, %v13103_v4 }
 0x14e   :  { %9150 = vmatpush3.bf16.msra.mxu0 %v9149_v32 }
 0x14f   :  { %8071 = vmatprep.subr.mxu0 %v13103_v4 }
 0x150   :  { %7996 = vmatmul.mubr.msk.f32.gmra.mrb[26].mxu0 %vm784_vm2, %v317_v16 }
 0x151   :  { %7998 = vmatprep.mubr.msk.f32.mxu0 %vm9899_vm1, %v13103_v4 }
 0x152   :  { %8072 = vmatpush3.msra.mxu0 %v781_v11 }
 0x154   :  { %7999 = vmatmul.mubr.msk.f32.gmra.mrb[28].mxu0 %vm784_vm2, %v322_v19 }
 0x155   :  { %8001 = vmatprep.mubr.msk.f32.mxu0 %vm9899_vm1, %v13103_v4 }
 0x158   :  { %8002 = vmatmul.mubr.msk.f32.gmra.mrb[30].mxu0 %vm784_vm2, %v327_v20 }
 0x159   :  { %8004 = vmatprep.mubr.msk.f32.mxu0 %vm9899_vm1, %v13103_v4 }
 0x15c   :  { %8005 = vmatmul.mubr.msk.f32.gmra.mrb[32].mxu0 %vm784_vm2, %v332_v22 }
 0x15d   :  { %8007 = vmatprep.mubr.msk.f32.mxu0 %vm9899_vm1, %v13103_v4 }
 0x160   :  { %8008 = vmatmul.mubr.msk.f32.gmra.mrb[34].mxu0 %vm784_vm2, %v337_v23 }
 0x161   :  { %8073 = vmatprep.mubr.msk.f32.mxu0 %vm9899_vm1, %v13103_v4 }
 0x1ff   :  { %v905_v10 = vpop.f32.mrb[36].mxu1 }
 0x200   :  { %v7940_v13 = vpop.f32.mrb[37].mxu1  ;;  %v10435_v2 = vmul.f32 0.35355338, %v905_v10 }
 0x202   :  { %v1132_v30 = vsel %vm1131_vm4, %v10435_v2, -inf }
 0x203   :  { %v910_v34 = vpop.f32.mrb[38].mxu1 }
 0x204   :  { %v7943_v12 = vpop.f32.mrb[39].mxu1  ;;  %v10441_v8 = vmul.f32 0.35355338, %v910_v34 }
 0x206   :  { %v1135_v11 = vsel %vm1131_vm4, %v10441_v8, -inf }
 0x207   :  { %v915_v35 = vpop.f32.mrb[40].mxu1 }
 0x208   :  { %v7946_v15 = vpop.f32.mrb[41].mxu1  ;;  %v10443_v9 = vmul.f32 0.35355338, %v915_v35 }
 0x20a   :  { %v1138_v10 = vsel %vm1131_vm4, %v10443_v9, -inf }
 0x20b   :  { %v920_v14 = vpop.f32.mrb[42].mxu1 }
 0x20c   :  { %v7949_v18 = vpop.f32.mrb[43].mxu1  ;;  %v10449_v31 = vmul.f32 0.35355338, %v920_v14 }
 0x20e   :  { %v1141_v12 = vsel %vm1131_vm4, %v10449_v31, -inf }
 0x20f   :  { %v925_v28 = vpop.f32.mrb[44].mxu1 }
 0x210   :  { %v7952_v17 = vpop.f32.mrb[45].mxu1  ;;  %v10451_v32 = vmul.f32 0.35355338, %v925_v28 }
 0x212   :  { %v1144_v35 = vsel %vm1131_vm4, %v10451_v32, -inf }
 0x213   :  { %v10403_v21 = vpop.f32.mrb[46].mxu1  ;;  %v1069_v16 = vpop.f32.mrb[18].mxu0 }
 0x214   :  { %v10405_v19 = vmul.f32 0.35355338, %v1069_v16  ;;  %v7955_v20 = vpop.f32.mrb[47].mxu1  ;;  %v7985_v22 = vpop.f32.mrb[19].mxu0  ;;  %v10458_v13 = vmul.f32 0.35355338, %v10403_v21 }
 0x216   :  { %v1159_v23 = vsel %vm1131_vm4, %v10405_v19, -inf  ;;  %v1147_v18 = vsel %vm1131_vm4, %v10458_v13, -inf }
 0x217   :  { %1160 = vmax.xlane.f32.xlu0 %v1159_v23  ;;  %v935_v24 = vpop.f32.mrb[48].mxu1  ;;  %v1074_v25 = vpop.f32.mrb[20].mxu0 }
 0x218   :  { %v10409_v36 = vmul.f32 0.35355338, %v1074_v25  ;;  %v7958_v27 = vpop.f32.mrb[49].mxu1  ;;  %v7988_v37 = vpop.f32.mrb[21].mxu0  ;;  %v10460_v34 = vmul.f32 0.35355338, %v935_v24 }
 0x21a   :  { %v1162_v38 = vsel %vm1131_vm4, %v10409_v36, -inf  ;;  %v1150_v28 = vsel %vm1131_vm4, %v10460_v34, -inf }
 0x21b   :  { %1163 = vmax.xlane.f32.xlu0 %v1162_v38  ;;  %v940_v39 = vpop.f32.mrb[50].mxu1  ;;  %v1079_v40 = vpop.f32.mrb[22].mxu0 }
 0x21c   :  { %v10413_v41 = vmul.f32 0.35355338, %v1079_v40  ;;  %v7961_v42 = vpop.f32.mrb[51].mxu1  ;;  %v7991_v26 = vpop.f32.mrb[23].mxu0  ;;  %v10466_v15 = vmul.f32 0.35355338, %v940_v39 }
 0x21e   :  { %v1165_v43 = vsel %vm1131_vm4, %v10413_v41, -inf  ;;  %v1153_v17 = vsel %vm1131_vm4, %v10466_v15, -inf }
 0x21f   :  { %1166 = vmax.xlane.f32.xlu1 %v1165_v43  ;;  %v945_v44 = vpop.f32.mrb[52].mxu1  ;;  %v1084_v45 = vpop.f32.mrb[24].mxu0 }
 0x220   :  { %v10417_v46 = vmul.f32 0.35355338, %v1084_v45  ;;  %v7964_v47 = vpop.f32.mrb[53].mxu1  ;;  %v7994_v49 = vpop.f32.mrb[25].mxu0  ;;  %v10468_v14 = vmul.f32 0.35355338, %v945_v44 }
 0x222   :  { %v1168_v50 = vsel %vm1131_vm4, %v10417_v46, -inf  ;;  %v1156_v21 = vsel %vm1131_vm4, %v10468_v14, -inf }
 0x223   :  { %1169 = vmax.xlane.f32.xlu1 %v1168_v50  ;;  %v1089_v51 = vpop.f32.mrb[26].mxu0 }
 0x224   :  { %v10421_v52 = vmul.f32 0.35355338, %v1089_v51  ;;  %v7997_v53 = vpop.f32.mrb[27].mxu0 }
 0x226   :  { %v1171_v54 = vsel %vm1131_vm4, %v10421_v52, -inf }
 0x227   :  { %1172 = vmax.xlane.f32.xlu0 %v1171_v54  ;;  %v1094_v55 = vpop.f32.mrb[28].mxu0 }
 0x228   :  { %v10425_v56 = vmul.f32 0.35355338, %v1094_v55  ;;  %v8000_v57 = vpop.f32.mrb[29].mxu0 }
 0x22a   :  { %v1174_v58 = vsel %vm1131_vm4, %v10425_v56, -inf }
 0x22b   :  { %1175 = vmax.xlane.f32.xlu1 %v1174_v58  ;;  %v1099_v59 = vpop.f32.mrb[30].mxu0 }
 0x22c   :  { %v10429_v60 = vmul.f32 0.35355338, %v1099_v59  ;;  %v8003_v61 = vpop.f32.mrb[31].mxu0 }
 0x22e   :  { %v1177_v62 = vsel %vm1131_vm4, %v10429_v60, -inf }
 0x22f   :  { %1178 = vmax.xlane.f32.xlu0 %v1177_v62  ;;  %v1104_v63 = vpop.f32.mrb[32].mxu0 }
 0x230   :  { %v10433_v0 = vmul.f32 0.35355338, %v1104_v63  ;;  %v8006_v1 = vpop.f32.mrb[33].mxu0 }
 0x232   :  { %v1180_v3 = vsel %vm1131_vm4, %v10433_v0, -inf }
 0x233   :  { %1181 = vmax.xlane.f32.xlu1 %v1180_v3  ;;  %v1109_v5 = vpop.f32.mrb[34].mxu0 }
 0x234   :  { %v10439_v6 = vmul.f32 0.35355338, %v1109_v5  ;;  %v8009_v7 = vpop.f32.mrb[35].mxu0 }
 0x236   :  { %v1183_v29 = vsel %vm1131_vm4, %v10439_v6, -inf }
 0x237   :  { %1184 = vmax.xlane.f32.xlu0 %v1183_v29  ;;  %1133 = vmax.xlane.f32.xlu1 %v1132_v30 }
 0x23b   :  { %1136 = vmax.xlane.f32.xlu0 %v1135_v11  ;;  %1139 = vmax.xlane.f32.xlu1 %v1138_v10 }
 0x23f   :  { %1142 = vmax.xlane.f32.xlu0 %v1141_v12  ;;  %1145 = vmax.xlane.f32.xlu1 %v1144_v35 }
 0x243   :  { %1148 = vmax.xlane.f32.xlu0 %v1147_v18  ;;  %1151 = vmax.xlane.f32.xlu1 %v1150_v28 }
 0x247   :  { %1154 = vmax.xlane.f32.xlu0 %v1153_v17  ;;  %1157 = vmax.xlane.f32.xlu1 %v1156_v21 }
 0x2a4   :  { %v1161_v16 = vpop.xlane.xlu0 %1160 }
 0x2a5   :  { %v1195_v20 = vsub.f32 %v10405_v19, %v1161_v16 }
 0x2a7   :  { %v1222_v22 = vmul.f32 1.442695, %v1195_v20 }
 0x2a8   :  { %v1164_v23 = vpop.xlane.xlu0 %1163 }
 0x2a9   :  { %9448 = vpow2.f32 %v1222_v22  ;;  %v1196_v24 = vsub.f32 %v10409_v36, %v1164_v23 }
 0x2ab   :  { %v1224_v25 = vmul.f32 1.442695, %v1196_v24 }
 0x2ac   :  { %v1167_v27 = vpop.xlane.xlu1 %1166 }
 0x2ad   :  { %9450 = vpow2.f32 %v1224_v25  ;;  %v1197_v37 = vsub.f32 %v10413_v41, %v1167_v27 }
 0x2af   :  { %v1226_v38 = vmul.f32 1.442695, %v1197_v37 }
 0x2b0   :  { %v1170_v39 = vpop.xlane.xlu1 %1169 }
 0x2b1   :  { %9452 = vpow2.f32 %v1226_v38  ;;  %v1198_v40 = vsub.f32 %v10417_v46, %v1170_v39  ;;  %v6713_v38 = vld [vmem:[%s13092_s4 + $0xa0] sm:$0xff]  ;;  %v6714_v39 = vld [vmem:[%s13092_s4 + $0xa8] sm:$0xff] }
 0x2b3   :  { %v10482_v42 = vpop.eup %9448  ;;  %v1228_v26 = vmul.f32 1.442695, %v1198_v40 }
 0x2b4   :  { %v1173_v43 = vpop.xlane.xlu0 %1172  ;;  %v1267_v19 = vsel %vm1131_vm4, %v10482_v42, 0.0 }
 0x2b5   :  { %9454 = vpow2.f32 %v1228_v26  ;;  %v1199_v36 = vsub.f32 %v10421_v52, %v1173_v43  ;;  %1268 = vadd.xlane.f32.xlu0 %v1267_v19  ;;  %v10538_v43 = vpack.c.bf16 %v6714_v39, %v6713_v38 }
 0x2b7   :  { %v10487_v44 = vpop.eup %9450  ;;  %v1230_v45 = vmul.f32 1.442695, %v1199_v36  ;;  %9160 = vmatprep.subr.bf16.mxu0 %v10538_v43 }
 0x2b8   :  { %v1176_v41 = vpop.xlane.xlu1 %1175  ;;  %v1270_v47 = vsel %vm1131_vm4, %v10487_v44, 0.0 }
 0x2b9   :  { %9456 = vpow2.f32 %v1230_v45  ;;  %v1200_v46 = vsub.f32 %v10425_v56, %v1176_v41  ;;  %1271 = vadd.xlane.f32.xlu1 %v1270_v47 }
 0x2bb   :  { %v10492_v49 = vpop.eup %9452  ;;  %v1232_v50 = vmul.f32 1.442695, %v1200_v46 }
 0x2bc   :  { %v1179_v51 = vpop.xlane.xlu0 %1178  ;;  %v1273_v53 = vsel %vm1131_vm4, %v10492_v49, 0.0 }
 0x2bd   :  { %9458 = vpow2.f32 %v1232_v50  ;;  %v1201_v52 = vsub.f32 %v10429_v60, %v1179_v51  ;;  %1274 = vadd.xlane.f32.xlu0 %v1273_v53 }
 0x2bf   :  { %v10497_v54 = vpop.eup %9454  ;;  %v1234_v55 = vmul.f32 1.442695, %v1201_v52 }
 0x2c0   :  { %v1182_v57 = vpop.xlane.xlu1 %1181  ;;  %v1276_v58 = vsel %vm1131_vm4, %v10497_v54, 0.0 }
 0x2c1   :  { %9460 = vpow2.f32 %v1234_v55  ;;  %v1202_v56 = vsub.f32 %v10433_v0, %v1182_v57  ;;  %1277 = vadd.xlane.f32.xlu1 %v1276_v58 }
 0x2c3   :  { %v10502_v59 = vpop.eup %9456  ;;  %v1236_v61 = vmul.f32 1.442695, %v1202_v56 }
 0x2c4   :  { %v1185_v62 = vpop.xlane.xlu0 %1184  ;;  %v1134_v63 = vpop.xlane.xlu1 %1133  ;;  %v1279_v60 = vsel %vm1131_vm4, %v10502_v59, 0.0 }
 0x2c5   :  { %9462 = vpow2.f32 %v1236_v61  ;;  %v1203_v1 = vsub.f32 %v10439_v6, %v1185_v62  ;;  %v1186_v3 = vsub.f32 %v10435_v2, %v1134_v63  ;;  %1280 = vadd.xlane.f32.xlu0 %v1279_v60 }
 0x2c7   :  { %v10508_v5 = vpop.eup %9458  ;;  %v1238_v7 = vmul.f32 1.442695, %v1203_v1  ;;  %v1204_v29 = vmul.f32 1.442695, %v1186_v3  ;;  %v6689_v3 = vld [vmem:[%s13092_s4 + $0x20] sm:$0xff] }
 0x2c8   :  { %v1137_v0 = vpop.xlane.xlu0 %1136  ;;  %v1140_v30 = vpop.xlane.xlu1 %1139  ;;  %v1282_v11 = vsel %vm1131_vm4, %v10508_v5, 0.0 }
 0x2c9   :  { %9464 = vpow2.f32 %v1238_v7  ;;  %v1187_v10 = vsub.f32 %v10441_v8, %v1137_v0  ;;  %v1188_v12 = vsub.f32 %v10443_v9, %v1140_v30  ;;  %1283 = vadd.xlane.f32.xlu1 %v1282_v11  ;;  %v6690_v7 = vld [vmem:[%s13092_s4 + $0x28] sm:$0xff]  ;;  %v10589_v11 = vld [vmem:[%s13097_s3 + $0x20] sm:$0xff]  }
 0x2ca   :  { %9466 = vpow2.f32 %v1204_v29  ;;  %v10583_v29 = vpack.c.bf16 %v6690_v7, %v6689_v3 }
 0x2cb   :  { %v10514_v6 = vpop.eup %9460  ;;  %v1206_v2 = vmul.f32 1.442695, %v1187_v10  ;;  %v1208_v35 = vmul.f32 1.442695, %v1188_v12  ;;  %v10592_v12 = vunpack.c.h.bf16 %v10589_v11 }
 0x2cc   :  { %v1143_v18 = vpop.xlane.xlu0 %1142  ;;  %v1146_v28 = vpop.xlane.xlu1 %1145  ;;  %v1285_v17 = vsel %vm1131_vm4, %v10514_v6, 0.0  ;;  %9152 = vmatprep.subr.bf16.mxu1 %v10583_v29 }
 0x2cd   :  { %9468 = vpow2.f32 %v1206_v2  ;;  %v1189_v21 = vsub.f32 %v10449_v31, %v1143_v18  ;;  %v1190_v16 = vsub.f32 %v10451_v32, %v1146_v28  ;;  %1286 = vadd.xlane.f32.xlu0 %v1285_v17  ;;  %v6715_v18 = vld [vmem:[%s13092_s4 + $0xb0] sm:$0xff]  ;;  %v6716_v28 = vld [vmem:[%s13092_s4 + $0xb8] sm:$0xff] }
 0x2ce   :  { %9470 = vpow2.f32 %v1208_v35  ;;  %v7183_v35 = vld [vmem:[%s13097_s3 + $0x28] sm:$0xff]  }
 0x2cf   :  { %v10520_v8 = vpop.eup %9462  ;;  %v1210_v9 = vmul.f32 1.442695, %v1189_v21  ;;  %v1212_v20 = vmul.f32 1.442695, %v1190_v16 }
 0x2d0   :  { %v1149_v22 = vpop.xlane.xlu0 %1148  ;;  %v1152_v23 = vpop.xlane.xlu1 %1151  ;;  %v1288_v24 = vsel %vm1131_vm4, %v10520_v8, 0.0 }
 0x2d1   :  { %9472 = vpow2.f32 %v1210_v9  ;;  %v1191_v25 = vsub.f32 %v10458_v13, %v1149_v22  ;;  %v1192_v27 = vsub.f32 %v10460_v34, %v1152_v23  ;;  %1289 = vadd.xlane.f32.xlu1 %v1288_v24  ;;  %v10605_v9 = vunpack.c.l.bf16 %v7183_v35 }
 0x2d2   :  { %9474 = vpow2.f32 %v1212_v20  ;;  %v9163_v20 = vpack.c.bf16 %v6716_v28, %v6715_v18 }
 0x2d3   :  { %v10526_v31 = vpop.eup %9464  ;;  %v1214_v32 = vmul.f32 1.442695, %v1191_v25  ;;  %v1216_v37 = vmul.f32 1.442695, %v1192_v27  ;;  %v10613_v25 = vunpack.c.h.bf16 %v7183_v35 }
 0x2d4   :  { %v10534_v40 = vpop.eup %9466  ;;  %v1155_v26 = vpop.xlane.xlu0 %1154  ;;  %v1291_v34 = vsel %vm1131_vm4, %v10526_v31, 0.0 }
 0x2d5   :  { %v1158_v13 = vpop.xlane.xlu1 %1157  ;;  %9476 = vpow2.f32 %v1214_v32  ;;  %v1193_v19 = vsub.f32 %v10466_v15, %v1155_v26  ;;  %1292 = vadd.xlane.f32.xlu0 %v1291_v34  ;;  %v1240_v45 = vsel %vm1131_vm4, %v10534_v40, 0.0  ;;  %v7184_v32 = vld [vmem:[%s13097_s3 + $0x30] sm:$0xff]  }
 0x2d6   :  { %v1194_v36 = vsub.f32 %v10468_v14, %v1158_v13  ;;  %9478 = vpow2.f32 %v1216_v37  ;;  %1241 = vadd.xlane.f32.xlu1 %v1240_v45  ;;  %v10623_v39 = vunpack.c.l.bf16 %v7184_v32 }
 0x2d7   :  { %v10545_v41 = vpop.eup %9468  ;;  %v1218_v47 = vmul.f32 1.442695, %v1193_v19 }
 0x2d8   :  { %v1220_v46 = vmul.f32 1.442695, %v1194_v36  ;;  %v10547_v50 = vpop.eup %9470  ;;  %v1243_v51 = vsel %vm1131_vm4, %v10545_v41, 0.0  ;;  %v7185_v36 = vld [vmem:[%s13097_s3 + $0x38] sm:$0xff]  }
 0x2d9   :  { %9480 = vpow2.f32 %v1218_v47  ;;  %1244 = vadd.xlane.f32.xlu0 %v1243_v51  ;;  %v1246_v15 = vsel %vm1131_vm4, %v10547_v50, 0.0 }
 0x2da   :  { %9482 = vpow2.f32 %v1220_v46  ;;  %1247 = vadd.xlane.f32.xlu1 %v1246_v15  ;;  %v10641_v46 = vunpack.c.l.bf16 %v7185_v36 }
 0x2db   :  { %v10553_v14 = vpop.eup %9472 }
 0x2dc   :  { %v10555_v53 = vpop.eup %9474  ;;  %v1249_v52 = vsel %vm1131_vm4, %v10553_v14, 0.0  ;;  %13118 = vst [vmem:[#allocation3_spill] sm:$0xff] %v10641_v46 }
 0x2dd   :  { %1250 = vadd.xlane.f32.xlu0 %v1249_v52  ;;  %v1252_v55 = vsel %vm1131_vm4, %v10555_v53, 0.0 }
 0x2de   :  { %1253 = vadd.xlane.f32.xlu1 %v1252_v55 }
 0x2df   :  { %v10561_v57 = vpop.eup %9476 }
 0x2e0   :  { %v10563_v58 = vpop.eup %9478  ;;  %v1255_v56 = vsel %vm1131_vm4, %v10561_v57, 0.0 }
 0x2e1   :  { %1256 = vadd.xlane.f32.xlu0 %v1255_v56  ;;  %v1258_v61 = vsel %vm1131_vm4, %v10563_v58, 0.0  ;;  %v10648_v56 = vunpack.c.h.bf16 %v7185_v36  ;;  %v9737_v36 = vld [vmem:[%s13094_s1 + $0x8] sm:$0xff] }
 0x2e2   :  { %1259 = vadd.xlane.f32.xlu1 %v1258_v61 }
 0x2e3   :  { %v10569_v62 = vpop.eup %9480  ;;  %13119 = vst [vmem:[#allocation4_spill] sm:$0xff] %v10648_v56 }
 0x2e4   :  { %v10571_v63 = vpop.eup %9482  ;;  %v1261_v60 = vsel %vm1131_vm4, %v10569_v62, 0.0 }
 0x2e5   :  { %1262 = vadd.xlane.f32.xlu0 %v1261_v60  ;;  %v1264_v1 = vsel %vm1131_vm4, %v10571_v63, 0.0  ;;  %v7186_v60 = vld [vmem:[%s13097_s3 + $0x40] sm:$0xff]  }
 0x2e6   :  { %1265 = vadd.xlane.f32.xlu1 %v1264_v1  ;;  %v10668_v18 = vunpack.c.h.bf16 %v7186_v60 }
 0x2e8   :  { %13121 = vst [vmem:[#allocation6_spill] sm:$0xff] %v10668_v18 }
 0x342   :  { %v1269_v0 = vpop.xlane.xlu0 %1268 }
 0x343   :  { %9484 = vrcp.f32 %v1269_v0  ;;  %v10658_v0 = vunpack.c.l.bf16 %v7186_v60 }
 0x345   :  { %13120 = vst [vmem:[#allocation5_spill] sm:$0xff] %v10658_v0 }
 0x346   :  { %v1272_v30 = vpop.xlane.xlu1 %1271 }
 0x347   :  { %9486 = vrcp.f32 %v1272_v30 }
 0x34a   :  { %v1275_v10 = vpop.xlane.xlu0 %1274 }
 0x34b   :  { %9488 = vrcp.f32 %v1275_v10  ;;  %v7144_v10 = vld [vmem:[%s13097_s3] sm:$0xff]  }
 0x34d   :  { %v9485_v2 = vpop.eup %9484 }
 0x34e   :  { %v1321_v17 = vmul.f32 %v9485_v2, %v10482_v42  ;;  %v1278_v21 = vpop.xlane.xlu1 %1277 }
 0x34f   :  { %9490 = vrcp.f32 %v1278_v21 }
 0x350   :  { %v1339_v16 = vmul.f32 %v10592_v12, %v1321_v17  ;;  %v10670_v17 = vunpack.c.l.bf16 %v7144_v10 }
 0x351   :  { %v9487_v22 = vpop.eup %9486 }
 0x352   :  { %8074 = vmatmul.mubr.msk.f32.vlgmr.msra.gmra.mrb[36].mxu0 %vm1131_vm4, %v1339_v16  ;;  %v1281_v23 = vpop.xlane.xlu0 %1280  ;;  %v1322_v24 = vmul.f32 %v9487_v22, %v10487_v44  ;;  %v6692_v22 = vld [vmem:[%s13092_s4 + $0x38] sm:$0xff] }
 0x353   :  { %9492 = vrcp.f32 %v1281_v23  ;;  %8076 = vmatprep.mubr.msk.f32.mxu0 %vm9899_vm1, %v13103_v4  ;;  %9162 = vmatpush3.bf16.msra.mxu0 %v10538_v43  ;;  %v10631_v43 = vunpack.c.h.bf16 %v7184_v32 }
 0x354   :  { %v1340_v42 = vmul.f32 %v10605_v9, %v1322_v24  ;;  %9164 = vmatprep.subr.bf16.mxu0 %v9163_v20 }
 0x355   :  { %v9489_v27 = vpop.eup %9488  ;;  %13117 = vst [vmem:[#allocation2_spill] sm:$0xff] %v10631_v43 }
 0x356   :  { %8077 = vmatmul.mubr.msk.f32.gmra.mrb[38].mxu0 %vm1131_vm4, %v1340_v42  ;;  %v1284_v37 = vpop.xlane.xlu1 %1283  ;;  %v1323_v44 = vmul.f32 %v9489_v27, %v10492_v49  ;;  %v10684_v42 = vunpack.c.h.bf16 %v7144_v10 }
 0x357   :  { %9494 = vrcp.f32 %v1284_v37  ;;  %8079 = vmatprep.mubr.msk.f32.mxu0 %vm9899_vm1, %v13103_v4  ;;  %9166 = vmatpush3.bf16.msra.mxu0 %v9163_v20 }
 0x358   :  { %v1341_v38 = vmul.f32 %v10613_v25, %v1323_v44  ;;  %9175 = vmatprep.subr.bf16.mxu0 %v13101_v48 }
 0x359   :  { %v9491_v26 = vpop.eup %9490 }
 0x35a   :  { %v1287_v13 = vpop.xlane.xlu0 %1286  ;;  %8080 = vmatmul.mubr.msk.f32.gmra.mrb[40].mxu0 %vm1131_vm4, %v1341_v38  ;;  %v1324_v34 = vmul.f32 %v9491_v26, %v10497_v54  ;;  %v9736_v26 = vld [vmem:[%s13094_s1] sm:$0xff] }
 0x35b   :  { %9496 = vrcp.f32 %v1287_v13  ;;  %8082 = vmatprep.mubr.msk.f32.mxu0 %vm9899_vm1, %v13103_v4 }
 0x35c   :  { %v1342_v49 = vmul.f32 %v10623_v39, %v1324_v34 }
 0x35d   :  { %v9493_v19 = vpop.eup %9492 }
 0x35e   :  { %8083 = vmatmul.mubr.msk.f32.gmra.mrb[42].mxu0 %vm1131_vm4, %v1342_v49  ;;  %v1290_v45 = vpop.xlane.xlu1 %1289  ;;  %v1325_v47 = vmul.f32 %v9493_v19, %v10502_v59 }
 0x35f   :  { %9498 = vrcp.f32 %v1290_v45  ;;  %8085 = vmatprep.mubr.msk.f32.mxu0 %vm9899_vm1, %v13103_v4  ;;  %v9738_v45 = vld [vmem:[%s13094_s1 + $0x10] sm:$0xff] }
 0x360   :  { %v1343_v54 = vmul.f32 %v10631_v43, %v1325_v47 }
 0x361   :  { %v9495_v51 = vpop.eup %9494 }
 0x362   :  { %v1293_v15 = vpop.xlane.xlu0 %1292  ;;  %8086 = vmatmul.mubr.msk.f32.gmra.mrb[44].mxu0 %vm1131_vm4, %v1343_v54  ;;  %v1326_v52 = vmul.f32 %v9495_v51, %v10508_v5 }
 0x363   :  { %9500 = vrcp.f32 %v1293_v15  ;;  %v1242_v55 = vpop.xlane.xlu1 %1241  ;;  %8088 = vmatprep.mubr.msk.f32.mxu0 %vm9899_vm1, %v13103_v4  ;;  %v9739_v15 = vld [vmem:[%s13094_s1 + $0x18] sm:$0xff] }
 0x364   :  { %9502 = vrcp.f32 %v1242_v55  ;;  %v1344_v59 = vmul.f32 %v10641_v46, %v1326_v52  ;;  %v7180_v52 = vld [vmem:[%s13097_s3 + $0x10] sm:$0xff]   ;;  %v9740_v55 = vld [vmem:[%s13094_s1 + $0x20] sm:$0xff] }
 0x365   :  { %v9497_v61 = vpop.eup %9496 }
 0x366   :  { %v1245_v1 = vpop.xlane.xlu0 %1244  ;;  %8089 = vmatmul.mubr.msk.f32.gmra.mrb[46].mxu0 %vm1131_vm4, %v1344_v59  ;;  %v1327_v5 = vmul.f32 %v9497_v61, %v10514_v6  ;;  %v10734_v61 = vunpack.c.l.bf16 %v7180_v52 }
 0x367   :  { %9504 = vrcp.f32 %v1245_v1  ;;  %v1248_v3 = vpop.xlane.xlu1 %1247  ;;  %8091 = vmatprep.mubr.msk.f32.mxu0 %vm9899_vm1, %v13103_v4 }
 0x368   :  { %9506 = vrcp.f32 %v1248_v3  ;;  %v1345_v7 = vmul.f32 %v10648_v56, %v1327_v5  ;;  %v9741_v5 = vld [vmem:[%s13094_s1 + $0x28] sm:$0xff]  ;;  %v9742_v3 = vld [vmem:[%s13094_s1 + $0x30] sm:$0xff] }
 0x369   :  { %v9499_v30 = vpop.eup %9498 }
 0x36a   :  { %v1251_v2 = vpop.xlane.xlu0 %1250  ;;  %8092 = vmatmul.mubr.msk.f32.gmra.mrb[48].mxu0 %vm1131_vm4, %v1345_v7  ;;  %v1328_v6 = vmul.f32 %v9499_v30, %v10520_v8  ;;  %v6691_v8 = vld [vmem:[%s13092_s4 + $0x30] sm:$0xff]  ;;  %v10749_v7 = vunpack.c.h.bf16 %v7180_v52  ;;  %v9765_v52 = vld [vmem:[%s13093_s0 + $0x58] sm:$0xff] }
 0x36b   :  { %8094 = vmatprep.mubr.msk.f32.mxu0 %vm9899_vm1, %v13103_v4  ;;  %9508 = vrcp.f32 %v1251_v2  ;;  %v1254_v21 = vpop.xlane.xlu1 %1253  ;;  %v9155_v37 = vpack.c.bf16 %v6692_v22, %v6691_v8  ;;  %v9743_v2 = vld [vmem:[%s13094_s1 + $0x38] sm:$0xff]  ;;  %v9746_v8 = vld [vmem:[%s13094_s1 + $0x50] sm:$0xff] }
 0x36c   :  { %v1346_v35 = vmul.f32 %v10658_v0, %v1328_v6  ;;  %9510 = vrcp.f32 %v1254_v21  ;;  %v7181_v6 = vld [vmem:[%s13097_s3 + $0x18] sm:$0xff]  }
 0x36d   :  { %v9501_v28 = vpop.eup %9500  ;;  %v10782_v22 = vunpack.c.h.bf16 %v7181_v6 }
 0x36e   :  { %v9503_v16 = vpop.eup %9502  ;;  %8095 = vmatmul.mubr.msk.f32.gmra.mrb[50].mxu0 %vm1131_vm4, %v1346_v35  ;;  %v1329_v20 = vmul.f32 %v9501_v28, %v10526_v31  ;;  %v1257_v32 = vpop.xlane.xlu0 %1256  ;;  %v9744_v35 = vld [vmem:[%s13094_s1 + $0x40] sm:$0xff]  ;;  %v10767_v28 = vunpack.c.l.bf16 %v7181_v6  ;;  %v6740_v6 = vld [vmem:[%s13092_s4 + $0x138] sm:$0xff] }
 0x36f   :  { %v1312_v23 = vmul.f32 %v9503_v16, %v10534_v40  ;;  %8097 = vmatprep.mubr.msk.f32.mxu0 %vm9899_vm1, %v13103_v4  ;;  %v7179_v40 = vld [vmem:[%s13097_s3 + $0x8] sm:$0xff]   ;;  %9512 = vrcp.f32 %v1257_v32  ;;  %v10798_v32 = vunpack.c.l.bf16 %v10589_v11 }
 0x370   :  { %v1347_v24 = vmul.f32 %v10668_v18, %v1329_v20  ;;  %v10701_v34 = vunpack.c.l.bf16 %v7179_v40  ;;  %v10716_v47 = vunpack.c.h.bf16 %v7179_v40  ;;  %v9745_v20 = vld [vmem:[%s13094_s1 + $0x48] sm:$0xff]  ;;  %v9752_v40 = vld [vmem:[%s13094_s1 + $0x80] sm:$0xff] }
 0x371   :  { %v9505_v27 = vpop.eup %9504  ;;  %v1330_v31 = vmul.f32 %v10670_v17, %v1312_v23 }
 0x372   :  { %v9507_v44 = vpop.eup %9506  ;;  %8098 = vmatmul.mubr.msk.f32.gmra.mrb[52].mxu0 %vm1131_vm4, %v1347_v24  ;;  %v1313_v38 = vmul.f32 %v9505_v27, %v10545_v41  ;;  %v1260_v41 = vpop.xlane.xlu1 %1259  ;;  %v9747_v27 = vld [vmem:[%s13094_s1 + $0x58] sm:$0xff] }
 0x373   :  { %8029 = vmatmul.mubr.msk.f32.vlgmr.msra.gmra.mrb[54].mxu1 %vm1131_vm4, %v1330_v31  ;;  %8143 = vmatprep.mubr.msk.f32.mxu0 %vm130_vm0, %v9736_v26  ;;  %v1314_v49 = vmul.f32 %v9507_v44, %v10547_v50  ;;  %9514 = vrcp.f32 %v1260_v41  ;;  %v1263_v50 = vpop.xlane.xlu0 %1262  ;;  %v9748_v31 = vld [vmem:[%s13094_s1 + $0x60] sm:$0xff]  ;;  %v9749_v44 = vld [vmem:[%s13094_s1 + $0x68] sm:$0xff] }
 0x374   :  { %8031 = vmatprep.mubr.msk.f32.mxu1 %vm9899_vm1, %v13103_v4  ;;  %v1331_v13 = vmul.f32 %v10684_v42, %v1313_v38  ;;  %9154 = vmatpush3.bf16.msra.mxu1 %v10583_v29  ;;  %9516 = vrcp.f32 %v1263_v50  ;;  %v9750_v38 = vld [vmem:[%s13094_s1 + $0x70] sm:$0xff]  ;;  %v9753_v26 = vld [vmem:[%s13093_s0] sm:$0xff]  ;;  %v9755_v41 = vld [vmem:[%s13093_s0 + $0x8] sm:$0xff] }
 0x375   :  { %9156 = vmatprep.subr.bf16.mxu1 %v9155_v37  ;;  %v9509_v19 = vpop.eup %9508  ;;  %v1332_v29 = vmul.f32 %v10701_v34, %v1314_v49  ;;  %v9756_v49 = vld [vmem:[%s13093_s0 + $0x10] sm:$0xff] }
 0x376   :  { %8144 = vmatmul.mubr.msk.f32.vlgmr.msra.gmra.mrb[54].mxu0 %vm130_vm0, %v9737_v36  ;;  %v1315_v54 = vmul.f32 %v9509_v19, %v10553_v14  ;;  %v9511_v51 = vpop.eup %9510  ;;  %v1266_v14 = vpop.xlane.xlu1 %1265  ;;  %v9757_v19 = vld [vmem:[%s13093_s0 + $0x18] sm:$0xff]  ;;  %v9758_v36 = vld [vmem:[%s13093_s0 + $0x20] sm:$0xff]  ;;  %v9760_v50 = vld [vmem:[%s13093_s0 + $0x30] sm:$0xff] }
 0x377   :  { %8032 = vmatmul.mubr.msk.f32.gmra.mrb[56].mxu1 %vm1131_vm4, %v1331_v13  ;;  %8146 = vmatprep.mubr.msk.f32.mxu0 %vm130_vm0, %v9738_v45  ;;  %v1316_v60 = vmul.f32 %v9511_v51, %v10555_v53  ;;  %9518 = vrcp.f32 %v1266_v14  ;;  %v9754_v13 = vld [vmem:[%s13094_s1 + $0x88] sm:$0xff] }
 0x378   :  { %8034 = vmatprep.mubr.msk.f32.mxu1 %vm9899_vm1, %v13103_v4  ;;  %9158 = vmatpush3.bf16.msra.mxu1 %v9155_v37  ;;  %v1333_v59 = vmul.f32 %v10716_v47, %v1315_v54  ;;  %v9759_v45 = vld [vmem:[%s13093_s0 + $0x28] sm:$0xff]  ;;  %v9762_v54 = vld [vmem:[%s13093_s0 + $0x40] sm:$0xff] }
 0x379   :  { %v9513_v1 = vpop.eup %9512  ;;  %v1334_v53 = vmul.f32 %v10734_v61, %v1316_v60  ;;  %v9763_v51 = vld [vmem:[%s13093_s0 + $0x48] sm:$0xff]  ;;  %v9769_v60 = vld [vmem:[%s13093_s0 + $0x78] sm:$0xff] }
 0x37a   :  { %8147 = vmatmul.mubr.msk.f32.gmra.mrb[56].mxu0 %vm130_vm0, %v9739_v15  ;;  %v1317_v30 = vmul.f32 %v9513_v1, %v10561_v57  ;;  %v9764_v15 = vld [vmem:[%s13093_s0 + $0x50] sm:$0xff]  ;;  %v9767_v14 = vld [vmem:[%s13093_s0 + $0x68] sm:$0xff]  ;;  %v9770_v1 = vld [vmem:[%s13093_s0 + $0x80] sm:$0xff] }
 0x37b   :  { %8035 = vmatmul.mubr.msk.f32.gmra.mrb[58].mxu1 %vm1131_vm4, %v1332_v29  ;;  %8149 = vmatprep.mubr.msk.f32.mxu0 %vm130_vm0, %v9740_v55  ;;  %v9761_v29 = vld [vmem:[%s13093_s0 + $0x38] sm:$0xff]  ;;  %v9766_v55 = vld [vmem:[%s13093_s0 + $0x60] sm:$0xff] }
 0x37c   :  { %8037 = vmatprep.mubr.msk.f32.mxu1 %vm9899_vm1, %v13103_v4  ;;  %v1335_v57 = vmul.f32 %v10749_v7, %v1317_v30  ;;  %v6738_v30 = vld [vmem:[%s13092_s4 + $0x128] sm:$0xff] }
 0x37d   :  { %v9515_v10 = vpop.eup %9514 }
 0x37e   :  { %8150 = vmatmul.mubr.msk.f32.gmra.mrb[58].mxu0 %vm130_vm0, %v9741_v5  ;;  %v1318_v21 = vmul.f32 %v9515_v10, %v10563_v58  ;;  %v9517_v16 = vpop.eup %9516  ;;  %v9771_v5 = vld [vmem:[%s13093_s0 + $0x88] sm:$0xff] }
 0x37f   :  { %8038 = vmatmul.mubr.msk.f32.gmra.mrb[60].mxu1 %vm1131_vm4, %v1333_v59  ;;  %8152 = vmatprep.mubr.msk.f32.mxu0 %vm130_vm0, %v9742_v3  ;;  %v1319_v23 = vmul.f32 %v9517_v16, %v10569_v62  ;;  %v9768_v59 = vld [vmem:[%s13093_s0 + $0x70] sm:$0xff]  ;;  %v9772_v3 = vld [vmem:[%s13095_s2] sm:$0xff]  ;;  %v9775_v16 = vld [vmem:[%s13095_s2 + $0x18] sm:$0xff] }
 0x380   :  { %8040 = vmatprep.mubr.msk.f32.mxu1 %vm9899_vm1, %v13103_v4  ;;  %v1336_v58 = vmul.f32 %v10767_v28, %v1318_v21  ;;  %v9774_v21 = vld [vmem:[%s13095_s2 + $0x10] sm:$0xff] }
 0x381   :  { %v9519_v24 = vpop.eup %9518  ;;  %v1337_v62 = vmul.f32 %v10782_v22, %v1319_v23  ;;  %v9779_v23 = vld [vmem:[%s13095_s2 + $0x38] sm:$0xff] }
 0x382   :  { %8153 = vmatmul.mubr.msk.f32.gmra.mrb[60].mxu0 %vm130_vm0, %v9743_v2  ;;  %v1320_v37 = vmul.f32 %v9519_v24, %v10571_v63  ;;  %v9751_v63 = vld [vmem:[%s13094_s1 + $0x78] sm:$0xff]  ;;  %v6739_v2 = vld [vmem:[%s13092_s4 + $0x130] sm:$0xff]  ;;  %v9780_v24 = vld [vmem:[%s13095_s2 + $0x40] sm:$0xff] }
 0x383   :  { %8041 = vmatmul.mubr.msk.f32.gmra.mrb[62].mxu1 %vm1131_vm4, %v1334_v53  ;;  %8155 = vmatprep.mubr.msk.f32.mxu0 %vm130_vm0, %v9744_v35  ;;  %v6737_v53 = vld [vmem:[%s13092_s4 + $0x120] sm:$0xff]  ;;  %v9171_v35 = vpack.c.bf16 %v6740_v6, %v6739_v2 }
 0x384   :  { %8043 = vmatprep.mubr.msk.f32.mxu1 %vm9899_vm1, %v13103_v4  ;;  %v1338_v11 = vmul.f32 %v10798_v32, %v1320_v37  ;;  %v9167_v10 = vpack.c.bf16 %v6738_v30, %v6737_v53  ;;  %v9784_v37 = vld [vmem:[%s13095_s2 + $0x60] sm:$0xff] }
 0x385   :  { %v11010_v53 = vld [vmem:[%s13096_s5 + $0x5] ss:$0 sm:$0xff] }
 0x386   :  { %8156 = vmatmul.mubr.msk.f32.gmra.mrb[62].mxu0 %vm130_vm0, %v9745_v20  ;;  %9168 = vmatprep.subr.bf16.mxu1 %v9167_v10  ;;  %v9776_v20 = vld [vmem:[%s13095_s2 + $0x20] sm:$0xff] }
 0x387   :  { %8044 = vmatmul.mubr.msk.f32.gmra.mrb[64].mxu1 %vm1131_vm4, %v1335_v57  ;;  %8158 = vmatprep.mubr.msk.f32.mxu0 %vm130_vm0, %v9746_v8  ;;  %v9773_v57 = vld [vmem:[%s13095_s2 + $0x8] sm:$0xff] }
 0x388   :  { %8046 = vmatprep.mubr.msk.f32.mxu1 %vm9899_vm1, %v13103_v4  ;;  %v9777_v8 = vld [vmem:[%s13095_s2 + $0x28] sm:$0xff] }
 0x38a   :  { %8159 = vmatmul.mubr.msk.f32.gmra.mrb[64].mxu0 %vm130_vm0, %v9747_v27  ;;  %v9781_v27 = vld [vmem:[%s13095_s2 + $0x48] sm:$0xff] }
 0x38b   :  { %8047 = vmatmul.mubr.msk.f32.gmra.mrb[66].mxu1 %vm1131_vm4, %v1336_v58  ;;  %8161 = vmatprep.mubr.msk.f32.mxu0 %vm130_vm0, %v9748_v31  ;;  %v9778_v58 = vld [vmem:[%s13095_s2 + $0x30] sm:$0xff] }
 0x38c   :  { %8049 = vmatprep.mubr.msk.f32.mxu1 %vm9899_vm1, %v13103_v4  ;;  %v9782_v31 = vld [vmem:[%s13095_s2 + $0x50] sm:$0xff] }
 0x38e   :  { %8162 = vmatmul.mubr.msk.f32.gmra.mrb[66].mxu0 %vm130_vm0, %v9749_v44  ;;  %v9785_v44 = vld [vmem:[%s13095_s2 + $0x68] sm:$0xff] }
 0x38f   :  { %8050 = vmatmul.mubr.msk.f32.gmra.mrb[68].mxu1 %vm1131_vm4, %v1337_v62  ;;  %8164 = vmatprep.mubr.msk.f32.mxu0 %vm130_vm0, %v9750_v38  ;;  %v9783_v62 = vld [vmem:[%s13095_s2 + $0x58] sm:$0xff]  ;;  %v9786_v38 = vld [vmem:[%s13095_s2 + $0x70] sm:$0xff] }
 0x390   :  { %8052 = vmatprep.mubr.msk.f32.mxu1 %vm9899_vm1, %v13103_v4 }
 0x392   :  { %8165 = vmatmul.mubr.msk.f32.gmra.mrb[68].mxu0 %vm130_vm0, %v9751_v63  ;;  %v9788_v63 = vld [vmem:[%s13095_s2 + $0x80] sm:$0xff] }
 0x393   :  { %8053 = vmatmul.mubr.msk.f32.gmra.mrb[70].mxu1 %vm1131_vm4, %v1338_v11  ;;  %8167 = vmatprep.mubr.msk.f32.mxu0 %vm130_vm0, %v9752_v40  ;;  %v9787_v11 = vld [vmem:[%s13095_s2 + $0x78] sm:$0xff]  ;;  %v9789_v40 = vld [vmem:[%s13095_s2 + $0x88] sm:$0xff] }
 0x394   :  { %8108 = vmatprep.mubr.msk.f32.mxu1 %vm130_vm0, %v9753_v26 }
 0x396   :  { %8168 = vmatmul.mubr.msk.f32.gmra.mrb[70].mxu0 %vm130_vm0, %v9754_v13 }
 0x397   :  { %8109 = vmatmul.mubr.msk.f32.vlgmr.msra.gmra.mrb[72].mxu1 %vm130_vm0, %v9755_v41  ;;  %8223 = vmatprep.mubr.msk.f32.mxu0 %vm9899_vm1, %v13103_v4 }
 0x398   :  { %8111 = vmatprep.mubr.msk.f32.mxu1 %vm130_vm0, %v9756_v49  ;;  %9170 = vmatpush3.bf16.msra.mxu1 %v9167_v10 }
 0x399   :  { %9172 = vmatprep.subr.bf16.mxu1 %v9171_v35 }
 0x39b   :  { %8112 = vmatmul.mubr.msk.f32.gmra.mrb[74].mxu1 %vm130_vm0, %v9757_v19 }
 0x39c   :  { %8114 = vmatprep.mubr.msk.f32.mxu1 %vm130_vm0, %v9758_v36  ;;  %9174 = vmatpush3.bf16.msra.mxu1 %v9171_v35 }
 0x39d   :  { %9191 = vmatprep.subr.bf16.mxu1 %v13101_v48 }
 0x39f   :  { %8115 = vmatmul.mubr.msk.f32.gmra.mrb[76].mxu1 %vm130_vm0, %v9759_v45 }
 0x3a0   :  { %8117 = vmatprep.mubr.msk.f32.mxu1 %vm130_vm0, %v9760_v50 }
 0x3a3   :  { %8118 = vmatmul.mubr.msk.f32.gmra.mrb[78].mxu1 %vm130_vm0, %v9761_v29 }
 0x3a4   :  { %8120 = vmatprep.mubr.msk.f32.mxu1 %vm130_vm0, %v9762_v54 }
 0x3a7   :  { %8121 = vmatmul.mubr.msk.f32.gmra.mrb[80].mxu1 %vm130_vm0, %v9763_v51 }
 0x3a8   :  { %8123 = vmatprep.mubr.msk.f32.mxu1 %vm130_vm0, %v9764_v15 }
 0x3ab   :  { %8124 = vmatmul.mubr.msk.f32.gmra.mrb[82].mxu1 %vm130_vm0, %v9765_v52 }
 0x3ac   :  { %8126 = vmatprep.mubr.msk.f32.mxu1 %vm130_vm0, %v9766_v55 }
 0x3af   :  { %8127 = vmatmul.mubr.msk.f32.gmra.mrb[84].mxu1 %vm130_vm0, %v9767_v14 }
 0x3b0   :  { %8129 = vmatprep.mubr.msk.f32.mxu1 %vm130_vm0, %v9768_v59 }
 0x3b3   :  { %8130 = vmatmul.mubr.msk.f32.gmra.mrb[86].mxu1 %vm130_vm0, %v9769_v60 }
 0x3b4   :  { %8132 = vmatprep.mubr.msk.f32.mxu1 %vm130_vm0, %v9770_v1 }
 0x3b7   :  { %8133 = vmatmul.mubr.msk.f32.gmra.mrb[88].mxu1 %vm130_vm0, %v9771_v5 }
 0x3b8   :  { %8178 = vmatprep.mubr.msk.f32.mxu1 %vm130_vm0, %v9772_v3 }
 0x3bb   :  { %8179 = vmatmul.mubr.msk.f32.vlgmr.msra.gmra.mrb[90].mxu1 %vm130_vm0, %v9773_v57 }
 0x3bc   :  { %8181 = vmatprep.mubr.msk.f32.mxu1 %vm130_vm0, %v9774_v21 }
 0x3bf   :  { %8182 = vmatmul.mubr.msk.f32.gmra.mrb[92].mxu1 %vm130_vm0, %v9775_v16 }
 0x3c0   :  { %8184 = vmatprep.mubr.msk.f32.mxu1 %vm130_vm0, %v9776_v20 }
 0x3c3   :  { %8185 = vmatmul.mubr.msk.f32.gmra.mrb[94].mxu1 %vm130_vm0, %v9777_v8 }
 0x3c4   :  { %8187 = vmatprep.mubr.msk.f32.mxu1 %vm130_vm0, %v9778_v58 }
 0x3c7   :  { %8188 = vmatmul.mubr.msk.f32.gmra.mrb[96].mxu1 %vm130_vm0, %v9779_v23 }
 0x3c8   :  { %8190 = vmatprep.mubr.msk.f32.mxu1 %vm130_vm0, %v9780_v24 }
 0x3cb   :  { %8191 = vmatmul.mubr.msk.f32.gmra.mrb[98].mxu1 %vm130_vm0, %v9781_v27 }
 0x3cc   :  { %8193 = vmatprep.mubr.msk.f32.mxu1 %vm130_vm0, %v9782_v31 }
 0x3cf   :  { %8194 = vmatmul.mubr.msk.f32.gmra.mrb[100].mxu1 %vm130_vm0, %v9783_v62 }
 0x3d0   :  { %8196 = vmatprep.mubr.msk.f32.mxu1 %vm130_vm0, %v9784_v37 }
 0x3d3   :  { %8197 = vmatmul.mubr.msk.f32.gmra.mrb[102].mxu1 %vm130_vm0, %v9785_v44 }
 0x3d4   :  { %8199 = vmatprep.mubr.msk.f32.mxu1 %vm130_vm0, %v9786_v38 }
 0x3d7   :  { %8200 = vmatmul.mubr.msk.f32.gmra.mrb[104].mxu1 %vm130_vm0, %v9787_v11 }
 0x3d8   :  { %8202 = vmatprep.mubr.msk.f32.mxu1 %vm130_vm0, %v9788_v63 }
 0x3db   :  { %8203 = vmatmul.mubr.msk.f32.gmra.mrb[106].mxu1 %vm130_vm0, %v9789_v40 }
 0x3dc   :  { %8268 = vmatprep.mubr.msk.f32.mxu1 %vm9899_vm1, %v13103_v4 }
 0x425   :  { %v10987_v26 = vpop.f32.mrb[36].mxu0 }
 0x426   :  { %v8075_v13 = vpop.f32.mrb[37].mxu0 }
 0x429   :  { %v10989_v41 = vpop.f32.mrb[38].mxu0 }
 0x42a   :  { %v8078_v49 = vpop.f32.mrb[39].mxu0 }
 0x42d   :  { %v10991_v19 = vpop.f32.mrb[40].mxu0 }
 0x42e   :  { %v8081_v36 = vpop.f32.mrb[41].mxu0 }
 0x431   :  { %v10993_v45 = vpop.f32.mrb[42].mxu0 }
 0x432   :  { %v8084_v50 = vpop.f32.mrb[43].mxu0 }
 0x435   :  { %v10995_v29 = vpop.f32.mrb[44].mxu0 }
 0x436   :  { %13122 = vst [vmem:[#allocation7_spill] sm:$0xff] %v10995_v29  ;;  %v8087_v54 = vpop.f32.mrb[45].mxu0 }
 0x439   :  { %v10997_v51 = vpop.f32.mrb[46].mxu0 }
 0x43a   :  { %13123 = vst [vmem:[#allocation8_spill] sm:$0xff] %v10997_v51  ;;  %v8090_v15 = vpop.f32.mrb[47].mxu0 }
 0x43d   :  { %v10999_v52 = vpop.f32.mrb[48].mxu0 }
 0x43e   :  { %13124 = vst [vmem:[#allocation9_spill] sm:$0xff] %v10999_v52  ;;  %v8093_v55 = vpop.f32.mrb[49].mxu0 }
 0x441   :  { %v11001_v14 = vpop.f32.mrb[50].mxu0 }
 0x442   :  { %13125 = vst [vmem:[#allocation10_spill] sm:$0xff] %v11001_v14  ;;  %v8096_v59 = vpop.f32.mrb[51].mxu0 }
 0x445   :  { %v11003_v60 = vpop.f32.mrb[52].mxu0 }
 0x446   :  { %13126 = vst [vmem:[#allocation11_spill] sm:$0xff] %v11003_v60  ;;  %v11005_v1 = vpop.f32.mrb[54].mxu1  ;;  %v8099_v5 = vpop.f32.mrb[53].mxu0 }
 0x447   :  { %v8030_v3 = vpop.f32.mrb[55].mxu1 }
 0x449   :  { %v8145_v30 = vpop.f32.mrb[54].mxu0 }
 0x44a   :  { %v11012_v10 = vpop.f32.mrb[56].mxu1  ;;  %v1876_v2 = vadd.f32 %v8145_v30, %v11010_v53  ;;  %v1870_v6 = vpop.f32.mrb[55].mxu0 }
 0x44b   :  { %v8033_v35 = vpop.f32.mrb[57].mxu1  ;;  %v1871_v57 = vadd.f32 %v11010_v53, %v1870_v6 }
 0x44d   :  { %v9176_v21 = vpack.c.bf16 %v1876_v2, %v1871_v57  ;;  %v8148_v16 = vpop.f32.mrb[56].mxu0 }
 0x44e   :  { %v11016_v20 = vpop.f32.mrb[58].mxu1  ;;  %v1886_v8 = vadd.f32 %v8148_v16, %v11010_v53  ;;  %v1880_v58 = vpop.f32.mrb[57].mxu0 }
 0x44f   :  { %v8036_v23 = vpop.f32.mrb[59].mxu1  ;;  %v1881_v24 = vadd.f32 %v11010_v53, %v1880_v58  ;;  %9178 = vmatpush3.bf16.xpose.msk.msra.mxu0 %vm10249_vm3, %v9176_v21 }
 0x450   :  { %9179 = vmatprep.subr.bf16.mxu0 %v13101_v48 }
 0x451   :  { %v9180_v27 = vpack.c.bf16 %v1886_v8, %v1881_v24  ;;  %v8151_v31 = vpop.f32.mrb[58].mxu0 }
 0x452   :  { %v11023_v62 = vpop.f32.mrb[60].mxu1  ;;  %v1896_v37 = vadd.f32 %v8151_v31, %v11010_v53  ;;  %v1890_v44 = vpop.f32.mrb[59].mxu0 }
 0x453   :  { %v8039_v38 = vpop.f32.mrb[61].mxu1  ;;  %v1891_v11 = vadd.f32 %v11010_v53, %v1890_v44 }
 0x455   :  { %v9184_v63 = vpack.c.bf16 %v1896_v37, %v1891_v11  ;;  %v8154_v40 = vpop.f32.mrb[60].mxu0 }
 0x456   :  { %v11027_v13 = vpop.f32.mrb[62].mxu1  ;;  %v1906_v49 = vadd.f32 %v8154_v40, %v11010_v53  ;;  %v1900_v36 = vpop.f32.mrb[61].mxu0 }
 0x457   :  { %v8042_v50 = vpop.f32.mrb[63].mxu1  ;;  %v1901_v54 = vadd.f32 %v11010_v53, %v1900_v36  ;;  %9182 = vmatpush3.bf16.xpose.msk.msra.mxu0 %vm10249_vm3, %v9180_v27 }
 0x458   :  { %9183 = vmatprep.subr.bf16.mxu0 %v13101_v48 }
 0x459   :  { %v9188_v15 = vpack.c.bf16 %v1906_v49, %v1901_v54  ;;  %v8157_v55 = vpop.f32.mrb[62].mxu0 }
 0x45a   :  { %v11034_v59 = vpop.f32.mrb[64].mxu1  ;;  %v1910_v5 = vpop.f32.mrb[63].mxu0  ;;  %v1916_v35 = vadd.f32 %v8157_v55, %v11010_v53 }
 0x45b   :  { %v8045_v3 = vpop.f32.mrb[65].mxu1 }
 0x45d   :  { %v8160_v30 = vpop.f32.mrb[64].mxu0 }
 0x45e   :  { %v11036_v2 = vpop.f32.mrb[66].mxu1  ;;  %v1920_v6 = vpop.f32.mrb[65].mxu0  ;;  %v1926_v24 = vadd.f32 %v8160_v30, %v11010_v53 }
 0x45f   :  { %v8048_v57 = vpop.f32.mrb[67].mxu1  ;;  %v1921_v21 = vadd.f32 %v11010_v53, %v1920_v6  ;;  %9186 = vmatpush3.bf16.xpose.msk.msra.mxu0 %vm10249_vm3, %v9184_v63  ;;  %v11064_v6 = vld [vmem:[%s13096_s5 + $0x1] ss:$0 sm:$0xff] }
 0x460   :  { %9187 = vmatprep.subr.bf16.mxu0 %v13101_v48 }
 0x461   :  { %v9192_v16 = vpack.c.bf16 %v1921_v21, %v1916_v35  ;;  %v8163_v8 = vpop.f32.mrb[66].mxu0 }
 0x462   :  { %v11043_v58 = vpop.f32.mrb[68].mxu1  ;;  %v1930_v23 = vpop.f32.mrb[67].mxu0  ;;  %v1936_v37 = vadd.f32 %v8163_v8, %v11010_v53 }
 0x463   :  { %v8051_v27 = vpop.f32.mrb[69].mxu1  ;;  %v1931_v31 = vadd.f32 %v11010_v53, %v1930_v23  ;;  %9194 = vmatpush3.bf16.xpose.msk.msra.mxu1 %vm10249_vm3, %v9192_v16 }
 0x464   :  { %9195 = vmatprep.subr.bf16.mxu1 %v13101_v48 }
 0x465   :  { %v9196_v44 = vpack.c.bf16 %v1931_v31, %v1926_v24  ;;  %v8166_v38 = vpop.f32.mrb[68].mxu0 }
 0x466   :  { %v11051_v11 = vpop.f32.mrb[70].mxu1  ;;  %v1940_v63 = vpop.f32.mrb[69].mxu0  ;;  %v1946_v36 = vadd.f32 %v8166_v38, %v11010_v53 }
 0x467   :  { %v8054_v40 = vpop.f32.mrb[71].mxu1  ;;  %v1941_v49 = vadd.f32 %v11010_v53, %v1940_v63  ;;  %9190 = vmatpush3.bf16.xpose.msk.msra.mxu0 %vm10249_vm3, %v9188_v15  ;;  %v1911_v15 = vadd.f32 %v11010_v53, %v1910_v5 }
 0x468   :  { %8221 = vmatprep.subr.mxu0 %v13103_v4 }
 0x469   :  { %v9200_v50 = vpack.c.bf16 %v1941_v49, %v1936_v37  ;;  %v8169_v54 = vpop.f32.mrb[70].mxu0 }
 0x46a   :  { %v1950_v55 = vpop.f32.mrb[71].mxu0  ;;  %v8110_v3 = vpop.f32.mrb[72].mxu1 }
 0x46b   :  { %9198 = vmatpush3.bf16.xpose.msk.msra.mxu1 %vm10249_vm3, %v9196_v44  ;;  %v1951_v30 = vadd.f32 %v11010_v53, %v1950_v55  ;;  %v1702_v35 = vpop.f32.mrb[73].mxu1  ;;  %v1708_v23 = vadd.f32 %v8110_v3, %v11064_v6 }
 0x46c   :  { %9199 = vmatprep.subr.bf16.mxu1 %v13101_v48  ;;  %v1703_v21 = vadd.f32 %v11064_v6, %v1702_v35 }
 0x46d   :  { %v9204_v57 = vpack.c.bf16 %v1951_v30, %v1946_v36 }
 0x46e   :  { %v8113_v16 = vpop.f32.mrb[74].mxu1 }
 0x46f   :  { %8222 = vmatpush3.xpose.msk.msra.mxu0 %vm784_vm2, %v1911_v15  ;;  %v1712_v8 = vpop.f32.mrb[75].mxu1  ;;  %v1718_v63 = vadd.f32 %v8113_v16, %v11064_v6 }
 0x470   :  { %9207 = vmatprep.subr.bf16.mxu0 %v13101_v48  ;;  %v1713_v27 = vadd.f32 %v11064_v6, %v1712_v8 }
 0x472   :  { %8224 = vmatmul.mubr.msk.f32.vlgmr.msra.gmra.mrb[72].mxu0 %vm784_vm2, %v1703_v21  ;;  %v8116_v24 = vpop.f32.mrb[76].mxu1 }
 0x473   :  { %9202 = vmatpush3.bf16.xpose.msk.msra.mxu1 %vm10249_vm3, %v9200_v50  ;;  %8226 = vmatprep.mubr.msk.f32.mxu0 %vm9899_vm1, %v13103_v4  ;;  %v1722_v5 = vpop.f32.mrb[77].mxu1  ;;  %v1956_v50 = vadd.f32 %v8169_v54, %v11010_v53  ;;  %v1728_v35 = vadd.f32 %v8116_v24, %v11064_v6 }
 0x474   :  { %9203 = vmatprep.subr.bf16.mxu1 %v13101_v48  ;;  %v1723_v36 = vadd.f32 %v11064_v6, %v1722_v5 }
 0x476   :  { %8227 = vmatmul.mubr.msk.f32.gmra.mrb[74].mxu0 %vm784_vm2, %v1708_v23  ;;  %v8119_v31 = vpop.f32.mrb[78].mxu1 }
 0x477   :  { %8229 = vmatprep.mubr.msk.f32.mxu0 %vm9899_vm1, %v13103_v4  ;;  %v1732_v37 = vpop.f32.mrb[79].mxu1  ;;  %v1738_v8 = vadd.f32 %v8119_v31, %v11064_v6 }
 0x47a   :  { %8230 = vmatmul.mubr.msk.f32.gmra.mrb[76].mxu0 %vm784_vm2, %v1713_v27  ;;  %v8122_v44 = vpop.f32.mrb[80].mxu1 }
 0x47b   :  { %9206 = vmatpush3.bf16.xpose.msk.msra.mxu1 %vm10249_vm3, %v9204_v57  ;;  %8232 = vmatprep.mubr.msk.f32.mxu0 %vm9899_vm1, %v13103_v4  ;;  %v1742_v38 = vpop.f32.mrb[81].mxu1  ;;  %v1748_v55 = vadd.f32 %v8122_v44, %v11064_v6  ;;  %v1733_v57 = vadd.f32 %v11064_v6, %v1732_v37 }
 0x47c   :  { %8266 = vmatprep.subr.mxu1 %v13103_v4  ;;  %v1743_v5 = vadd.f32 %v11064_v6, %v1742_v38 }
 0x47e   :  { %8233 = vmatmul.mubr.msk.f32.gmra.mrb[78].mxu0 %vm784_vm2, %v1718_v63  ;;  %v8125_v40 = vpop.f32.mrb[82].mxu1  ;;  %v6742_v63 = vld [vmem:[%s13096_s5 + $0x9] ss:$0 sm:$0xff] }
 0x47f   :  { %8235 = vmatprep.mubr.msk.f32.mxu0 %vm9899_vm1, %v13103_v4  ;;  %v1752_v49 = vpop.f32.mrb[83].mxu1  ;;  %v1758_v23 = vadd.f32 %v8125_v40, %v11064_v6 }
 0x480   :  { %v1753_v15 = vadd.f32 %v11064_v6, %v1752_v49 }
 0x482   :  { %8236 = vmatmul.mubr.msk.f32.gmra.mrb[80].mxu0 %vm784_vm2, %v1723_v36  ;;  %v8128_v3 = vpop.f32.mrb[84].mxu1 }
 0x483   :  { %8267 = vmatpush3.xpose.msk.msra.mxu1 %vm784_vm2, %v1956_v50  ;;  %8238 = vmatprep.mubr.msk.f32.mxu0 %vm9899_vm1, %v13103_v4  ;;  %v1762_v30 = vpop.f32.mrb[85].mxu1  ;;  %v1768_v27 = vadd.f32 %v8128_v3, %v11064_v6 }
 0x484   :  { %9219 = vmatprep.subr.bf16.mxu1 %v13101_v48  ;;  %v1763_v24 = vadd.f32 %v11064_v6, %v1762_v30 }
 0x486   :  { %8239 = vmatmul.mubr.msk.f32.gmra.mrb[82].mxu0 %vm784_vm2, %v1728_v35  ;;  %8269 = vmatmul.mubr.msk.f32.vlgmr.msra.gmra.mrb[108].mxu1 %vm784_vm2, %v1748_v55  ;;  %v8131_v53 = vpop.f32.mrb[86].mxu1 }
 0x487   :  { %8241 = vmatprep.mubr.msk.f32.mxu0 %vm9899_vm1, %v13103_v4  ;;  %8271 = vmatprep.mubr.msk.f32.mxu1 %vm9899_vm1, %v13103_v4  ;;  %v1772_v54 = vpop.f32.mrb[87].mxu1  ;;  %v1778_v37 = vadd.f32 %v8131_v53, %v11064_v6 }
 0x488   :  { %v1773_v31 = vadd.f32 %v11064_v6, %v1772_v54 }
 0x48a   :  { %8242 = vmatmul.mubr.msk.f32.gmra.mrb[84].mxu0 %vm784_vm2, %v1733_v57  ;;  %8272 = vmatmul.mubr.msk.f32.gmra.mrb[110].mxu1 %vm784_vm2, %v1753_v15  ;;  %v8134_v21 = vpop.f32.mrb[88].mxu1 }
 0x48b   :  { %8244 = vmatprep.mubr.msk.f32.mxu0 %vm9899_vm1, %v13103_v4  ;;  %8274 = vmatprep.mubr.msk.f32.mxu1 %vm9899_vm1, %v13103_v4  ;;  %v1782_v16 = vpop.f32.mrb[89].mxu1  ;;  %v1788_v38 = vadd.f32 %v8134_v21, %v11064_v6 }
 0x48c   :  { %v1783_v44 = vadd.f32 %v11064_v6, %v1782_v16 }
 0x48e   :  { %8245 = vmatmul.mubr.msk.f32.gmra.mrb[86].mxu0 %vm784_vm2, %v1738_v8  ;;  %8275 = vmatmul.mubr.msk.f32.gmra.mrb[112].mxu1 %vm784_vm2, %v1758_v23  ;;  %v8180_v40 = vpop.f32.mrb[90].mxu1 }
 0x48f   :  { %8247 = vmatprep.mubr.msk.f32.mxu0 %vm9899_vm1, %v13103_v4  ;;  %8277 = vmatprep.mubr.msk.f32.mxu1 %vm9899_vm1, %v13103_v4  ;;  %v2044_v49 = vadd.f32 %v8180_v40, %v6742_v63  ;;  %v2038_v36 = vpop.f32.mrb[91].mxu1 }
 0x490   :  { %v2039_v50 = vadd.f32 %v6742_v63, %v2038_v36 }
 0x492   :  { %8248 = vmatmul.mubr.msk.f32.gmra.mrb[88].mxu0 %vm784_vm2, %v1743_v5  ;;  %8278 = vmatmul.mubr.msk.f32.gmra.mrb[114].mxu1 %vm784_vm2, %v1763_v24  ;;  %v9208_v55 = vpack.c.bf16 %v2044_v49, %v2039_v50  ;;  %v8183_v3 = vpop.f32.mrb[92].mxu1 }
 0x493   :  { %8280 = vmatprep.mubr.msk.f32.mxu1 %vm9899_vm1, %v13103_v4  ;;  %8313 = vmatprep.mubr.msk.f32.mxu0 %vm9899_vm1, %v13103_v4  ;;  %v2054_v30 = vadd.f32 %v8183_v3, %v6742_v63  ;;  %v2048_v35 = vpop.f32.mrb[93].mxu1 }
 0x494   :  { %v2049_v15 = vadd.f32 %v6742_v63, %v2048_v35  ;;  %9209 = vmatpush3.bf16.msra.mxu0 %v9208_v55 }
 0x495   :  { %9210 = vmatprep.subr.bf16.mxu0 %v13101_v48 }
 0x496   :  { %8281 = vmatmul.mubr.msk.f32.gmra.mrb[116].mxu1 %vm784_vm2, %v1768_v27  ;;  %v9211_v6 = vpack.c.bf16 %v2054_v30, %v2049_v15  ;;  %v8186_v53 = vpop.f32.mrb[94].mxu1 }
 0x497   :  { %8283 = vmatprep.mubr.msk.f32.mxu1 %vm9899_vm1, %v13103_v4  ;;  %v2064_v54 = vadd.f32 %v8186_v53, %v6742_v63  ;;  %v2058_v57 = vpop.f32.mrb[95].mxu1 }
 0x498   :  { %v2059_v21 = vadd.f32 %v6742_v63, %v2058_v57  ;;  %9212 = vmatpush3.bf16.msra.mxu0 %v9211_v6 }
 0x499   :  { %9213 = vmatprep.subr.bf16.mxu0 %v13101_v48 }
 0x49a   :  { %8284 = vmatmul.mubr.msk.f32.gmra.mrb[118].mxu1 %vm784_vm2, %v1773_v31  ;;  %v9214_v16 = vpack.c.bf16 %v2064_v54, %v2059_v21  ;;  %v8189_v8 = vpop.f32.mrb[96].mxu1 }
 0x49b   :  { %8286 = vmatprep.mubr.msk.f32.mxu1 %vm9899_vm1, %v13103_v4  ;;  %v2074_v23 = vadd.f32 %v8189_v8, %v6742_v63  ;;  %v2068_v24 = vpop.f32.mrb[97].mxu1 }
 0x49c   :  { %v2069_v5 = vadd.f32 %v6742_v63, %v2068_v24  ;;  %9215 = vmatpush3.bf16.msra.mxu0 %v9214_v16 }
 0x49d   :  { %9216 = vmatprep.subr.bf16.mxu0 %v13101_v48 }
 0x49e   :  { %8287 = vmatmul.mubr.msk.f32.gmra.mrb[120].mxu1 %vm784_vm2, %v1778_v37  ;;  %v9217_v27 = vpack.c.bf16 %v2074_v23, %v2069_v5  ;;  %v8192_v31 = vpop.f32.mrb[98].mxu1 }
 0x49f   :  { %8289 = vmatprep.mubr.msk.f32.mxu1 %vm9899_vm1, %v13103_v4  ;;  %v2078_v37 = vpop.f32.mrb[99].mxu1 }
 0x4a0   :  { %9218 = vmatpush3.bf16.msra.mxu0 %v9217_v27 }
 0x4a1   :  { %8311 = vmatprep.subr.mxu0 %v13103_v4 }
 0x4a2   :  { %8290 = vmatmul.mubr.msk.f32.gmra.mrb[122].mxu1 %vm784_vm2, %v1783_v44  ;;  %v2079_v44 = vadd.f32 %v6742_v63, %v2078_v37  ;;  %v8195_v40 = vpop.f32.mrb[100].mxu1 }
 0x4a3   :  { %8292 = vmatprep.mubr.msk.f32.mxu1 %vm9899_vm1, %v13103_v4  ;;  %v2088_v49 = vpop.f32.mrb[101].mxu1  ;;  %v2094_v50 = vadd.f32 %v8195_v40, %v6742_v63 }
 0x4a4   :  { %v2089_v36 = vadd.f32 %v6742_v63, %v2088_v49  ;;  %8312 = vmatpush3.msra.mxu0 %v2079_v44 }
 0x4a6   :  { %8293 = vmatmul.mubr.msk.f32.gmra.mrb[124].mxu1 %vm784_vm2, %v1788_v38  ;;  %v2084_v38 = vadd.f32 %v8192_v31, %v6742_v63  ;;  %v8198_v3 = vpop.f32.mrb[102].mxu1 }
 0x4a7   :  { %8358 = vmatprep.mubr.msk.f32.mxu1 %vm9899_vm1, %v13103_v4  ;;  %v2098_v30 = vpop.f32.mrb[103].mxu1  ;;  %v2104_v15 = vadd.f32 %v8198_v3, %v6742_v63 }
 0x4a8   :  { %v9220_v55 = vpack.c.bf16 %v2089_v36, %v2084_v38  ;;  %v2099_v35 = vadd.f32 %v6742_v63, %v2098_v30 }
 0x4aa   :  { %9221 = vmatpush3.bf16.msra.mxu1 %v9220_v55  ;;  %v9223_v6 = vpack.c.bf16 %v2099_v35, %v2094_v50  ;;  %v8201_v53 = vpop.f32.mrb[104].mxu1 }
 0x4ab   :  { %9222 = vmatprep.subr.bf16.mxu1 %v13101_v48  ;;  %v2108_v54 = vpop.f32.mrb[105].mxu1  ;;  %v2114_v21 = vadd.f32 %v8201_v53, %v6742_v63 }
 0x4ac   :  { %v2109_v57 = vadd.f32 %v6742_v63, %v2108_v54 }
 0x4ae   :  { %9224 = vmatpush3.bf16.msra.mxu1 %v9223_v6  ;;  %v9226_v16 = vpack.c.bf16 %v2109_v57, %v2104_v15  ;;  %v8204_v8 = vpop.f32.mrb[106].mxu1 }
 0x4af   :  { %9225 = vmatprep.subr.bf16.mxu1 %v13101_v48  ;;  %v2118_v23 = vpop.f32.mrb[107].mxu1  ;;  %v2124_v27 = vadd.f32 %v8204_v8, %v6742_v63 }
 0x4b0   :  { %v2119_v24 = vadd.f32 %v6742_v63, %v2118_v23 }
 0x4b2   :  { %9227 = vmatpush3.bf16.msra.mxu1 %v9226_v16  ;;  %v9229_v5 = vpack.c.bf16 %v2119_v24, %v2114_v21 }
 0x4b3   :  { %9228 = vmatprep.subr.bf16.mxu1 %v13101_v48 }
 0x4b6   :  { %9230 = vmatpush3.bf16.msra.mxu1 %v9229_v5 }
 0x4b7   :  { %8356 = vmatprep.subr.mxu1 %v13103_v4 }
 0x4ba   :  { %8357 = vmatpush3.msra.mxu1 %v2124_v27 }
 0x545   :  { %v2247_v31 = vpop.f32.mrb[72].mxu0 }
 0x546   :  { %v8225_v37 = vpop.f32.mrb[73].mxu0  ;;  %v11194_v48 = vmul.f32 0.35355338, %v2247_v31 }
 0x549   :  { %v2252_v44 = vpop.f32.mrb[74].mxu0 }
 0x54a   :  { %v8228_v38 = vpop.f32.mrb[75].mxu0  ;;  %v11200_v4 = vmul.f32 0.35355338, %v2252_v44 }
 0x54d   :  { %v2257_v40 = vpop.f32.mrb[76].mxu0 }
 0x54e   :  { %v8231_v49 = vpop.f32.mrb[77].mxu0 }
 0x551   :  { %v2262_v36 = vpop.f32.mrb[78].mxu0 }
 0x552   :  { %v8234_v50 = vpop.f32.mrb[79].mxu0  ;;  %v11208_v31 = vmul.f32 0.35355338, %v2262_v36 }
 0x555   :  { %v2267_v55 = vpop.f32.mrb[80].mxu0 }
 0x556   :  { %v8237_v3 = vpop.f32.mrb[81].mxu0 }
 0x559   :  { %v11162_v30 = vpop.f32.mrb[82].mxu0  ;;  %v2411_v35 = vpop.f32.mrb[108].mxu1 }
 0x55a   :  { %v11164_v15 = vmul.f32 0.35355338, %v2411_v35  ;;  %v8240_v63 = vpop.f32.mrb[83].mxu0  ;;  %v8270_v6 = vpop.f32.mrb[109].mxu1 }
 0x55c   :  { %v2500_v53 = vsel %vm1131_vm4, %v11164_v15, -inf }
 0x55d   :  { %2501 = vmax.xlane.f32.xlu0 %v2500_v53  ;;  %v2277_v54 = vpop.f32.mrb[84].mxu0  ;;  %v2416_v57 = vpop.f32.mrb[110].mxu1 }
 0x55e   :  { %v11168_v21 = vmul.f32 0.35355338, %v2416_v57  ;;  %v8243_v16 = vpop.f32.mrb[85].mxu0  ;;  %v8273_v8 = vpop.f32.mrb[111].mxu1 }
 0x560   :  { %v2503_v23 = vsel %vm1131_vm4, %v11168_v21, -inf }
 0x561   :  { %2504 = vmax.xlane.f32.xlu1 %v2503_v23  ;;  %v2282_v24 = vpop.f32.mrb[86].mxu0  ;;  %v2421_v5 = vpop.f32.mrb[112].mxu1 }
 0x562   :  { %v11172_v27 = vmul.f32 0.35355338, %v2421_v5  ;;  %v8246_v37 = vpop.f32.mrb[87].mxu0  ;;  %v8276_v38 = vpop.f32.mrb[113].mxu1 }
 0x564   :  { %v2506_v49 = vsel %vm1131_vm4, %v11172_v27, -inf }
 0x565   :  { %2507 = vmax.xlane.f32.xlu0 %v2506_v49  ;;  %v2287_v50 = vpop.f32.mrb[88].mxu0  ;;  %v2426_v3 = vpop.f32.mrb[114].mxu1 }
 0x566   :  { %v11176_v35 = vmul.f32 0.35355338, %v2426_v3  ;;  %v8249_v63 = vpop.f32.mrb[89].mxu0  ;;  %v8279_v6 = vpop.f32.mrb[115].mxu1 }
 0x568   :  { %v2509_v53 = vsel %vm1131_vm4, %v11176_v35, -inf }
 0x569   :  { %2510 = vmax.xlane.f32.xlu1 %v2509_v53  ;;  %v2431_v57 = vpop.f32.mrb[116].mxu1 }
 0x56a   :  { %v11180_v16 = vmul.f32 0.35355338, %v2431_v57  ;;  %v8282_v8 = vpop.f32.mrb[117].mxu1 }
 0x56c   :  { %v2512_v23 = vsel %vm1131_vm4, %v11180_v16, -inf }
 0x56d   :  { %2513 = vmax.xlane.f32.xlu0 %v2512_v23  ;;  %v2436_v5 = vpop.f32.mrb[118].mxu1 }
 0x56e   :  { %v11184_v37 = vmul.f32 0.35355338, %v2436_v5  ;;  %v8285_v38 = vpop.f32.mrb[119].mxu1 }
 0x570   :  { %v2515_v49 = vsel %vm1131_vm4, %v11184_v37, -inf }
 0x571   :  { %2516 = vmax.xlane.f32.xlu1 %v2515_v49  ;;  %v2441_v3 = vpop.f32.mrb[120].mxu1 }
 0x572   :  { %v11188_v63 = vmul.f32 0.35355338, %v2441_v3  ;;  %v8288_v6 = vpop.f32.mrb[121].mxu1 }
 0x573   :  { %v11202_v6 = vmul.f32 0.35355338, %v2257_v40  ;;  %v11217_v40 = vmul.f32 0.35355338, %v11162_v30 }
 0x574   :  { %v2518_v53 = vsel %vm1131_vm4, %v11188_v63, -inf }
 0x575   :  { %2519 = vmax.xlane.f32.xlu0 %v2518_v53  ;;  %v2446_v57 = vpop.f32.mrb[122].mxu1  ;;  %v2479_v44 = vsel %vm1131_vm4, %v11202_v6, -inf }
 0x576   :  { %v11192_v8 = vmul.f32 0.35355338, %v2446_v57  ;;  %v8291_v23 = vpop.f32.mrb[123].mxu1  ;;  %v2473_v57 = vsel %vm1131_vm4, %v11194_v48, -inf }
 0x577   :  { %v11210_v23 = vmul.f32 0.35355338, %v2267_v55  ;;  %v11225_v55 = vmul.f32 0.35355338, %v2282_v24 }
 0x578   :  { %v2521_v5 = vsel %vm1131_vm4, %v11192_v8, -inf }
 0x579   :  { %2522 = vmax.xlane.f32.xlu1 %v2521_v5  ;;  %v2451_v38 = vpop.f32.mrb[124].mxu1  ;;  %v2476_v5 = vsel %vm1131_vm4, %v11200_v4, -inf  ;;  %v2485_v36 = vsel %vm1131_vm4, %v11210_v23, -inf }
 0x57a   :  { %v11198_v49 = vmul.f32 0.35355338, %v2451_v38  ;;  %v8294_v3 = vpop.f32.mrb[125].mxu1  ;;  %v11219_v38 = vmul.f32 0.35355338, %v2277_v54  ;;  %v2494_v54 = vsel %vm1131_vm4, %v11225_v55, -inf }
 0x57b   :  { %v2482_v3 = vsel %vm1131_vm4, %v11208_v31, -inf }
 0x57c   :  { %v2524_v53 = vsel %vm1131_vm4, %v11198_v49, -inf  ;;  %v2491_v30 = vsel %vm1131_vm4, %v11219_v38, -inf }
 0x57d   :  { %2525 = vmax.xlane.f32.xlu0 %v2524_v53  ;;  %2474 = vmax.xlane.f32.xlu1 %v2473_v57  ;;  %v11227_v53 = vmul.f32 0.35355338, %v2287_v50  ;;  %v2488_v57 = vsel %vm1131_vm4, %v11217_v40, -inf }
 0x581   :  { %2477 = vmax.xlane.f32.xlu0 %v2476_v5  ;;  %2480 = vmax.xlane.f32.xlu1 %v2479_v44  ;;  %v2497_v5 = vsel %vm1131_vm4, %v11227_v53, -inf }
 0x585   :  { %2483 = vmax.xlane.f32.xlu0 %v2482_v3  ;;  %2486 = vmax.xlane.f32.xlu1 %v2485_v36 }
 0x589   :  { %2489 = vmax.xlane.f32.xlu0 %v2488_v57  ;;  %2492 = vmax.xlane.f32.xlu1 %v2491_v30 }
 0x58d   :  { %2495 = vmax.xlane.f32.xlu0 %v2494_v54  ;;  %2498 = vmax.xlane.f32.xlu1 %v2497_v5 }
 0x5ea   :  { %v2502_v24 = vpop.xlane.xlu0 %2501 }
 0x5eb   :  { %v2536_v50 = vsub.f32 %v11164_v15, %v2502_v24 }
 0x5ed   :  { %v2563_v44 = vmul.f32 1.442695, %v2536_v50 }
 0x5ee   :  { %v2505_v3 = vpop.xlane.xlu1 %2504 }
 0x5ef   :  { %9520 = vpow2.f32 %v2563_v44  ;;  %v2537_v36 = vsub.f32 %v11168_v21, %v2505_v3 }
 0x5f1   :  { %v2565_v60 = vmul.f32 1.442695, %v2537_v36 }
 0x5f2   :  { %v2508_v14 = vpop.xlane.xlu0 %2507 }
 0x5f3   :  { %9522 = vpow2.f32 %v2565_v60  ;;  %v2538_v57 = vsub.f32 %v11172_v27, %v2508_v14 }
 0x5f5   :  { %v2567_v30 = vmul.f32 1.442695, %v2538_v57 }
 0x5f6   :  { %v2511_v52 = vpop.xlane.xlu1 %2510 }
 0x5f7   :  { %9524 = vpow2.f32 %v2567_v30  ;;  %v2539_v51 = vsub.f32 %v11176_v35, %v2511_v52 }
 0x5f9   :  { %v11241_v54 = vpop.eup %9520  ;;  %v2569_v5 = vmul.f32 1.442695, %v2539_v51 }
 0x5fa   :  { %v2514_v29 = vpop.xlane.xlu0 %2513  ;;  %v2608_v15 = vsel %vm1131_vm4, %v11241_v54, 0.0 }
 0x5fb   :  { %9526 = vpow2.f32 %v2569_v5  ;;  %v2540_v21 = vsub.f32 %v11180_v16, %v2514_v29  ;;  %2609 = vadd.xlane.f32.xlu0 %v2608_v15 }
 0x5fd   :  { %v11246_v24 = vpop.eup %9522  ;;  %v2571_v60 = vmul.f32 1.442695, %v2540_v21 }
 0x5fe   :  { %v2517_v14 = vpop.xlane.xlu1 %2516  ;;  %v2611_v27 = vsel %vm1131_vm4, %v11246_v24, 0.0 }
 0x5ff   :  { %9528 = vpow2.f32 %v2571_v60  ;;  %v2541_v52 = vsub.f32 %v11184_v37, %v2517_v14  ;;  %2612 = vadd.xlane.f32.xlu1 %v2611_v27 }
 0x601   :  { %v11251_v51 = vpop.eup %9524  ;;  %v2573_v35 = vmul.f32 1.442695, %v2541_v52 }
 0x602   :  { %v2520_v50 = vpop.xlane.xlu0 %2519  ;;  %v2614_v44 = vsel %vm1131_vm4, %v11251_v51, 0.0 }
 0x603   :  { %9530 = vpow2.f32 %v2573_v35  ;;  %v2542_v29 = vsub.f32 %v11188_v63, %v2520_v50  ;;  %2615 = vadd.xlane.f32.xlu0 %v2614_v44 }
 0x605   :  { %v11256_v16 = vpop.eup %9526  ;;  %v2575_v3 = vmul.f32 1.442695, %v2542_v29 }
 0x606   :  { %v2523_v36 = vpop.xlane.xlu1 %2522  ;;  %v2617_v57 = vsel %vm1131_vm4, %v11256_v16, 0.0 }
 0x607   :  { %9532 = vpow2.f32 %v2575_v3  ;;  %v2543_v37 = vsub.f32 %v11192_v8, %v2523_v36  ;;  %2618 = vadd.xlane.f32.xlu1 %v2617_v57 }
 0x609   :  { %v11261_v30 = vpop.eup %9528  ;;  %v2577_v5 = vmul.f32 1.442695, %v2543_v37 }
 0x60a   :  { %v2526_v15 = vpop.xlane.xlu0 %2525  ;;  %v2475_v21 = vpop.xlane.xlu1 %2474  ;;  %v2620_v63 = vsel %vm1131_vm4, %v11261_v30, 0.0 }
 0x60b   :  { %9534 = vpow2.f32 %v2577_v5  ;;  %v2544_v60 = vsub.f32 %v11198_v49, %v2526_v15  ;;  %v2527_v14 = vsub.f32 %v11194_v48, %v2475_v21  ;;  %2621 = vadd.xlane.f32.xlu0 %v2620_v63 }
 0x60d   :  { %v11267_v27 = vpop.eup %9530  ;;  %v2579_v52 = vmul.f32 1.442695, %v2544_v60  ;;  %v2545_v35 = vmul.f32 1.442695, %v2527_v14 }
 0x60e   :  { %v2478_v8 = vpop.xlane.xlu0 %2477  ;;  %v2481_v50 = vpop.xlane.xlu1 %2480  ;;  %v2623_v44 = vsel %vm1131_vm4, %v11267_v27, 0.0 }
 0x60f   :  { %9536 = vpow2.f32 %v2579_v52  ;;  %v2528_v29 = vsub.f32 %v11200_v4, %v2478_v8  ;;  %v2529_v3 = vsub.f32 %v11202_v6, %v2481_v50  ;;  %2624 = vadd.xlane.f32.xlu1 %v2623_v44  ;;  %v6852_v44 = vld [vmem:[%s13092_s4 + $0x40] sm:$0xff] }
 0x610   :  { %9538 = vpow2.f32 %v2545_v35 }
 0x611   :  { %v11273_v49 = vpop.eup %9532  ;;  %v2547_v48 = vmul.f32 1.442695, %v2528_v29  ;;  %v2549_v36 = vmul.f32 1.442695, %v2529_v3  ;;  %v6853_v29 = vld [vmem:[%s13092_s4 + $0x48] sm:$0xff] }
 0x612   :  { %v2484_v57 = vpop.xlane.xlu0 %2483  ;;  %v2487_v37 = vpop.xlane.xlu1 %2486  ;;  %v2626_v5 = vsel %vm1131_vm4, %v11273_v49, 0.0 }
 0x613   :  { %9540 = vpow2.f32 %v2547_v48  ;;  %v2530_v15 = vsub.f32 %v11208_v31, %v2484_v57  ;;  %v2531_v21 = vsub.f32 %v11210_v23, %v2487_v37  ;;  %2627 = vadd.xlane.f32.xlu0 %v2626_v5 }
 0x614   :  { %9542 = vpow2.f32 %v2549_v36  ;;  %v9231_v36 = vpack.c.bf16 %v6853_v29, %v6852_v44 }
 0x615   :  { %v11279_v4 = vpop.eup %9534  ;;  %v2551_v6 = vmul.f32 1.442695, %v2530_v15  ;;  %v2553_v63 = vmul.f32 1.442695, %v2531_v21 }
 0x616   :  { %v2490_v60 = vpop.xlane.xlu0 %2489  ;;  %v2493_v14 = vpop.xlane.xlu1 %2492  ;;  %v2629_v52 = vsel %vm1131_vm4, %v11279_v4, 0.0  ;;  %9232 = vmatprep.subr.bf16.mxu1 %v9231_v36 }
 0x617   :  { %9544 = vpow2.f32 %v2551_v6  ;;  %v2532_v35 = vsub.f32 %v11217_v40, %v2490_v60  ;;  %v2533_v8 = vsub.f32 %v11219_v38, %v2493_v14  ;;  %2630 = vadd.xlane.f32.xlu1 %v2629_v52 }
 0x618   :  { %9546 = vpow2.f32 %v2553_v63 }
 0x619   :  { %v11285_v31 = vpop.eup %9536  ;;  %v2555_v23 = vmul.f32 1.442695, %v2532_v35  ;;  %v2557_v50 = vmul.f32 1.442695, %v2533_v8 }
 0x61a   :  { %v11293_v3 = vpop.eup %9538  ;;  %v2496_v48 = vpop.xlane.xlu0 %2495  ;;  %v2632_v38 = vsel %vm1131_vm4, %v11285_v31, 0.0 }
 0x61b   :  { %v2499_v40 = vpop.xlane.xlu1 %2498  ;;  %9548 = vpow2.f32 %v2555_v23  ;;  %v2534_v57 = vsub.f32 %v11225_v55, %v2496_v48  ;;  %2633 = vadd.xlane.f32.xlu0 %v2632_v38  ;;  %v2581_v5 = vsel %vm1131_vm4, %v11293_v3, 0.0 }
 0x61c   :  { %v2535_v37 = vsub.f32 %v11227_v53, %v2499_v40  ;;  %9550 = vpow2.f32 %v2557_v50  ;;  %2582 = vadd.xlane.f32.xlu1 %v2581_v5 }
 0x61d   :  { %v11301_v15 = vpop.eup %9540  ;;  %v2559_v21 = vmul.f32 1.442695, %v2534_v57 }
 0x61e   :  { %v2561_v6 = vmul.f32 1.442695, %v2535_v37  ;;  %v11303_v63 = vpop.eup %9542  ;;  %v2584_v60 = vsel %vm1131_vm4, %v11301_v15, 0.0 }
 0x61f   :  { %9552 = vpow2.f32 %v2559_v21  ;;  %2585 = vadd.xlane.f32.xlu0 %v2584_v60  ;;  %v2587_v55 = vsel %vm1131_vm4, %v11303_v63, 0.0  ;;  %v6855_v60 = vld [vmem:[%s13092_s4 + $0x58] sm:$0xff] }
 0x620   :  { %9554 = vpow2.f32 %v2561_v6  ;;  %2588 = vadd.xlane.f32.xlu1 %v2587_v55  ;;  %v6854_v6 = vld [vmem:[%s13092_s4 + $0x50] sm:$0xff] }
 0x621   :  { %v11309_v53 = vpop.eup %9544 }
 0x622   :  { %v11311_v14 = vpop.eup %9546  ;;  %v2590_v52 = vsel %vm1131_vm4, %v11309_v53, 0.0 }
 0x623   :  { %2591 = vadd.xlane.f32.xlu0 %v2590_v52  ;;  %v2593_v35 = vsel %vm1131_vm4, %v11311_v14, 0.0 }
 0x624   :  { %2594 = vadd.xlane.f32.xlu1 %v2593_v35 }
 0x625   :  { %v11317_v8 = vpop.eup %9548 }
 0x626   :  { %v11319_v23 = vpop.eup %9550  ;;  %v2596_v50 = vsel %vm1131_vm4, %v11317_v8, 0.0 }
 0x627   :  { %2597 = vadd.xlane.f32.xlu0 %v2596_v50  ;;  %v2599_v44 = vsel %vm1131_vm4, %v11319_v23, 0.0  ;;  %v9235_v50 = vpack.c.bf16 %v6855_v60, %v6854_v6 }
 0x628   :  { %2600 = vadd.xlane.f32.xlu1 %v2599_v44 }
 0x629   :  { %v11325_v29 = vpop.eup %9552 }
 0x62a   :  { %v11327_v48 = vpop.eup %9554  ;;  %v2602_v40 = vsel %vm1131_vm4, %v11325_v29, 0.0 }
 0x62b   :  { %2603 = vadd.xlane.f32.xlu0 %v2602_v40  ;;  %v2605_v38 = vsel %vm1131_vm4, %v11327_v48, 0.0  ;;  %v6876_v40 = vld [vmem:[%s13092_s4 + $0xc0] sm:$0xff] }
 0x62c   :  { %2606 = vadd.xlane.f32.xlu1 %v2605_v38  ;;  %v6877_v38 = vld [vmem:[%s13092_s4 + $0xc8] sm:$0xff] }
 0x688   :  { %v2610_v57 = vpop.xlane.xlu0 %2609 }
 0x689   :  { %9556 = vrcp.f32 %v2610_v57 }
 0x68c   :  { %v2613_v37 = vpop.xlane.xlu1 %2612 }
 0x68d   :  { %9558 = vrcp.f32 %v2613_v37 }
 0x690   :  { %v2616_v5 = vpop.xlane.xlu0 %2615 }
 0x691   :  { %9560 = vrcp.f32 %v2616_v5 }
 0x693   :  { %v9557_v21 = vpop.eup %9556 }
 0x694   :  { %v2662_v55 = vmul.f32 %v9557_v21, %v11241_v54  ;;  %v2619_v52 = vpop.xlane.xlu1 %2618  ;;  %v13127_v54 = vmov 0.0   ;;  %v11352_v21 = vpack.c.bf16 %v6877_v38, %v6876_v40 }
 0x695   :  { %9562 = vrcp.f32 %v2619_v52 }
 0x696   :  { %v2680_v35 = vmul.f32 %v10592_v12, %v2662_v55 }
 0x697   :  { %v9559_v44 = vpop.eup %9558 }
 0x698   :  { %8359 = vmatmul.mubr.msk.f32.vlgmr.msra.gmra.mrb[126].mxu1 %vm1131_vm4, %v2680_v35  ;;  %v2622_v57 = vpop.xlane.xlu0 %2621  ;;  %v2663_v37 = vmul.f32 %v9559_v44, %v11246_v24 }
 0x699   :  { %9564 = vrcp.f32 %v2622_v57  ;;  %8361 = vmatprep.mubr.msk.f32.mxu1 %vm9899_vm1, %v13127_v54  ;;  %9234 = vmatpush3.bf16.msra.mxu1 %v9231_v36 }
 0x69a   :  { %v2681_v5 = vmul.f32 %v10605_v9, %v2663_v37  ;;  %9236 = vmatprep.subr.bf16.mxu1 %v9235_v50 }
 0x69b   :  { %v9561_v6 = vpop.eup %9560 }
 0x69c   :  { %8362 = vmatmul.mubr.msk.f32.gmra.mrb[128].mxu1 %vm1131_vm4, %v2681_v5  ;;  %v2625_v60 = vpop.xlane.xlu1 %2624  ;;  %v2664_v55 = vmul.f32 %v9561_v6, %v11251_v51 }
 0x69d   :  { %9566 = vrcp.f32 %v2625_v60  ;;  %8364 = vmatprep.mubr.msk.f32.mxu1 %vm9899_vm1, %v13127_v54  ;;  %9238 = vmatpush3.bf16.msra.mxu1 %v9235_v50 }
 0x69e   :  { %v2682_v24 = vmul.f32 %v10613_v25, %v2664_v55  ;;  %9240 = vmatprep.subr.bf16.mxu1 %v11352_v21 }
 0x69f   :  { %v9563_v36 = vpop.eup %9562 }
 0x6a0   :  { %v2628_v52 = vpop.xlane.xlu0 %2627  ;;  %8365 = vmatmul.mubr.msk.f32.gmra.mrb[130].mxu1 %vm1131_vm4, %v2682_v24  ;;  %v2665_v35 = vmul.f32 %v9563_v36, %v11256_v16 }
 0x6a1   :  { %9568 = vrcp.f32 %v2628_v52  ;;  %8367 = vmatprep.mubr.msk.f32.mxu1 %vm9899_vm1, %v13127_v54 }
 0x6a2   :  { %v2683_v51 = vmul.f32 %v10623_v39, %v2665_v35 }
 0x6a3   :  { %v9565_v44 = vpop.eup %9564 }
 0x6a4   :  { %8368 = vmatmul.mubr.msk.f32.gmra.mrb[132].mxu1 %vm1131_vm4, %v2683_v51  ;;  %v2631_v50 = vpop.xlane.xlu1 %2630  ;;  %v2666_v40 = vmul.f32 %v9565_v44, %v11261_v30 }
 0x6a5   :  { %9570 = vrcp.f32 %v2631_v50  ;;  %8370 = vmatprep.mubr.msk.f32.mxu1 %vm9899_vm1, %v13127_v54 }
 0x6a6   :  { %v2684_v38 = vmul.f32 %v10631_v43, %v2666_v40 }
 0x6a7   :  { %v9567_v57 = vpop.eup %9566 }
 0x6a8   :  { %v2634_v16 = vpop.xlane.xlu0 %2633  ;;  %8371 = vmatmul.mubr.msk.f32.gmra.mrb[134].mxu1 %vm1131_vm4, %v2684_v38  ;;  %v2667_v37 = vmul.f32 %v9567_v57, %v11267_v27 }
 0x6a9   :  { %9572 = vrcp.f32 %v2634_v16  ;;  %v2583_v5 = vpop.xlane.xlu1 %2582  ;;  %8373 = vmatprep.mubr.msk.f32.mxu1 %vm9899_vm1, %v13127_v54 }
 0x6aa   :  { %9574 = vrcp.f32 %v2583_v5  ;;  %v2685_v30 = vmul.f32 %v10641_v46, %v2667_v37 }
 0x6ab   :  { %v9569_v6 = vpop.eup %9568 }
 0x6ac   :  { %v2586_v60 = vpop.xlane.xlu0 %2585  ;;  %8374 = vmatmul.mubr.msk.f32.gmra.mrb[136].mxu1 %vm1131_vm4, %v2685_v30  ;;  %v2668_v55 = vmul.f32 %v9569_v6, %v11273_v49  ;;  %v9790_v6 = vld [vmem:[%s13093_s0] sm:$0xff] }
 0x6ad   :  { %9576 = vrcp.f32 %v2586_v60  ;;  %v2589_v24 = vpop.xlane.xlu1 %2588  ;;  %8376 = vmatprep.mubr.msk.f32.mxu1 %vm9899_vm1, %v13127_v54 }
 0x6ae   :  { %9578 = vrcp.f32 %v2589_v24  ;;  %v2686_v27 = vmul.f32 %v10648_v56, %v2668_v55 }
 0x6af   :  { %v9571_v36 = vpop.eup %9570 }
 0x6b0   :  { %v2592_v52 = vpop.xlane.xlu0 %2591  ;;  %8377 = vmatmul.mubr.msk.f32.gmra.mrb[138].mxu1 %vm1131_vm4, %v2686_v27  ;;  %v2669_v35 = vmul.f32 %v9571_v36, %v11279_v4  ;;  %v9791_v36 = vld [vmem:[%s13093_s0 + $0x8] sm:$0xff] }
 0x6b1   :  { %8379 = vmatprep.mubr.msk.f32.mxu1 %vm9899_vm1, %v13127_v54  ;;  %9580 = vrcp.f32 %v2592_v52  ;;  %v2595_v44 = vpop.xlane.xlu1 %2594  ;;  %v9792_v52 = vld [vmem:[%s13093_s0 + $0x10] sm:$0xff] }
 0x6b2   :  { %v2687_v49 = vmul.f32 %v10658_v0, %v2669_v35  ;;  %9582 = vrcp.f32 %v2595_v44  ;;  %v9793_v44 = vld [vmem:[%s13093_s0 + $0x18] sm:$0xff] }
 0x6b3   :  { %v9573_v51 = vpop.eup %9572 }
 0x6b4   :  { %v9575_v50 = vpop.eup %9574  ;;  %8380 = vmatmul.mubr.msk.f32.gmra.mrb[140].mxu1 %vm1131_vm4, %v2687_v49  ;;  %v2670_v40 = vmul.f32 %v9573_v51, %v11285_v31  ;;  %v2598_v37 = vpop.xlane.xlu0 %2597  ;;  %v6878_v31 = vld [vmem:[%s13092_s4 + $0xd0] sm:$0xff] }
 0x6b5   :  { %v2653_v38 = vmul.f32 %v9575_v50, %v11293_v3  ;;  %8382 = vmatprep.mubr.msk.f32.mxu1 %vm9899_vm1, %v13127_v54  ;;  %v6879_v3 = vld [vmem:[%s13092_s4 + $0xd8] sm:$0xff]  ;;  %9584 = vrcp.f32 %v2598_v37  ;;  %v2601_v60 = vpop.xlane.xlu1 %2600  ;;  %v9794_v50 = vld [vmem:[%s13093_s0 + $0x20] sm:$0xff] }
 0x6b6   :  { %v2688_v4 = vmul.f32 %v10668_v18, %v2670_v40  ;;  %v9243_v24 = vpack.c.bf16 %v6879_v3, %v6878_v31  ;;  %9586 = vrcp.f32 %v2601_v60  ;;  %v9798_v31 = vld [vmem:[%s13093_s0 + $0x40] sm:$0xff]  ;;  %v9800_v60 = vld [vmem:[%s13093_s0 + $0x50] sm:$0xff] }
 0x6b7   :  { %v9577_v57 = vpop.eup %9576  ;;  %v2671_v16 = vmul.f32 %v10670_v17, %v2653_v38  ;;  %v13128_v38 = vmov 0.0|0.0  }
 0x6b8   :  { %v9579_v5 = vpop.eup %9578  ;;  %8383 = vmatmul.mubr.msk.f32.gmra.mrb[142].mxu1 %vm1131_vm4, %v2688_v4  ;;  %v2654_v30 = vmul.f32 %v9577_v57, %v11301_v15  ;;  %v9795_v57 = vld [vmem:[%s13093_s0 + $0x28] sm:$0xff] }
 0x6b9   :  { %8314 = vmatmul.mubr.msk.f32.vlgmr.msra.gmra.mrb[90].mxu0 %vm1131_vm4, %v2671_v16  ;;  %8451 = vmatprep.mubr.msk.f32.mxu1 %vm130_vm0, %v9790_v6  ;;  %v2655_v55 = vmul.f32 %v9579_v5, %v11303_v63  ;;  %v2604_v63 = vpop.xlane.xlu0 %2603  ;;  %v9796_v16 = vld [vmem:[%s13093_s0 + $0x30] sm:$0xff] }
 0x6ba   :  { %8316 = vmatprep.mubr.msk.f32.mxu0 %vm9899_vm1, %v13127_v54  ;;  %v2672_v15 = vmul.f32 %v10684_v42, %v2654_v30  ;;  %9588 = vrcp.f32 %v2604_v63  ;;  %v9797_v30 = vld [vmem:[%s13093_s0 + $0x38] sm:$0xff]  ;;  %v9803_v63 = vld [vmem:[%s13093_s0 + $0x68] sm:$0xff] }
 0x6bb   :  { %v9581_v27 = vpop.eup %9580  ;;  %v2673_v35 = vmul.f32 %v10701_v34, %v2655_v55 }
 0x6bc   :  { %8452 = vmatmul.mubr.msk.f32.vlgmr.msra.gmra.mrb[144].mxu1 %vm130_vm0, %v9791_v36  ;;  %v2656_v49 = vmul.f32 %v9581_v27, %v11309_v53  ;;  %v9583_v51 = vpop.eup %9582  ;;  %v2607_v53 = vpop.xlane.xlu1 %2606  ;;  %v9801_v27 = vld [vmem:[%s13093_s0 + $0x58] sm:$0xff]  ;;  %v9802_v36 = vld [vmem:[%s13093_s0 + $0x60] sm:$0xff] }
 0x6bd   :  { %8317 = vmatmul.mubr.msk.f32.gmra.mrb[92].mxu0 %vm1131_vm4, %v2672_v15  ;;  %8454 = vmatprep.mubr.msk.f32.mxu1 %vm130_vm0, %v9792_v52  ;;  %v2657_v40 = vmul.f32 %v9583_v51, %v11311_v14  ;;  %9590 = vrcp.f32 %v2607_v53  ;;  %v9799_v15 = vld [vmem:[%s13093_s0 + $0x48] sm:$0xff]  ;;  %v9806_v51 = vld [vmem:[%s13093_s0 + $0x80] sm:$0xff] }
 0x6be   :  { %8319 = vmatprep.mubr.msk.f32.mxu0 %vm9899_vm1, %v13127_v54  ;;  %9242 = vmatpush3.bf16.msra.mxu1 %v11352_v21  ;;  %v2674_v21 = vmul.f32 %v10716_v47, %v2656_v49  ;;  %v9809_v53 = vld [vmem:[%s13094_s1 + $0x8] sm:$0xff] }
 0x6bf   :  { %9244 = vmatprep.subr.bf16.mxu1 %v9243_v24  ;;  %v9585_v4 = vpop.eup %9584  ;;  %v2675_v14 = vmul.f32 %v10734_v61, %v2657_v40  ;;  %v9811_v40 = vld [vmem:[%s13094_s1 + $0x18] sm:$0xff] }
 0x6c0   :  { %8455 = vmatmul.mubr.msk.f32.gmra.mrb[146].mxu1 %vm130_vm0, %v9793_v44  ;;  %v2658_v37 = vmul.f32 %v9585_v4, %v11317_v8  ;;  %v9587_v5 = vpop.eup %9586  ;;  %v9807_v44 = vld [vmem:[%s13093_s0 + $0x88] sm:$0xff]  ;;  %v9812_v4 = vld [vmem:[%s13094_s1 + $0x20] sm:$0xff] }
 0x6c1   :  { %8320 = vmatmul.mubr.msk.f32.gmra.mrb[94].mxu0 %vm1131_vm4, %v2673_v35  ;;  %8457 = vmatprep.mubr.msk.f32.mxu1 %vm130_vm0, %v9794_v50  ;;  %v2659_v3 = vmul.f32 %v9587_v5, %v11319_v23  ;;  %v9804_v35 = vld [vmem:[%s13093_s0 + $0x70] sm:$0xff]  ;;  %v9808_v50 = vld [vmem:[%s13094_s1] sm:$0xff]  ;;  %v9817_v5 = vld [vmem:[%s13094_s1 + $0x48] sm:$0xff] }
 0x6c2   :  { %8322 = vmatprep.mubr.msk.f32.mxu0 %vm9899_vm1, %v13127_v54  ;;  %9246 = vmatpush3.bf16.msra.mxu1 %v9243_v24  ;;  %v2676_v8 = vmul.f32 %v10749_v7, %v2658_v37  ;;  %v9816_v37 = vld [vmem:[%s13094_s1 + $0x40] sm:$0xff] }
 0x6c3   :  { %9255 = vmatprep.subr.bf16.mxu1 %v13128_v38  ;;  %v2677_v23 = vmul.f32 %v10767_v28, %v2659_v3  ;;  %v9821_v3 = vld [vmem:[%s13094_s1 + $0x68] sm:$0xff] }
 0x6c4   :  { %8458 = vmatmul.mubr.msk.f32.gmra.mrb[148].mxu1 %vm130_vm0, %v9795_v57  ;;  %v9589_v6 = vpop.eup %9588  ;;  %v9813_v57 = vld [vmem:[%s13094_s1 + $0x28] sm:$0xff] }
 0x6c5   :  { %8323 = vmatmul.mubr.msk.f32.gmra.mrb[96].mxu0 %vm1131_vm4, %v2674_v21  ;;  %8460 = vmatprep.mubr.msk.f32.mxu1 %vm130_vm0, %v9796_v16  ;;  %v2660_v55 = vmul.f32 %v9589_v6, %v11325_v29  ;;  %v9810_v21 = vld [vmem:[%s13094_s1 + $0x10] sm:$0xff] }
 0x6c6   :  { %8325 = vmatprep.mubr.msk.f32.mxu0 %vm9899_vm1, %v13127_v54  ;;  %v9814_v16 = vld [vmem:[%s13094_s1 + $0x30] sm:$0xff] }
 0x6c7   :  { %v9591_v24 = vpop.eup %9590  ;;  %v2678_v29 = vmul.f32 %v10782_v22, %v2660_v55  ;;  %v9822_v6 = vld [vmem:[%s13094_s1 + $0x70] sm:$0xff]  ;;  %v6815_v55 = vld [vmem:[%s13098_s6 + $0x8] sm:$0xff] }
 0x6c8   :  { %8461 = vmatmul.mubr.msk.f32.gmra.mrb[150].mxu1 %vm130_vm0, %v9797_v30  ;;  %v2661_v52 = vmul.f32 %v9591_v24, %v11327_v48  ;;  %v9805_v48 = vld [vmem:[%s13093_s0 + $0x78] sm:$0xff]  ;;  %v9818_v30 = vld [vmem:[%s13094_s1 + $0x50] sm:$0xff]  ;;  %8385 = vmatprep.subr.mxu0 %v6815_v55  ;;  %v1622_v24 = vld [vmem:[%s13098_s6] sm:$0xff] }
 0x6c9   :  { %8326 = vmatmul.mubr.msk.f32.gmra.mrb[98].mxu0 %vm1131_vm4, %v2675_v14  ;;  %8463 = vmatprep.mubr.msk.f32.mxu1 %vm130_vm0, %v9798_v31  ;;  %v9815_v14 = vld [vmem:[%s13094_s1 + $0x38] sm:$0xff] }
 0x6ca   :  { %8328 = vmatprep.mubr.msk.f32.mxu0 %vm9899_vm1, %v13127_v54  ;;  %v2679_v49 = vmul.f32 %v10798_v32, %v2661_v52  ;;  %v9819_v31 = vld [vmem:[%s13094_s1 + $0x58] sm:$0xff]  ;;  %8386 = vmatpush3.msra.mxu0 %v6815_v55 }
 0x6cb   :  { %8414 = vmatprep.subr.mxu0 %v1622_v24 }
 0x6cc   :  { %8464 = vmatmul.mubr.msk.f32.gmra.mrb[152].mxu1 %vm130_vm0, %v9799_v15  ;;  %v9823_v15 = vld [vmem:[%s13094_s1 + $0x78] sm:$0xff] }
 0x6cd   :  { %8329 = vmatmul.mubr.msk.f32.gmra.mrb[100].mxu0 %vm1131_vm4, %v2676_v8  ;;  %8466 = vmatprep.mubr.msk.f32.mxu1 %vm130_vm0, %v9800_v60  ;;  %v9820_v8 = vld [vmem:[%s13094_s1 + $0x60] sm:$0xff] }
 0x6ce   :  { %8331 = vmatprep.mubr.msk.f32.mxu0 %vm9899_vm1, %v13127_v54  ;;  %v9824_v60 = vld [vmem:[%s13094_s1 + $0x80] sm:$0xff] }
 0x6d0   :  { %8467 = vmatmul.mubr.msk.f32.gmra.mrb[154].mxu1 %vm130_vm0, %v9801_v27 }
 0x6d1   :  { %8332 = vmatmul.mubr.msk.f32.gmra.mrb[102].mxu0 %vm1131_vm4, %v2677_v23  ;;  %8469 = vmatprep.mubr.msk.f32.mxu1 %vm130_vm0, %v9802_v36  ;;  %v9825_v23 = vld [vmem:[%s13094_s1 + $0x88] sm:$0xff] }
 0x6d2   :  { %8334 = vmatprep.mubr.msk.f32.mxu0 %vm9899_vm1, %v13127_v54 }
 0x6d4   :  { %8470 = vmatmul.mubr.msk.f32.gmra.mrb[156].mxu1 %vm130_vm0, %v9803_v63 }
 0x6d5   :  { %8335 = vmatmul.mubr.msk.f32.gmra.mrb[104].mxu0 %vm1131_vm4, %v2678_v29  ;;  %8472 = vmatprep.mubr.msk.f32.mxu1 %vm130_vm0, %v9804_v35 }
 0x6d6   :  { %8337 = vmatprep.mubr.msk.f32.mxu0 %vm9899_vm1, %v13127_v54 }
 0x6d8   :  { %8473 = vmatmul.mubr.msk.f32.gmra.mrb[158].mxu1 %vm130_vm0, %v9805_v48 }
 0x6d9   :  { %8338 = vmatmul.mubr.msk.f32.gmra.mrb[106].mxu0 %vm1131_vm4, %v2679_v49  ;;  %8475 = vmatprep.mubr.msk.f32.mxu1 %vm130_vm0, %v9806_v51 }
 0x6dc   :  { %8476 = vmatmul.mubr.msk.f32.gmra.mrb[160].mxu1 %vm130_vm0, %v9807_v44 }
 0x6dd   :  { %8486 = vmatprep.mubr.msk.f32.mxu1 %vm130_vm0, %v9808_v50 }
 0x6e0   :  { %8487 = vmatmul.mubr.msk.f32.vlgmr.msra.gmra.mrb[162].mxu1 %vm130_vm0, %v9809_v53 }
 0x6e1   :  { %8489 = vmatprep.mubr.msk.f32.mxu1 %vm130_vm0, %v9810_v21 }
 0x6e4   :  { %8490 = vmatmul.mubr.msk.f32.gmra.mrb[164].mxu1 %vm130_vm0, %v9811_v40 }
 0x6e5   :  { %8492 = vmatprep.mubr.msk.f32.mxu1 %vm130_vm0, %v9812_v4 }
 0x6e8   :  { %8493 = vmatmul.mubr.msk.f32.gmra.mrb[166].mxu1 %vm130_vm0, %v9813_v57 }
 0x6e9   :  { %8495 = vmatprep.mubr.msk.f32.mxu1 %vm130_vm0, %v9814_v16 }
 0x6ec   :  { %8496 = vmatmul.mubr.msk.f32.gmra.mrb[168].mxu1 %vm130_vm0, %v9815_v14 }
 0x6ed   :  { %8498 = vmatprep.mubr.msk.f32.mxu1 %vm130_vm0, %v9816_v37 }
 0x6f0   :  { %8499 = vmatmul.mubr.msk.f32.gmra.mrb[170].mxu1 %vm130_vm0, %v9817_v5  ;;  %v6900_v5 = vld [vmem:[%s13092_s4 + $0x140] sm:$0xff] }
 0x6f1   :  { %8501 = vmatprep.mubr.msk.f32.mxu1 %vm130_vm0, %v9818_v30  ;;  %v6901_v30 = vld [vmem:[%s13092_s4 + $0x148] sm:$0xff] }
 0x6f4   :  { %8502 = vmatmul.mubr.msk.f32.gmra.mrb[172].mxu1 %vm130_vm0, %v9819_v31 }
 0x6f5   :  { %8504 = vmatprep.mubr.msk.f32.mxu1 %vm130_vm0, %v9820_v8 }
 0x6f8   :  { %8505 = vmatmul.mubr.msk.f32.gmra.mrb[174].mxu1 %vm130_vm0, %v9821_v3  ;;  %v11621_v3 = vpack.c.bf16 %v6901_v30, %v6900_v5 }
 0x6f9   :  { %8507 = vmatprep.mubr.msk.f32.mxu1 %vm130_vm0, %v9822_v6 }
 0x6fc   :  { %8508 = vmatmul.mubr.msk.f32.gmra.mrb[176].mxu1 %vm130_vm0, %v9823_v15 }
 0x6fd   :  { %8510 = vmatprep.mubr.msk.f32.mxu1 %vm130_vm0, %v9824_v60 }
 0x700   :  { %8511 = vmatmul.mubr.msk.f32.gmra.mrb[178].mxu1 %vm130_vm0, %v9825_v23 }
 0x701   :  { %8566 = vmatprep.mubr.msk.f32.mxu1 %vm9899_vm1, %v13127_v54 }
 0x76b   :  { %v11594_v27 = vpop.f32.mrb[126].mxu1 }
 0x76c   :  { %v8360_v36 = vpop.f32.mrb[127].mxu1 }
 0x76f   :  { %v11596_v29 = vpop.f32.mrb[128].mxu1 }
 0x770   :  { %v8363_v52 = vpop.f32.mrb[129].mxu1 }
 0x773   :  { %v11598_v63 = vpop.f32.mrb[130].mxu1 }
 0x774   :  { %v8366_v35 = vpop.f32.mrb[131].mxu1 }
 0x777   :  { %v11600_v49 = vpop.f32.mrb[132].mxu1 }
 0x778   :  { %v8369_v48 = vpop.f32.mrb[133].mxu1 }
 0x77b   :  { %v11602_v51 = vpop.f32.mrb[134].mxu1 }
 0x77c   :  { %v8372_v44 = vpop.f32.mrb[135].mxu1 }
 0x77f   :  { %v11604_v50 = vpop.f32.mrb[136].mxu1 }
 0x780   :  { %v8375_v53 = vpop.f32.mrb[137].mxu1 }
 0x783   :  { %v11606_v21 = vpop.f32.mrb[138].mxu1 }
 0x784   :  { %v8378_v40 = vpop.f32.mrb[139].mxu1 }
 0x787   :  { %v11608_v4 = vpop.f32.mrb[140].mxu1 }
 0x788   :  { %v8381_v57 = vpop.f32.mrb[141].mxu1 }
 0x78b   :  { %v11610_v16 = vpop.f32.mrb[142].mxu1 }
 0x78c   :  { %v2782_v14 = vpop.f32.mrb[90].mxu0  ;;  %v8384_v37 = vpop.f32.mrb[143].mxu1 }
 0x78d   :  { %v8315_v31 = vpop.f32.mrb[91].mxu0  ;;  %8387 = vmatprep.mubr.msk.f32.mxu0 %vm784_vm2, %v2782_v14 }
 0x78f   :  { %v11619_v8 = vpop.f32.mrb[144].mxu1 }
 0x790   :  { %v2787_v6 = vpop.f32.mrb[92].mxu0  ;;  %v11623_v15 = vpop.f32.mrb[145].mxu1 }
 0x791   :  { %v8318_v60 = vpop.f32.mrb[93].mxu0  ;;  %8388 = vmatmul.mubr.msk.f32.vlgmr.msra.gmra.mrb[108].mxu0 %vm784_vm2, %v2787_v6 }
 0x792   :  { %8415 = vmatpush3.msra.mxu0 %v1622_v24 }
 0x793   :  { %v11626_v23 = vpop.f32.mrb[146].mxu1  ;;  %9248 = vmatprep.subr.bf16.mxu0 %v11621_v3 }
 0x794   :  { %v2792_v55 = vpop.f32.mrb[94].mxu0  ;;  %v11629_v36 = vpop.f32.mrb[147].mxu1 }
 0x795   :  { %v8321_v52 = vpop.f32.mrb[95].mxu0  ;;  %8390 = vmatprep.mubr.msk.f32.mxu0 %vm784_vm2, %v2792_v55 }
 0x797   :  { %v11632_v35 = vpop.f32.mrb[148].mxu1 }
 0x798   :  { %v2797_v48 = vpop.f32.mrb[96].mxu0  ;;  %v11634_v44 = vpop.f32.mrb[149].mxu1 }
 0x799   :  { %v8324_v53 = vpop.f32.mrb[97].mxu0  ;;  %8391 = vmatmul.mubr.msk.f32.gmra.mrb[110].mxu0 %vm784_vm2, %v2797_v48 }
 0x79b   :  { %v11637_v40 = vpop.f32.mrb[150].mxu1 }
 0x79c   :  { %v2802_v24 = vpop.f32.mrb[98].mxu0  ;;  %v11639_v57 = vpop.f32.mrb[151].mxu1 }
 0x79d   :  { %v8327_v14 = vpop.f32.mrb[99].mxu0  ;;  %8393 = vmatprep.mubr.msk.f32.mxu0 %vm784_vm2, %v2802_v24 }
 0x79f   :  { %v11642_v37 = vpop.f32.mrb[152].mxu1 }
 0x7a0   :  { %v2807_v5 = vpop.f32.mrb[100].mxu0  ;;  %v11644_v30 = vpop.f32.mrb[153].mxu1 }
 0x7a1   :  { %v8330_v31 = vpop.f32.mrb[101].mxu0  ;;  %8394 = vmatmul.mubr.msk.f32.gmra.mrb[112].mxu0 %vm784_vm2, %v2807_v5  ;;  %v11660_v5 = vld [vmem:[%s13096_s5 + $0x2] ss:$0 sm:$0xff] }
 0x7a3   :  { %v11647_v6 = vpop.f32.mrb[154].mxu1 }
 0x7a4   :  { %v2812_v60 = vpop.f32.mrb[102].mxu0  ;;  %v11649_v55 = vpop.f32.mrb[155].mxu1 }
 0x7a5   :  { %v8333_v52 = vpop.f32.mrb[103].mxu0  ;;  %8396 = vmatprep.mubr.msk.f32.mxu0 %vm784_vm2, %v2812_v60 }
 0x7a7   :  { %v11652_v48 = vpop.f32.mrb[156].mxu1 }
 0x7a8   :  { %v2817_v53 = vpop.f32.mrb[104].mxu0  ;;  %v11654_v24 = vpop.f32.mrb[157].mxu1 }
 0x7a9   :  { %v8336_v14 = vpop.f32.mrb[105].mxu0  ;;  %8397 = vmatmul.mubr.msk.f32.gmra.mrb[114].mxu0 %vm784_vm2, %v2817_v53 }
 0x7ab   :  { %v8474_v31 = vpop.f32.mrb[158].mxu1 }
 0x7ac   :  { %v2822_v18 = vpop.f32.mrb[106].mxu0  ;;  %v11663_v0 = vadd.f32 %v8474_v31, %v11660_v5  ;;  %v3532_v52 = vpop.f32.mrb[159].mxu1 }
 0x7ad   :  { %v8339_v60 = vpop.f32.mrb[107].mxu0  ;;  %8399 = vmatprep.mubr.msk.f32.mxu0 %vm784_vm2, %v2822_v18  ;;  %v11667_v56 = vadd.f32 %v11660_v5, %v3532_v52  ;;  %v11682_v18 = vld [vmem:[%s13096_s5 + $0x6] ss:$0 sm:$0xff] }
 0x7ae   :  { %8400 = vmatmul.mubr.msk.f32.gmra.mrb[116].mxu0 %vm784_vm2, %v11594_v27 }
 0x7af   :  { %8402 = vmatprep.mubr.msk.f32.mxu0 %vm784_vm2, %v11596_v29  ;;  %v8477_v53 = vpop.f32.mrb[160].mxu1 }
 0x7b0   :  { %v11674_v14 = vadd.f32 %v8477_v53, %v11660_v5  ;;  %v3542_v46 = vpop.f32.mrb[161].mxu1 }
 0x7b1   :  { %v11677_v31 = vadd.f32 %v11660_v5, %v3542_v46 }
 0x7b2   :  { %8403 = vmatmul.mubr.msk.f32.gmra.mrb[118].mxu0 %vm784_vm2, %v11598_v63 }
 0x7b3   :  { %8405 = vmatprep.mubr.msk.f32.mxu0 %vm784_vm2, %v11600_v49  ;;  %v8488_v27 = vpop.f32.mrb[162].mxu1 }
 0x7b4   :  { %v3636_v29 = vadd.f32 %v8488_v27, %v11682_v18  ;;  %v3630_v52 = vpop.f32.mrb[163].mxu1 }
 0x7b5   :  { %v3631_v60 = vadd.f32 %v11682_v18, %v3630_v52 }
 0x7b6   :  { %8406 = vmatmul.mubr.msk.f32.gmra.mrb[120].mxu0 %vm784_vm2, %v11602_v51 }
 0x7b7   :  { %v9256_v46 = vpack.c.bf16 %v3636_v29, %v3631_v60  ;;  %8408 = vmatprep.mubr.msk.f32.mxu0 %vm784_vm2, %v11604_v50  ;;  %v8491_v53 = vpop.f32.mrb[164].mxu1  ;;  %v6902_v60 = vld [vmem:[%s13092_s4 + $0x150] sm:$0xff] }
 0x7b8   :  { %v3646_v43 = vadd.f32 %v8491_v53, %v11682_v18  ;;  %v3640_v63 = vpop.f32.mrb[165].mxu1 }
 0x7b9   :  { %9258 = vmatpush3.bf16.xpose.msk.msra.mxu1 %vm10249_vm3, %v9256_v46  ;;  %v3641_v49 = vadd.f32 %v11682_v18, %v3640_v63 }
 0x7ba   :  { %8409 = vmatmul.mubr.msk.f32.gmra.mrb[122].mxu0 %vm784_vm2, %v11606_v21  ;;  %9259 = vmatprep.subr.bf16.mxu1 %v13128_v38  ;;  %v6903_v21 = vld [vmem:[%s13092_s4 + $0x158] sm:$0xff] }
 0x7bb   :  { %8411 = vmatprep.mubr.msk.f32.mxu0 %vm784_vm2, %v11608_v4  ;;  %v9260_v51 = vpack.c.bf16 %v3646_v43, %v3641_v49  ;;  %v8494_v27 = vpop.f32.mrb[166].mxu1  ;;  %v9251_v63 = vpack.c.bf16 %v6903_v21, %v6902_v60 }
 0x7bc   :  { %v3656_v50 = vadd.f32 %v8494_v27, %v11682_v18  ;;  %v3650_v29 = vpop.f32.mrb[167].mxu1 }
 0x7bd   :  { %v3651_v52 = vadd.f32 %v11682_v18, %v3650_v29 }
 0x7be   :  { %8412 = vmatmul.mubr.msk.f32.gmra.mrb[124].mxu0 %vm784_vm2, %v11610_v16 }
 0x7bf   :  { %8416 = vmatprep.mubr.msk.f32.mxu0 %vm784_vm2, %v11005_v1  ;;  %v9264_v43 = vpack.c.bf16 %v3656_v50, %v3651_v52  ;;  %v8497_v4 = vpop.f32.mrb[168].mxu1 }
 0x7c0   :  { %v3666_v46 = vadd.f32 %v8497_v4, %v11682_v18  ;;  %v3660_v53 = vpop.f32.mrb[169].mxu1 }
 0x7c1   :  { %9262 = vmatpush3.bf16.xpose.msk.msra.mxu1 %vm10249_vm3, %v9260_v51  ;;  %v3661_v49 = vadd.f32 %v11682_v18, %v3660_v53 }
 0x7c2   :  { %8417 = vmatmul.mubr.msk.f32.vlgmr.msra.gmra.mrb[108].mxu0 %vm784_vm2, %v11012_v10  ;;  %9263 = vmatprep.subr.bf16.mxu1 %v13128_v38 }
 0x7c3   :  { %8419 = vmatprep.mubr.msk.f32.mxu0 %vm784_vm2, %v11016_v20  ;;  %v9268_v1 = vpack.c.bf16 %v3666_v46, %v3661_v49  ;;  %v8500_v16 = vpop.f32.mrb[170].mxu1  ;;  %9250 = vmatpush3.bf16.msra.mxu0 %v11621_v3 }
 0x7c4   :  { %v3670_v27 = vpop.f32.mrb[171].mxu1  ;;  %9252 = vmatprep.subr.bf16.mxu0 %v9251_v63  ;;  %v3676_v51 = vadd.f32 %v8500_v16, %v11682_v18  ;;  %v3473_v16 = vadd.f32 %v11660_v5, %v11629_v36  ;;  %v9827_v36 = vld [vmem:[%s13095_s2 + $0x8] sm:$0xff] }
 0x7c6   :  { %8420 = vmatmul.mubr.msk.f32.gmra.mrb[110].mxu0 %vm784_vm2, %v11023_v62 }
 0x7c7   :  { %8422 = vmatprep.mubr.msk.f32.mxu0 %vm784_vm2, %v11027_v13  ;;  %v8503_v10 = vpop.f32.mrb[172].mxu1  ;;  %9254 = vmatpush3.bf16.msra.mxu0 %v9251_v63  ;;  %v3671_v63 = vadd.f32 %v11682_v18, %v3670_v27  ;;  %v13133_v27 = vld [vmem:[#allocation11_spill] sm:$0xff] }
 0x7c8   :  { %v3680_v50 = vpop.f32.mrb[173].mxu1  ;;  %9271 = vmatprep.subr.bf16.mxu0 %v13128_v38  ;;  %v11740_v62 = vadd.f32 %v8503_v10, %v11682_v18  ;;  %v9828_v10 = vld [vmem:[%s13095_s2 + $0x10] sm:$0xff] }
 0x7c9   :  { %9266 = vmatpush3.bf16.xpose.msk.msra.mxu1 %vm10249_vm3, %v9264_v43  ;;  %v3681_v20 = vadd.f32 %v11682_v18, %v3680_v50  ;;  %v9829_v50 = vld [vmem:[%s13095_s2 + $0x18] sm:$0xff] }
 0x7ca   :  { %8423 = vmatmul.mubr.msk.f32.gmra.mrb[112].mxu0 %vm784_vm2, %v11034_v59  ;;  %9267 = vmatprep.subr.bf16.mxu1 %v13128_v38 }
 0x7cb   :  { %8425 = vmatprep.mubr.msk.f32.mxu0 %vm784_vm2, %v11036_v2  ;;  %v9272_v13 = vpack.c.bf16 %v3681_v20, %v3676_v51  ;;  %v8506_v3 = vpop.f32.mrb[174].mxu1  ;;  %v3478_v51 = vadd.f32 %v11626_v23, %v11660_v5  ;;  %v3483_v23 = vadd.f32 %v11660_v5, %v11634_v44  ;;  %v9830_v20 = vld [vmem:[%s13095_s2 + $0x20] sm:$0xff]  ;;  %v3488_v44 = vadd.f32 %v11632_v35, %v11660_v5 }
 0x7cc   :  { %v3690_v29 = vpop.f32.mrb[175].mxu1  ;;  %v11748_v59 = vadd.f32 %v8506_v3, %v11682_v18  ;;  %v3493_v35 = vadd.f32 %v11660_v5, %v11639_v57  ;;  %v9833_v3 = vld [vmem:[%s13095_s2 + $0x38] sm:$0xff]  ;;  %v3498_v57 = vadd.f32 %v11637_v40, %v11660_v5  ;;  %v3503_v40 = vadd.f32 %v11660_v5, %v11644_v30  ;;  %v9839_v30 = vld [vmem:[%s13095_s2 + $0x68] sm:$0xff] }
 0x7cd   :  { %v3691_v52 = vadd.f32 %v11682_v18, %v3690_v29  ;;  %v9834_v29 = vld [vmem:[%s13095_s2 + $0x40] sm:$0xff] }
 0x7ce   :  { %8426 = vmatmul.mubr.msk.f32.gmra.mrb[114].mxu0 %vm784_vm2, %v11043_v58 }
 0x7cf   :  { %8428 = vmatprep.mubr.msk.f32.mxu0 %vm784_vm2, %v11051_v11  ;;  %v9276_v60 = vpack.c.bf16 %v3691_v52, %v11740_v62  ;;  %v8509_v2 = vpop.f32.mrb[176].mxu1  ;;  %v9831_v62 = vld [vmem:[%s13095_s2 + $0x28] sm:$0xff] }
 0x7d0   :  { %v11752_v21 = vadd.f32 %v8509_v2, %v11682_v18  ;;  %v3700_v43 = vpop.f32.mrb[177].mxu1  ;;  %v9835_v52 = vld [vmem:[%s13095_s2 + $0x48] sm:$0xff]  ;;  %v9838_v2 = vld [vmem:[%s13095_s2 + $0x60] sm:$0xff] }
 0x7d1   :  { %9270 = vmatpush3.bf16.xpose.msk.msra.mxu1 %vm10249_vm3, %v9268_v1  ;;  %v11757_v4 = vadd.f32 %v11682_v18, %v3700_v43  ;;  %v13129_v1 = vld [vmem:[#allocation7_spill] sm:$0xff]  ;;  %v9840_v43 = vld [vmem:[%s13095_s2 + $0x70] sm:$0xff] }
 0x7d2   :  { %8429 = vmatmul.mubr.msk.f32.gmra.mrb[116].mxu0 %vm784_vm2, %v10987_v26  ;;  %8564 = vmatprep.subr.mxu1 %v13127_v54 }
 0x7d3   :  { %8431 = vmatprep.mubr.msk.f32.mxu0 %vm784_vm2, %v10989_v41  ;;  %v9280_v58 = vpack.c.bf16 %v11757_v4, %v11748_v59  ;;  %v8512_v11 = vpop.f32.mrb[178].mxu1  ;;  %v3463_v41 = vadd.f32 %v11660_v5, %v11623_v15  ;;  %v13132_v15 = vld [vmem:[#allocation10_spill] sm:$0xff]  ;;  %v9836_v59 = vld [vmem:[%s13095_s2 + $0x50] sm:$0xff]  ;;  %v9841_v4 = vld [vmem:[%s13095_s2 + $0x78] sm:$0xff] }
 0x7d4   :  { %v11767_v46 = vadd.f32 %v8512_v11, %v11682_v18  ;;  %v3710_v53 = vpop.f32.mrb[179].mxu1  ;;  %v3508_v11 = vadd.f32 %v11642_v37, %v11660_v5  ;;  %v3523_v37 = vadd.f32 %v11660_v5, %v11654_v24 }
 0x7d5   :  { %v11771_v49 = vadd.f32 %v11682_v18, %v3710_v53  ;;  %v13130_v18 = vld [vmem:[#allocation8_spill] sm:$0xff]  ;;  %v3513_v53 = vadd.f32 %v11660_v5, %v11649_v55  ;;  %v3528_v55 = vadd.f32 %v11652_v48, %v11660_v5 }
 0x7d6   :  { %8432 = vmatmul.mubr.msk.f32.gmra.mrb[118].mxu0 %vm784_vm2, %v10991_v19  ;;  %v3468_v19 = vadd.f32 %v11619_v8, %v11660_v5  ;;  %v9826_v8 = vld [vmem:[%s13095_s2] sm:$0xff] }
 0x7d7   :  { %8434 = vmatprep.mubr.msk.f32.mxu0 %vm784_vm2, %v10993_v45  ;;  %v9284_v26 = vpack.c.bf16 %v11771_v49, %v11752_v21  ;;  %v13131_v45 = vld [vmem:[#allocation9_spill] sm:$0xff]  ;;  %v9842_v21 = vld [vmem:[%s13095_s2 + $0x80] sm:$0xff]  ;;  %v11980_v49 = vld [vmem:[%s13096_s5 + $0xa] ss:$0 sm:$0xff] }
 0x7d9   :  { %8565 = vmatpush3.xpose.msk.msra.mxu1 %vm784_vm2, %v3671_v63 }
 0x7da   :  { %8435 = vmatmul.mubr.msk.f32.gmra.mrb[120].mxu0 %vm784_vm2, %v13129_v1  ;;  %9287 = vmatprep.subr.bf16.mxu1 %v13128_v38 }
 0x7db   :  { %8437 = vmatprep.mubr.msk.f32.mxu0 %vm784_vm2, %v13130_v18 }
 0x7dc   :  { %8567 = vmatmul.mubr.msk.f32.vlgmr.msra.gmra.mrb[180].mxu1 %vm784_vm2, %v3463_v41 }
 0x7dd   :  { %8569 = vmatprep.mubr.msk.f32.mxu1 %vm9899_vm1, %v13127_v54 }
 0x7de   :  { %8438 = vmatmul.mubr.msk.f32.gmra.mrb[122].mxu0 %vm784_vm2, %v13131_v45 }
 0x7df   :  { %8440 = vmatprep.mubr.msk.f32.mxu0 %vm784_vm2, %v13132_v15 }
 0x7e0   :  { %8570 = vmatmul.mubr.msk.f32.gmra.mrb[182].mxu1 %vm784_vm2, %v3468_v19 }
 0x7e1   :  { %8572 = vmatprep.mubr.msk.f32.mxu1 %vm9899_vm1, %v13127_v54 }
 0x7e2   :  { %8441 = vmatmul.mubr.msk.f32.gmra.mrb[124].mxu0 %vm784_vm2, %v13133_v27 }
 0x7e3   :  { %8521 = vmatprep.mubr.msk.f32.mxu0 %vm130_vm0, %v9826_v8 }
 0x7e4   :  { %8573 = vmatmul.mubr.msk.f32.gmra.mrb[184].mxu1 %vm784_vm2, %v3473_v16 }
 0x7e5   :  { %8575 = vmatprep.mubr.msk.f32.mxu1 %vm9899_vm1, %v13127_v54 }
 0x7e6   :  { %8522 = vmatmul.mubr.msk.f32.vlgmr.msra.gmra.mrb[126].mxu0 %vm130_vm0, %v9827_v36 }
 0x7e7   :  { %9274 = vmatpush3.bf16.xpose.msk.msra.mxu0 %vm10249_vm3, %v9272_v13  ;;  %8524 = vmatprep.mubr.msk.f32.mxu0 %vm130_vm0, %v9828_v10  ;;  %v9832_v13 = vld [vmem:[%s13095_s2 + $0x30] sm:$0xff] }
 0x7e8   :  { %8576 = vmatmul.mubr.msk.f32.gmra.mrb[186].mxu1 %vm784_vm2, %v3478_v51  ;;  %9275 = vmatprep.subr.bf16.mxu0 %v13128_v38 }
 0x7e9   :  { %8578 = vmatprep.mubr.msk.f32.mxu1 %vm9899_vm1, %v13127_v54 }
 0x7ea   :  { %8525 = vmatmul.mubr.msk.f32.gmra.mrb[128].mxu0 %vm130_vm0, %v9829_v50 }
 0x7eb   :  { %8527 = vmatprep.mubr.msk.f32.mxu0 %vm130_vm0, %v9830_v20 }
 0x7ec   :  { %8579 = vmatmul.mubr.msk.f32.gmra.mrb[188].mxu1 %vm784_vm2, %v3483_v23 }
 0x7ed   :  { %8581 = vmatprep.mubr.msk.f32.mxu1 %vm9899_vm1, %v13127_v54 }
 0x7ee   :  { %8528 = vmatmul.mubr.msk.f32.gmra.mrb[130].mxu0 %vm130_vm0, %v9831_v62 }
 0x7ef   :  { %9278 = vmatpush3.bf16.xpose.msk.msra.mxu0 %vm10249_vm3, %v9276_v60  ;;  %8530 = vmatprep.mubr.msk.f32.mxu0 %vm130_vm0, %v9832_v13  ;;  %v9837_v60 = vld [vmem:[%s13095_s2 + $0x58] sm:$0xff] }
 0x7f0   :  { %8582 = vmatmul.mubr.msk.f32.gmra.mrb[190].mxu1 %vm784_vm2, %v3488_v44  ;;  %9279 = vmatprep.subr.bf16.mxu0 %v13128_v38 }
 0x7f1   :  { %8584 = vmatprep.mubr.msk.f32.mxu1 %vm9899_vm1, %v13127_v54 }
 0x7f2   :  { %8531 = vmatmul.mubr.msk.f32.gmra.mrb[132].mxu0 %vm130_vm0, %v9833_v3 }
 0x7f3   :  { %8533 = vmatprep.mubr.msk.f32.mxu0 %vm130_vm0, %v9834_v29 }
 0x7f4   :  { %8585 = vmatmul.mubr.msk.f32.gmra.mrb[192].mxu1 %vm784_vm2, %v3493_v35 }
 0x7f5   :  { %8587 = vmatprep.mubr.msk.f32.mxu1 %vm9899_vm1, %v13127_v54 }
 0x7f6   :  { %8534 = vmatmul.mubr.msk.f32.gmra.mrb[134].mxu0 %vm130_vm0, %v9835_v52 }
 0x7f7   :  { %9282 = vmatpush3.bf16.xpose.msk.msra.mxu0 %vm10249_vm3, %v9280_v58  ;;  %8536 = vmatprep.mubr.msk.f32.mxu0 %vm130_vm0, %v9836_v59  ;;  %v9843_v58 = vld [vmem:[%s13095_s2 + $0x88] sm:$0xff] }
 0x7f8   :  { %8588 = vmatmul.mubr.msk.f32.gmra.mrb[194].mxu1 %vm784_vm2, %v3498_v57  ;;  %9283 = vmatprep.subr.bf16.mxu0 %v13128_v38 }
 0x7f9   :  { %8590 = vmatprep.mubr.msk.f32.mxu1 %vm9899_vm1, %v13127_v54 }
 0x7fa   :  { %8537 = vmatmul.mubr.msk.f32.gmra.mrb[136].mxu0 %vm130_vm0, %v9837_v60 }
 0x7fb   :  { %8539 = vmatprep.mubr.msk.f32.mxu0 %vm130_vm0, %v9838_v2 }
 0x7fc   :  { %8591 = vmatmul.mubr.msk.f32.gmra.mrb[196].mxu1 %vm784_vm2, %v3503_v40 }
 0x7fd   :  { %8656 = vmatprep.mubr.msk.f32.mxu1 %vm9899_vm1, %v13127_v54 }
 0x7fe   :  { %8540 = vmatmul.mubr.msk.f32.gmra.mrb[138].mxu0 %vm130_vm0, %v9839_v30 }
 0x7ff   :  { %9286 = vmatpush3.bf16.xpose.msk.msra.mxu0 %vm10249_vm3, %v9284_v26  ;;  %8542 = vmatprep.mubr.msk.f32.mxu0 %vm130_vm0, %v9840_v43 }
 0x800   :  { %8609 = vmatprep.subr.mxu0 %v13127_v54 }
 0x802   :  { %8543 = vmatmul.mubr.msk.f32.gmra.mrb[140].mxu0 %vm130_vm0, %v9841_v4 }
 0x803   :  { %8545 = vmatprep.mubr.msk.f32.mxu0 %vm130_vm0, %v9842_v21 }
 0x806   :  { %8546 = vmatmul.mubr.msk.f32.gmra.mrb[142].mxu0 %vm130_vm0, %v9843_v58 }
 0x807   :  { %8610 = vmatpush3.xpose.msk.msra.mxu0 %vm784_vm2, %v11767_v46  ;;  %8611 = vmatprep.mubr.msk.f32.mxu0 %vm9899_vm1, %v13127_v54  ;;  %v3518_v46 = vadd.f32 %v11647_v6, %v11660_v5 }
 0x808   :  { %9299 = vmatprep.subr.bf16.mxu0 %v13128_v38 }
 0x80a   :  { %8612 = vmatmul.mubr.msk.f32.vlgmr.msra.gmra.mrb[144].mxu0 %vm784_vm2, %v3508_v11 }
 0x80b   :  { %8614 = vmatprep.mubr.msk.f32.mxu0 %vm9899_vm1, %v13127_v54 }
 0x80e   :  { %8615 = vmatmul.mubr.msk.f32.gmra.mrb[146].mxu0 %vm784_vm2, %v3513_v53 }
 0x80f   :  { %8617 = vmatprep.mubr.msk.f32.mxu0 %vm9899_vm1, %v13127_v54 }
 0x812   :  { %8618 = vmatmul.mubr.msk.f32.gmra.mrb[148].mxu0 %vm784_vm2, %v3518_v46 }
 0x813   :  { %8620 = vmatprep.mubr.msk.f32.mxu0 %vm9899_vm1, %v13127_v54 }
 0x816   :  { %8621 = vmatmul.mubr.msk.f32.gmra.mrb[150].mxu0 %vm784_vm2, %v3523_v37 }
 0x817   :  { %8623 = vmatprep.mubr.msk.f32.mxu0 %vm9899_vm1, %v13127_v54 }
 0x81a   :  { %8624 = vmatmul.mubr.msk.f32.gmra.mrb[152].mxu0 %vm784_vm2, %v3528_v55 }
 0x81b   :  { %8626 = vmatprep.mubr.msk.f32.mxu0 %vm9899_vm1, %v13127_v54 }
 0x81e   :  { %8627 = vmatmul.mubr.msk.f32.gmra.mrb[154].mxu0 %vm784_vm2, %v11667_v56 }
 0x81f   :  { %8629 = vmatprep.mubr.msk.f32.mxu0 %vm9899_vm1, %v13127_v54 }
 0x822   :  { %8630 = vmatmul.mubr.msk.f32.gmra.mrb[156].mxu0 %vm784_vm2, %v11663_v0 }
 0x823   :  { %8632 = vmatprep.mubr.msk.f32.mxu0 %vm9899_vm1, %v13127_v54 }
 0x826   :  { %8633 = vmatmul.mubr.msk.f32.gmra.mrb[158].mxu0 %vm784_vm2, %v11677_v31 }
 0x827   :  { %8635 = vmatprep.mubr.msk.f32.mxu0 %vm9899_vm1, %v13127_v54 }
 0x82a   :  { %8636 = vmatmul.mubr.msk.f32.gmra.mrb[160].mxu0 %vm784_vm2, %v11674_v14 }
 0x82b   :  { %8701 = vmatprep.mubr.msk.f32.mxu0 %vm9899_vm1, %v13127_v54 }
 0x8af   :  { %v4007_v56 = vpop.f32.mrb[180].mxu1 }
 0x8b0   :  { %v11969_v6 = vmul.f32 0.35355338, %v4007_v56  ;;  %v8568_v48 = vpop.f32.mrb[181].mxu1 }
 0x8b2   :  { %v4233_v0 = vsel %vm1131_vm4, %v11969_v6, -inf }
 0x8b3   :  { %4234 = vmax.xlane.f32.xlu0 %v4233_v0  ;;  %v4012_v24 = vpop.f32.mrb[182].mxu1 }
 0x8b4   :  { %v11973_v5 = vmul.f32 0.35355338, %v4012_v24  ;;  %v8571_v31 = vpop.f32.mrb[183].mxu1 }
 0x8b6   :  { %v4236_v63 = vsel %vm1131_vm4, %v11973_v5, -inf }
 0x8b7   :  { %4237 = vmax.xlane.f32.xlu1 %v4236_v63  ;;  %v4017_v14 = vpop.f32.mrb[184].mxu1 }
 0x8b8   :  { %v11982_v26 = vmul.f32 0.35355338, %v4017_v14  ;;  %v8574_v41 = vpop.f32.mrb[185].mxu1 }
 0x8b9   :  { %v8523_v1 = vpop.f32.mrb[126].mxu0 }
 0x8ba   :  { %v4239_v18 = vsel %vm1131_vm4, %v11982_v26, -inf  ;;  %v3804_v19 = vadd.f32 %v8523_v1, %v11980_v49  ;;  %v3798_v45 = vpop.f32.mrb[127].mxu0 }
 0x8bb   :  { %4240 = vmax.xlane.f32.xlu0 %v4239_v18  ;;  %v4022_v15 = vpop.f32.mrb[186].mxu1  ;;  %v3799_v16 = vadd.f32 %v11980_v49, %v3798_v45 }
 0x8bc   :  { %v11988_v27 = vmul.f32 0.35355338, %v4022_v15  ;;  %v8577_v8 = vpop.f32.mrb[187].mxu1 }
 0x8bd   :  { %v9288_v51 = vpack.c.bf16 %v3804_v19, %v3799_v16  ;;  %v8526_v36 = vpop.f32.mrb[128].mxu0 }
 0x8be   :  { %v4242_v10 = vsel %vm1131_vm4, %v11988_v27, -inf  ;;  %v3814_v23 = vadd.f32 %v8526_v36, %v11980_v49  ;;  %v3808_v50 = vpop.f32.mrb[129].mxu0 }
 0x8bf   :  { %4243 = vmax.xlane.f32.xlu1 %v4242_v10  ;;  %v4027_v20 = vpop.f32.mrb[188].mxu1  ;;  %v3809_v44 = vadd.f32 %v11980_v49, %v3808_v50  ;;  %9289 = vmatpush3.bf16.msra.mxu1 %v9288_v51 }
 0x8c0   :  { %v11994_v62 = vmul.f32 0.35355338, %v4027_v20  ;;  %v8580_v13 = vpop.f32.mrb[189].mxu1  ;;  %9290 = vmatprep.subr.bf16.mxu1 %v13128_v38 }
 0x8c1   :  { %v9291_v35 = vpack.c.bf16 %v3814_v23, %v3809_v44  ;;  %v8529_v3 = vpop.f32.mrb[130].mxu0 }
 0x8c2   :  { %v4245_v29 = vsel %vm1131_vm4, %v11994_v62, -inf  ;;  %v3824_v57 = vadd.f32 %v8529_v3, %v11980_v49  ;;  %v3818_v52 = vpop.f32.mrb[131].mxu0 }
 0x8c3   :  { %4246 = vmax.xlane.f32.xlu0 %v4245_v29  ;;  %v4032_v59 = vpop.f32.mrb[190].mxu1  ;;  %v3819_v40 = vadd.f32 %v11980_v49, %v3818_v52  ;;  %9292 = vmatpush3.bf16.msra.mxu1 %v9291_v35 }
 0x8c4   :  { %v12001_v60 = vmul.f32 0.35355338, %v4032_v59  ;;  %v8583_v2 = vpop.f32.mrb[191].mxu1  ;;  %9293 = vmatprep.subr.bf16.mxu1 %v13128_v38 }
 0x8c5   :  { %v9294_v30 = vpack.c.bf16 %v3824_v57, %v3819_v40  ;;  %v8532_v43 = vpop.f32.mrb[132].mxu0 }
 0x8c6   :  { %v4248_v4 = vsel %vm1131_vm4, %v12001_v60, -inf  ;;  %v3834_v21 = vadd.f32 %v8532_v43, %v11980_v49  ;;  %v3828_v58 = vpop.f32.mrb[133].mxu0 }
 0x8c7   :  { %4249 = vmax.xlane.f32.xlu1 %v4248_v4  ;;  %v4037_v11 = vpop.f32.mrb[192].mxu1  ;;  %v3829_v53 = vadd.f32 %v11980_v49, %v3828_v58  ;;  %9295 = vmatpush3.bf16.msra.mxu1 %v9294_v30 }
 0x8c8   :  { %v12008_v46 = vmul.f32 0.35355338, %v4037_v11  ;;  %v8586_v37 = vpop.f32.mrb[193].mxu1  ;;  %9296 = vmatprep.subr.bf16.mxu1 %v13128_v38 }
 0x8c9   :  { %v9297_v55 = vpack.c.bf16 %v3834_v21, %v3829_v53  ;;  %v8535_v56 = vpop.f32.mrb[134].mxu0 }
 0x8ca   :  { %v4251_v48 = vsel %vm1131_vm4, %v12008_v46, -inf  ;;  %v3838_v0 = vpop.f32.mrb[135].mxu0  ;;  %v3844_v41 = vadd.f32 %v8535_v56, %v11980_v49 }
 0x8cb   :  { %4252 = vmax.xlane.f32.xlu0 %v4251_v48  ;;  %v4042_v24 = vpop.f32.mrb[194].mxu1  ;;  %v3839_v31 = vadd.f32 %v11980_v49, %v3838_v0  ;;  %9298 = vmatpush3.bf16.msra.mxu1 %v9297_v55 }
 0x8cc   :  { %v12014_v63 = vmul.f32 0.35355338, %v4042_v24  ;;  %v8589_v14 = vpop.f32.mrb[195].mxu1  ;;  %8654 = vmatprep.subr.mxu1 %v13127_v54 }
 0x8cd   :  { %v8538_v1 = vpop.f32.mrb[136].mxu0 }
 0x8ce   :  { %v4254_v18 = vsel %vm1131_vm4, %v12014_v63, -inf  ;;  %v3848_v19 = vpop.f32.mrb[137].mxu0  ;;  %v3854_v51 = vadd.f32 %v8538_v1, %v11980_v49 }
 0x8cf   :  { %4255 = vmax.xlane.f32.xlu1 %v4254_v18  ;;  %v4047_v45 = vpop.f32.mrb[196].mxu1  ;;  %v3849_v15 = vadd.f32 %v11980_v49, %v3848_v19  ;;  %8655 = vmatpush3.msra.mxu1 %v3839_v31 }
 0x8d0   :  { %v12021_v16 = vmul.f32 0.35355338, %v4047_v45  ;;  %v8592_v8 = vpop.f32.mrb[197].mxu1 }
 0x8d1   :  { %v9300_v36 = vpack.c.bf16 %v3849_v15, %v3844_v41  ;;  %v8541_v10 = vpop.f32.mrb[138].mxu0 }
 0x8d2   :  { %v4257_v23 = vsel %vm1131_vm4, %v12021_v16, -inf  ;;  %v3858_v50 = vpop.f32.mrb[139].mxu0  ;;  %v3864_v44 = vadd.f32 %v8541_v10, %v11980_v49 }
 0x8d3   :  { %4258 = vmax.xlane.f32.xlu0 %v4257_v23  ;;  %v3859_v20 = vadd.f32 %v11980_v49, %v3858_v50  ;;  %9301 = vmatpush3.bf16.msra.mxu0 %v9300_v36 }
 0x8d4   :  { %9302 = vmatprep.subr.bf16.mxu0 %v13128_v38 }
 0x8d5   :  { %v9303_v13 = vpack.c.bf16 %v3859_v20, %v3854_v51  ;;  %v8544_v35 = vpop.f32.mrb[140].mxu0 }
 0x8d6   :  { %v3868_v3 = vpop.f32.mrb[141].mxu0  ;;  %v3874_v57 = vadd.f32 %v8544_v35, %v11980_v49 }
 0x8d7   :  { %v3869_v29 = vadd.f32 %v11980_v49, %v3868_v3  ;;  %9304 = vmatpush3.bf16.msra.mxu0 %v9303_v13 }
 0x8d8   :  { %9305 = vmatprep.subr.bf16.mxu0 %v13128_v38 }
 0x8d9   :  { %v9306_v52 = vpack.c.bf16 %v3869_v29, %v3864_v44  ;;  %v8547_v59 = vpop.f32.mrb[142].mxu0 }
 0x8da   :  { %v3878_v40 = vpop.f32.mrb[143].mxu0  ;;  %v3884_v58 = vadd.f32 %v8547_v59, %v11980_v49 }
 0x8db   :  { %v3879_v2 = vadd.f32 %v11980_v49, %v3878_v40  ;;  %9307 = vmatpush3.bf16.msra.mxu0 %v9306_v52 }
 0x8dc   :  { %9308 = vmatprep.subr.bf16.mxu0 %v13128_v38 }
 0x8dd   :  { %v9309_v30 = vpack.c.bf16 %v3879_v2, %v3874_v57  ;;  %v4171_v43 = vpop.f32.mrb[144].mxu0 }
 0x8de   :  { %v12034_v4 = vmul.f32 0.35355338, %v4171_v43  ;;  %v8613_v21 = vpop.f32.mrb[145].mxu0 }
 0x8df   :  { %9310 = vmatpush3.bf16.msra.mxu0 %v9309_v30 }
 0x8e0   :  { %v4260_v11 = vsel %vm1131_vm4, %v12034_v4, -inf  ;;  %8699 = vmatprep.subr.mxu0 %v13127_v54 }
 0x8e1   :  { %4261 = vmax.xlane.f32.xlu1 %v4260_v11  ;;  %v4176_v53 = vpop.f32.mrb[146].mxu0 }
 0x8e2   :  { %v12040_v37 = vmul.f32 0.35355338, %v4176_v53  ;;  %v8616_v55 = vpop.f32.mrb[147].mxu0 }
 0x8e3   :  { %8700 = vmatpush3.msra.mxu0 %v3884_v58 }
 0x8e4   :  { %v4263_v56 = vsel %vm1131_vm4, %v12040_v37, -inf }
 0x8e5   :  { %4264 = vmax.xlane.f32.xlu0 %v4263_v56  ;;  %v4181_v48 = vpop.f32.mrb[148].mxu0 }
 0x8e6   :  { %v12044_v0 = vmul.f32 0.35355338, %v4181_v48  ;;  %v8619_v49 = vpop.f32.mrb[149].mxu0 }
 0x8e8   :  { %v4266_v24 = vsel %vm1131_vm4, %v12044_v0, -inf }
 0x8e9   :  { %4267 = vmax.xlane.f32.xlu1 %v4266_v24  ;;  %v4186_v31 = vpop.f32.mrb[150].mxu0 }
 0x8ea   :  { %v12048_v14 = vmul.f32 0.35355338, %v4186_v31  ;;  %v8622_v41 = vpop.f32.mrb[151].mxu0 }
 0x8ec   :  { %v4269_v1 = vsel %vm1131_vm4, %v12048_v14, -inf }
 0x8ed   :  { %4270 = vmax.xlane.f32.xlu0 %v4269_v1  ;;  %v4191_v18 = vpop.f32.mrb[152].mxu0 }
 0x8ee   :  { %v12052_v19 = vmul.f32 0.35355338, %v4191_v18  ;;  %v8625_v45 = vpop.f32.mrb[153].mxu0 }
 0x8f0   :  { %v4272_v15 = vsel %vm1131_vm4, %v12052_v19, -inf }
 0x8f1   :  { %4273 = vmax.xlane.f32.xlu1 %v4272_v15  ;;  %v4196_v8 = vpop.f32.mrb[154].mxu0 }
 0x8f2   :  { %v12056_v51 = vmul.f32 0.35355338, %v4196_v8  ;;  %v8628_v36 = vpop.f32.mrb[155].mxu0 }
 0x8f4   :  { %v4275_v10 = vsel %vm1131_vm4, %v12056_v51, -inf }
 0x8f5   :  { %4276 = vmax.xlane.f32.xlu0 %v4275_v10  ;;  %v4201_v23 = vpop.f32.mrb[156].mxu0 }
 0x8f6   :  { %v12060_v50 = vmul.f32 0.35355338, %v4201_v23  ;;  %v8631_v20 = vpop.f32.mrb[157].mxu0 }
 0x8f8   :  { %v4278_v44 = vsel %vm1131_vm4, %v12060_v50, -inf }
 0x8f9   :  { %4279 = vmax.xlane.f32.xlu1 %v4278_v44  ;;  %v4206_v13 = vpop.f32.mrb[158].mxu0 }
 0x8fa   :  { %v12064_v35 = vmul.f32 0.35355338, %v4206_v13  ;;  %v8634_v3 = vpop.f32.mrb[159].mxu0 }
 0x8fc   :  { %v4281_v29 = vsel %vm1131_vm4, %v12064_v35, -inf }
 0x8fd   :  { %4282 = vmax.xlane.f32.xlu0 %v4281_v29  ;;  %v4211_v57 = vpop.f32.mrb[160].mxu0 }
 0x8fe   :  { %v12068_v52 = vmul.f32 0.35355338, %v4211_v57  ;;  %v8637_v59 = vpop.f32.mrb[161].mxu0 }
 0x900   :  { %v4284_v40 = vsel %vm1131_vm4, %v12068_v52, -inf }
 0x901   :  { %4285 = vmax.xlane.f32.xlu0 %v4284_v40 }
 0x940   :  { %v4235_v2 = vpop.xlane.xlu0 %4234 }
 0x941   :  { %v4287_v30 = vsub.f32 %v11969_v6, %v4235_v2 }
 0x943   :  { %v4305_v43 = vmul.f32 1.442695, %v4287_v30 }
 0x944   :  { %v4238_v21 = vpop.xlane.xlu1 %4237 }
 0x945   :  { %9592 = vpow2.f32 %v4305_v43  ;;  %v4288_v58 = vsub.f32 %v11973_v5, %v4238_v21 }
 0x947   :  { %v4307_v11 = vmul.f32 1.442695, %v4288_v58 }
 0x948   :  { %v4241_v53 = vpop.xlane.xlu0 %4240 }
 0x949   :  { %9594 = vpow2.f32 %v4307_v11  ;;  %v4289_v55 = vsub.f32 %v11982_v26, %v4241_v53 }
 0x94b   :  { %v4309_v56 = vmul.f32 1.442695, %v4289_v55  ;;  %v6997_v55 = vld [vmem:[%s13092_s4 + $0x60] sm:$0xff] }
 0x94c   :  { %v4244_v48 = vpop.xlane.xlu1 %4243 }
 0x94d   :  { %9596 = vpow2.f32 %v4309_v56  ;;  %v4290_v49 = vsub.f32 %v11988_v27, %v4244_v48  ;;  %v6998_v56 = vld [vmem:[%s13092_s4 + $0x68] sm:$0xff] }
 0x94f   :  { %v12076_v24 = vpop.eup %9592  ;;  %v4311_v31 = vmul.f32 1.442695, %v4290_v49  ;;  %v12124_v49 = vpack.c.bf16 %v6998_v56, %v6997_v55 }
 0x950   :  { %v4247_v41 = vpop.xlane.xlu0 %4246  ;;  %v4341_v6 = vsel %vm1131_vm4, %v12076_v24, 0.0 }
 0x951   :  { %9598 = vpow2.f32 %v4311_v31  ;;  %v4291_v5 = vsub.f32 %v11994_v62, %v4247_v41  ;;  %4342 = vadd.xlane.f32.xlu1 %v4341_v6  ;;  %9312 = vmatprep.subr.bf16.mxu1 %v12124_v49 }
 0x953   :  { %v12081_v1 = vpop.eup %9594  ;;  %v4313_v18 = vmul.f32 1.442695, %v4291_v5 }
 0x954   :  { %v4250_v26 = vpop.xlane.xlu1 %4249  ;;  %v4344_v45 = vsel %vm1131_vm4, %v12081_v1, 0.0 }
 0x955   :  { %9600 = vpow2.f32 %v4313_v18  ;;  %v4292_v27 = vsub.f32 %v12001_v60, %v4250_v26  ;;  %4345 = vadd.xlane.f32.xlu1 %v4344_v45 }
 0x957   :  { %v12086_v15 = vpop.eup %9596  ;;  %v4315_v8 = vmul.f32 1.442695, %v4292_v27 }
 0x958   :  { %v4253_v36 = vpop.xlane.xlu0 %4252  ;;  %v4347_v10 = vsel %vm1131_vm4, %v12086_v15, 0.0 }
 0x959   :  { %9602 = vpow2.f32 %v4315_v8  ;;  %v4293_v62 = vsub.f32 %v12008_v46, %v4253_v36  ;;  %4348 = vadd.xlane.f32.xlu0 %v4347_v10 }
 0x95b   :  { %v12091_v23 = vpop.eup %9598  ;;  %v4317_v20 = vmul.f32 1.442695, %v4293_v62 }
 0x95c   :  { %v4256_v44 = vpop.xlane.xlu1 %4255  ;;  %v4350_v13 = vsel %vm1131_vm4, %v12091_v23, 0.0 }
 0x95d   :  { %9604 = vpow2.f32 %v4317_v20  ;;  %v4294_v60 = vsub.f32 %v12014_v63, %v4256_v44  ;;  %4351 = vadd.xlane.f32.xlu1 %v4350_v13 }
 0x95f   :  { %v12096_v3 = vpop.eup %9600  ;;  %v4319_v29 = vmul.f32 1.442695, %v4294_v60 }
 0x960   :  { %v4259_v57 = vpop.xlane.xlu0 %4258  ;;  %v4353_v59 = vsel %vm1131_vm4, %v12096_v3, 0.0 }
 0x961   :  { %9606 = vpow2.f32 %v4319_v29  ;;  %v4295_v46 = vsub.f32 %v12021_v16, %v4259_v57  ;;  %4354 = vadd.xlane.f32.xlu0 %v4353_v59 }
 0x963   :  { %v12101_v40 = vpop.eup %9602  ;;  %v4321_v2 = vmul.f32 1.442695, %v4295_v46 }
 0x964   :  { %v4356_v30 = vsel %vm1131_vm4, %v12101_v40, 0.0 }
 0x965   :  { %9608 = vpow2.f32 %v4321_v2  ;;  %4357 = vadd.xlane.f32.xlu1 %v4356_v30 }
 0x967   :  { %v12105_v63 = vpop.eup %9604 }
 0x968   :  { %v4359_v43 = vsel %vm1131_vm4, %v12105_v63, 0.0 }
 0x969   :  { %4360 = vadd.xlane.f32.xlu0 %v4359_v43 }
 0x96b   :  { %v12109_v21 = vpop.eup %9606 }
 0x96c   :  { %v4362_v16 = vsel %vm1131_vm4, %v12109_v21, 0.0 }
 0x96d   :  { %4363 = vadd.xlane.f32.xlu1 %v4362_v16 }
 0x96e   :  { %v4262_v58 = vpop.xlane.xlu1 %4261 }
 0x96f   :  { %v12113_v11 = vpop.eup %9608  ;;  %v4296_v53 = vsub.f32 %v12034_v4, %v4262_v58 }
 0x970   :  { %v4365_v48 = vsel %vm1131_vm4, %v12113_v11, 0.0 }
 0x971   :  { %v4323_v31 = vmul.f32 1.442695, %v4296_v53  ;;  %4366 = vadd.xlane.f32.xlu0 %v4365_v48 }
 0x972   :  { %v4265_v41 = vpop.xlane.xlu0 %4264 }
 0x973   :  { %9610 = vpow2.f32 %v4323_v31  ;;  %v4297_v4 = vsub.f32 %v12040_v37, %v4265_v41 }
 0x975   :  { %v4325_v6 = vmul.f32 1.442695, %v4297_v4 }
 0x976   :  { %v4268_v5 = vpop.xlane.xlu1 %4267 }
 0x977   :  { %9612 = vpow2.f32 %v4325_v6  ;;  %v4298_v18 = vsub.f32 %v12044_v0, %v4268_v5 }
 0x979   :  { %v4327_v26 = vmul.f32 1.442695, %v4298_v18 }
 0x97a   :  { %v4271_v45 = vpop.xlane.xlu0 %4270 }
 0x97b   :  { %9614 = vpow2.f32 %v4327_v26  ;;  %v4299_v27 = vsub.f32 %v12048_v14, %v4271_v45 }
 0x97d   :  { %v12130_v8 = vpop.eup %9610  ;;  %v4329_v36 = vmul.f32 1.442695, %v4299_v27 }
 0x97e   :  { %v4274_v10 = vpop.xlane.xlu1 %4273  ;;  %v4368_v62 = vsel %vm1131_vm4, %v12130_v8, 0.0 }
 0x97f   :  { %9616 = vpow2.f32 %v4329_v36  ;;  %v4300_v37 = vsub.f32 %v12052_v19, %v4274_v10  ;;  %4369 = vadd.xlane.f32.xlu1 %v4368_v62  ;;  %v6999_v36 = vld [vmem:[%s13092_s4 + $0x70] sm:$0xff]  ;;  %v7000_v10 = vld [vmem:[%s13092_s4 + $0x78] sm:$0xff] }
 0x981   :  { %v12135_v20 = vpop.eup %9612  ;;  %v4331_v44 = vmul.f32 1.442695, %v4300_v37 }
 0x982   :  { %v4277_v0 = vpop.xlane.xlu0 %4276  ;;  %v4371_v13 = vsel %vm1131_vm4, %v12135_v20, 0.0 }
 0x983   :  { %9618 = vpow2.f32 %v4331_v44  ;;  %v4301_v14 = vsub.f32 %v12056_v51, %v4277_v0  ;;  %4372 = vadd.xlane.f32.xlu0 %v4371_v13  ;;  %v9315_v0 = vpack.c.bf16 %v7000_v10, %v6999_v36 }
 0x985   :  { %v12140_v60 = vpop.eup %9614  ;;  %v4333_v29 = vmul.f32 1.442695, %v4301_v14  ;;  %v7021_v14 = vld [vmem:[%s13092_s4 + $0xe0] sm:$0xff] }
 0x986   :  { %v4280_v57 = vpop.xlane.xlu1 %4279  ;;  %v4374_v59 = vsel %vm1131_vm4, %v12140_v60, 0.0 }
 0x987   :  { %9620 = vpow2.f32 %v4333_v29  ;;  %v4302_v19 = vsub.f32 %v12060_v50, %v4280_v57  ;;  %4375 = vadd.xlane.f32.xlu1 %v4374_v59  ;;  %v7022_v29 = vld [vmem:[%s13092_s4 + $0xe8] sm:$0xff] }
 0x989   :  { %v12145_v46 = vpop.eup %9616  ;;  %v4335_v2 = vmul.f32 1.442695, %v4302_v19  ;;  %v9319_v19 = vpack.c.bf16 %v7022_v29, %v7021_v14  ;;  %v9847_v29 = vld [vmem:[%s13093_s0 + $0x18] sm:$0xff] }
 0x98a   :  { %v4283_v30 = vpop.xlane.xlu0 %4282  ;;  %v4377_v43 = vsel %vm1131_vm4, %v12145_v46, 0.0 }
 0x98b   :  { %9622 = vpow2.f32 %v4335_v2  ;;  %v4303_v51 = vsub.f32 %v12064_v35, %v4283_v30  ;;  %4378 = vadd.xlane.f32.xlu0 %v4377_v43 }
 0x98d   :  { %v12150_v16 = vpop.eup %9618  ;;  %v4337_v58 = vmul.f32 1.442695, %v4303_v51 }
 0x98e   :  { %v4286_v53 = vpop.xlane.xlu0 %4285  ;;  %v4380_v55 = vsel %vm1131_vm4, %v12150_v16, 0.0 }
 0x98f   :  { %9624 = vpow2.f32 %v4337_v58  ;;  %v4304_v50 = vsub.f32 %v12068_v52, %v4286_v53  ;;  %4381 = vadd.xlane.f32.xlu1 %v4380_v55 }
 0x991   :  { %v12155_v56 = vpop.eup %9620  ;;  %v4339_v48 = vmul.f32 1.442695, %v4304_v50 }
 0x992   :  { %v4383_v31 = vsel %vm1131_vm4, %v12155_v56, 0.0 }
 0x993   :  { %9626 = vpow2.f32 %v4339_v48  ;;  %4384 = vadd.xlane.f32.xlu0 %v4383_v31 }
 0x995   :  { %v12159_v35 = vpop.eup %9622 }
 0x996   :  { %v4386_v41 = vsel %vm1131_vm4, %v12159_v35, 0.0 }
 0x997   :  { %4387 = vadd.xlane.f32.xlu1 %v4386_v41 }
 0x999   :  { %v12163_v4 = vpop.eup %9624 }
 0x99a   :  { %v4389_v52 = vsel %vm1131_vm4, %v12163_v4, 0.0 }
 0x99b   :  { %4390 = vadd.xlane.f32.xlu0 %v4389_v52 }
 0x99d   :  { %v12167_v6 = vpop.eup %9626 }
 0x99e   :  { %v4392_v5 = vsel %vm1131_vm4, %v12167_v6, 0.0 }
 0x99f   :  { %4393 = vadd.xlane.f32.xlu1 %v4392_v5 }
 0x9de   :  { %v4343_v18 = vpop.xlane.xlu1 %4342 }
 0x9df   :  { %9628 = vrcp.f32 %v4343_v18 }
 0x9e2   :  { %v4346_v26 = vpop.xlane.xlu1 %4345 }
 0x9e3   :  { %9630 = vrcp.f32 %v4346_v26 }
 0x9e6   :  { %v4349_v45 = vpop.xlane.xlu0 %4348 }
 0x9e7   :  { %9632 = vrcp.f32 %v4349_v45 }
 0x9e9   :  { %v9629_v27 = vpop.eup %9628 }
 0x9ea   :  { %v4413_v62 = vmul.f32 %v9629_v27, %v12076_v24  ;;  %v4352_v37 = vpop.xlane.xlu1 %4351 }
 0x9eb   :  { %9634 = vrcp.f32 %v4352_v37 }
 0x9ec   :  { %v4431_v44 = vmul.f32 %v10670_v17, %v4413_v62  ;;  %v7024_v62 = vld [vmem:[%s13092_s4 + $0xf8] sm:$0xff] }
 0x9ed   :  { %v9631_v13 = vpop.eup %9630 }
 0x9ee   :  { %v4355_v57 = vpop.xlane.xlu0 %4354  ;;  %8657 = vmatmul.mubr.msk.f32.vlgmr.msra.gmra.mrb[198].mxu1 %vm1131_vm4, %v4431_v44  ;;  %v4414_v59 = vmul.f32 %v9631_v13, %v12081_v1  ;;  %v9846_v13 = vld [vmem:[%s13093_s0 + $0x10] sm:$0xff] }
 0x9ef   :  { %9636 = vrcp.f32 %v4355_v57  ;;  %8659 = vmatprep.mubr.msk.f32.mxu1 %vm9899_vm1, %v13127_v54  ;;  %9314 = vmatpush3.bf16.msra.mxu1 %v12124_v49 }
 0x9f0   :  { %v4432_v24 = vmul.f32 %v10684_v42, %v4414_v59  ;;  %9316 = vmatprep.subr.bf16.mxu1 %v9315_v0  ;;  %v9848_v59 = vld [vmem:[%s13093_s0 + $0x20] sm:$0xff] }
 0x9f1   :  { %v9633_v2 = vpop.eup %9632 }
 0x9f2   :  { %v4358_v30 = vpop.xlane.xlu1 %4357  ;;  %8660 = vmatmul.mubr.msk.f32.gmra.mrb[200].mxu1 %vm1131_vm4, %v4432_v24  ;;  %v4415_v43 = vmul.f32 %v9633_v2, %v12086_v15 }
 0x9f3   :  { %9638 = vrcp.f32 %v4358_v30  ;;  %8662 = vmatprep.mubr.msk.f32.mxu1 %vm9899_vm1, %v13127_v54  ;;  %9318 = vmatpush3.bf16.msra.mxu1 %v9315_v0  ;;  %v9845_v0 = vld [vmem:[%s13093_s0 + $0x8] sm:$0xff] }
 0x9f4   :  { %v4433_v1 = vmul.f32 %v10701_v34, %v4415_v43  ;;  %9320 = vmatprep.subr.bf16.mxu1 %v9319_v19  ;;  %v9849_v30 = vld [vmem:[%s13093_s0 + $0x28] sm:$0xff] }
 0x9f5   :  { %v9635_v51 = vpop.eup %9634 }
 0x9f6   :  { %v4361_v49 = vpop.xlane.xlu0 %4360  ;;  %8663 = vmatmul.mubr.msk.f32.gmra.mrb[202].mxu1 %vm1131_vm4, %v4433_v1  ;;  %v4416_v58 = vmul.f32 %v9635_v51, %v12091_v23  ;;  %v9850_v1 = vld [vmem:[%s13093_s0 + $0x30] sm:$0xff] }
 0x9f7   :  { %9640 = vrcp.f32 %v4361_v49  ;;  %8665 = vmatprep.mubr.msk.f32.mxu1 %vm9899_vm1, %v13127_v54  ;;  %v9851_v49 = vld [vmem:[%s13093_s0 + $0x38] sm:$0xff] }
 0x9f8   :  { %v4434_v15 = vmul.f32 %v10716_v47, %v4416_v58 }
 0x9f9   :  { %v9637_v53 = vpop.eup %9636 }
 0x9fa   :  { %v4364_v55 = vpop.xlane.xlu1 %4363  ;;  %8666 = vmatmul.mubr.msk.f32.gmra.mrb[204].mxu1 %vm1131_vm4, %v4434_v15  ;;  %v4417_v50 = vmul.f32 %v9637_v53, %v12096_v3  ;;  %v9852_v53 = vld [vmem:[%s13093_s0 + $0x40] sm:$0xff] }
 0x9fb   :  { %9642 = vrcp.f32 %v4364_v55  ;;  %8668 = vmatprep.mubr.msk.f32.mxu1 %vm9899_vm1, %v13127_v54 }
 0x9fc   :  { %v4435_v48 = vmul.f32 %v10734_v61, %v4417_v50  ;;  %v9853_v50 = vld [vmem:[%s13093_s0 + $0x48] sm:$0xff] }
 0x9fd   :  { %v9639_v31 = vpop.eup %9638 }
 0x9fe   :  { %v4367_v23 = vpop.xlane.xlu0 %4366  ;;  %8669 = vmatmul.mubr.msk.f32.gmra.mrb[206].mxu1 %vm1131_vm4, %v4435_v48  ;;  %v4418_v41 = vmul.f32 %v9639_v31, %v12101_v40 }
 0x9ff   :  { %9644 = vrcp.f32 %v4367_v23  ;;  %8671 = vmatprep.mubr.msk.f32.mxu1 %vm9899_vm1, %v13127_v54  ;;  %v9854_v23 = vld [vmem:[%s13093_s0 + $0x50] sm:$0xff] }
 0xa00   :  { %v4436_v52 = vmul.f32 %v10749_v7, %v4418_v41 }
 0xa01   :  { %v9641_v5 = vpop.eup %9640 }
 0xa02   :  { %8672 = vmatmul.mubr.msk.f32.gmra.mrb[208].mxu1 %vm1131_vm4, %v4436_v52  ;;  %v4419_v3 = vmul.f32 %v9641_v5, %v12105_v63  ;;  %v9855_v52 = vld [vmem:[%s13093_s0 + $0x58] sm:$0xff] }
 0xa03   :  { %8674 = vmatprep.mubr.msk.f32.mxu1 %vm9899_vm1, %v13127_v54 }
 0xa04   :  { %v4437_v18 = vmul.f32 %v10767_v28, %v4419_v3 }
 0xa05   :  { %v9643_v26 = vpop.eup %9642 }
 0xa06   :  { %8675 = vmatmul.mubr.msk.f32.gmra.mrb[210].mxu1 %vm1131_vm4, %v4437_v18  ;;  %v4420_v40 = vmul.f32 %v9643_v26, %v12109_v21  ;;  %v7023_v21 = vld [vmem:[%s13092_s4 + $0xf0] sm:$0xff]  ;;  %v9856_v18 = vld [vmem:[%s13093_s0 + $0x60] sm:$0xff] }
 0xa07   :  { %8677 = vmatprep.mubr.msk.f32.mxu1 %vm9899_vm1, %v13127_v54  ;;  %v9323_v44 = vpack.c.bf16 %v7024_v62, %v7023_v21  ;;  %v9859_v21 = vld [vmem:[%s13093_s0 + $0x78] sm:$0xff]  ;;  %v13135_v62 = vld [vmem:[#allocation3_spill] sm:$0xff] }
 0xa08   :  { %v4438_v45 = vmul.f32 %v10782_v22, %v4420_v40  ;;  %v9857_v40 = vld [vmem:[%s13093_s0 + $0x68] sm:$0xff] }
 0xa09   :  { %v9645_v27 = vpop.eup %9644 }
 0xa0a   :  { %8678 = vmatmul.mubr.msk.f32.gmra.mrb[212].mxu1 %vm1131_vm4, %v4438_v45  ;;  %v4421_v63 = vmul.f32 %v9645_v27, %v12113_v11  ;;  %v9844_v11 = vld [vmem:[%s13093_s0] sm:$0xff] }
 0xa0b   :  { %8680 = vmatprep.mubr.msk.f32.mxu1 %vm9899_vm1, %v13127_v54  ;;  %v13134_v45 = vld [vmem:[#allocation2_spill] sm:$0xff] }
 0xa0c   :  { %v4370_v36 = vpop.xlane.xlu1 %4369  ;;  %v4439_v10 = vmul.f32 %v10798_v32, %v4421_v63 }
 0xa0d   :  { %9646 = vrcp.f32 %v4370_v36  ;;  %v9858_v36 = vld [vmem:[%s13093_s0 + $0x70] sm:$0xff] }
 0xa0e   :  { %8681 = vmatmul.mubr.msk.f32.gmra.mrb[214].mxu1 %vm1131_vm4, %v4439_v10 }
 0xa0f   :  { %8765 = vmatprep.mubr.msk.f32.mxu1 %vm130_vm0, %v9844_v11 }
 0xa10   :  { %v4373_v37 = vpop.xlane.xlu0 %4372 }
 0xa11   :  { %9648 = vrcp.f32 %v4373_v37 }
 0xa12   :  { %8766 = vmatmul.mubr.msk.f32.vlgmr.msra.gmra.mrb[216].mxu1 %vm130_vm0, %v9845_v0  ;;  %v9861_v0 = vld [vmem:[%s13093_s0 + $0x88] sm:$0xff] }
 0xa13   :  { %8768 = vmatprep.mubr.msk.f32.mxu1 %vm130_vm0, %v9846_v13  ;;  %9322 = vmatpush3.bf16.msra.mxu1 %v9319_v19  ;;  %v13136_v13 = vld [vmem:[#allocation4_spill] sm:$0xff] }
 0xa14   :  { %v4376_v14 = vpop.xlane.xlu1 %4375  ;;  %9324 = vmatprep.subr.bf16.mxu1 %v9323_v44 }
 0xa15   :  { %9650 = vrcp.f32 %v4376_v14 }
 0xa16   :  { %8769 = vmatmul.mubr.msk.f32.gmra.mrb[218].mxu1 %vm130_vm0, %v9847_v29 }
 0xa17   :  { %v9647_v57 = vpop.eup %9646  ;;  %8771 = vmatprep.mubr.msk.f32.mxu1 %vm130_vm0, %v9848_v59  ;;  %9326 = vmatpush3.bf16.msra.mxu1 %v9323_v44  ;;  %v9860_v44 = vld [vmem:[%s13093_s0 + $0x80] sm:$0xff]  ;;  %v9863_v59 = vld [vmem:[%s13094_s1 + $0x8] sm:$0xff] }
 0xa18   :  { %v4422_v24 = vmul.f32 %v9647_v57, %v12130_v8  ;;  %v4379_v19 = vpop.xlane.xlu0 %4378  ;;  %9335 = vmatprep.subr.bf16.mxu1 %v13128_v38  ;;  %v9862_v57 = vld [vmem:[%s13094_s1] sm:$0xff] }
 0xa19   :  { %9652 = vrcp.f32 %v4379_v19 }
 0xa1a   :  { %v4440_v2 = vmul.f32 %v10592_v12, %v4422_v24  ;;  %8772 = vmatmul.mubr.msk.f32.gmra.mrb[220].mxu1 %vm130_vm0, %v9849_v30  ;;  %v13137_v24 = vld [vmem:[#allocation5_spill] sm:$0xff]  ;;  %v9864_v30 = vld [vmem:[%s13094_s1 + $0x10] sm:$0xff] }
 0xa1b   :  { %v9649_v43 = vpop.eup %9648  ;;  %8774 = vmatprep.mubr.msk.f32.mxu1 %vm130_vm0, %v9850_v1  ;;  %v13138_v1 = vld [vmem:[#allocation6_spill] sm:$0xff] }
 0xa1c   :  { %v4382_v8 = vpop.xlane.xlu1 %4381  ;;  %8702 = vmatmul.mubr.msk.f32.vlgmr.msra.gmra.mrb[162].mxu0 %vm1131_vm4, %v4440_v2  ;;  %v4423_v51 = vmul.f32 %v9649_v43, %v12135_v20  ;;  %v9865_v43 = vld [vmem:[%s13094_s1 + $0x18] sm:$0xff] }
 0xa1d   :  { %9654 = vrcp.f32 %v4382_v8  ;;  %8704 = vmatprep.mubr.msk.f32.mxu0 %vm9899_vm1, %v13127_v54 }
 0xa1e   :  { %8775 = vmatmul.mubr.msk.f32.gmra.mrb[222].mxu1 %vm130_vm0, %v9851_v49  ;;  %v4441_v58 = vmul.f32 %v10605_v9, %v4423_v51  ;;  %v9866_v51 = vld [vmem:[%s13094_s1 + $0x20] sm:$0xff]  ;;  %v9868_v49 = vld [vmem:[%s13094_s1 + $0x30] sm:$0xff] }
 0xa1f   :  { %v9651_v15 = vpop.eup %9650  ;;  %8777 = vmatprep.mubr.msk.f32.mxu1 %vm130_vm0, %v9852_v53  ;;  %v9870_v53 = vld [vmem:[%s13094_s1 + $0x40] sm:$0xff] }
 0xa20   :  { %v4385_v20 = vpop.xlane.xlu0 %4384  ;;  %8705 = vmatmul.mubr.msk.f32.gmra.mrb[164].mxu0 %vm1131_vm4, %v4441_v58  ;;  %v4424_v55 = vmul.f32 %v9651_v15, %v12140_v60  ;;  %v9869_v58 = vld [vmem:[%s13094_s1 + $0x38] sm:$0xff]  ;;  %v6978_v15 = vld [vmem:[%s13098_s6 + $0x10] sm:$0xff] }
 0xa21   :  { %9656 = vrcp.f32 %v4385_v20  ;;  %8707 = vmatprep.mubr.msk.f32.mxu0 %vm9899_vm1, %v13127_v54  ;;  %8728 = vmatprep.subr.mxu0 %v6978_v15  ;;  %v9871_v20 = vld [vmem:[%s13094_s1 + $0x48] sm:$0xff] }
 0xa22   :  { %8778 = vmatmul.mubr.msk.f32.gmra.mrb[224].mxu1 %vm130_vm0, %v9853_v50  ;;  %v4442_v48 = vmul.f32 %v10613_v25, %v4424_v55  ;;  %8729 = vmatpush3.msra.mxu0 %v6978_v15  ;;  %v9872_v55 = vld [vmem:[%s13094_s1 + $0x50] sm:$0xff]  ;;  %v9873_v50 = vld [vmem:[%s13094_s1 + $0x58] sm:$0xff] }
 0xa23   :  { %v9653_v31 = vpop.eup %9652  ;;  %8780 = vmatprep.mubr.msk.f32.mxu1 %vm130_vm0, %v9854_v23  ;;  %v9876_v23 = vld [vmem:[%s13094_s1 + $0x70] sm:$0xff] }
 0xa24   :  { %v4388_v60 = vpop.xlane.xlu1 %4387  ;;  %8708 = vmatmul.mubr.msk.f32.gmra.mrb[166].mxu0 %vm1131_vm4, %v4442_v48  ;;  %v4425_v41 = vmul.f32 %v9653_v31, %v12145_v46  ;;  %v9874_v48 = vld [vmem:[%s13094_s1 + $0x60] sm:$0xff]  ;;  %v9875_v31 = vld [vmem:[%s13094_s1 + $0x68] sm:$0xff] }
 0xa25   :  { %9658 = vrcp.f32 %v4388_v60  ;;  %8710 = vmatprep.mubr.msk.f32.mxu0 %vm9899_vm1, %v13127_v54  ;;  %v9877_v60 = vld [vmem:[%s13094_s1 + $0x78] sm:$0xff] }
 0xa26   :  { %8781 = vmatmul.mubr.msk.f32.gmra.mrb[226].mxu1 %vm130_vm0, %v9855_v52  ;;  %v4443_v5 = vmul.f32 %v10623_v39, %v4425_v41  ;;  %v9878_v41 = vld [vmem:[%s13094_s1 + $0x80] sm:$0xff]  ;;  %v9879_v52 = vld [vmem:[%s13094_s1 + $0x88] sm:$0xff] }
 0xa27   :  { %v9655_v3 = vpop.eup %9654  ;;  %8783 = vmatprep.mubr.msk.f32.mxu1 %vm130_vm0, %v9856_v18 }
 0xa28   :  { %v4391_v46 = vpop.xlane.xlu0 %4390  ;;  %8711 = vmatmul.mubr.msk.f32.gmra.mrb[168].mxu0 %vm1131_vm4, %v4443_v5  ;;  %v4426_v26 = vmul.f32 %v9655_v3, %v12150_v16  ;;  %v7045_v5 = vld [vmem:[%s13092_s4 + $0x160] sm:$0xff]  ;;  %v7046_v3 = vld [vmem:[%s13092_s4 + $0x168] sm:$0xff] }
 0xa29   :  { %9660 = vrcp.f32 %v4391_v46  ;;  %8713 = vmatprep.mubr.msk.f32.mxu0 %vm9899_vm1, %v13127_v54  ;;  %v9327_v18 = vpack.c.bf16 %v7046_v3, %v7045_v5 }
 0xa2a   :  { %8784 = vmatmul.mubr.msk.f32.gmra.mrb[228].mxu1 %vm130_vm0, %v9857_v40  ;;  %v4444_v27 = vmul.f32 %v13134_v45, %v4426_v26  ;;  %v7047_v26 = vld [vmem:[%s13092_s4 + $0x170] sm:$0xff]  ;;  %v7048_v40 = vld [vmem:[%s13092_s4 + $0x178] sm:$0xff] }
 0xa2b   :  { %v9657_v63 = vpop.eup %9656  ;;  %8786 = vmatprep.mubr.msk.f32.mxu1 %vm130_vm0, %v9858_v36  ;;  %9328 = vmatprep.subr.bf16.mxu0 %v9327_v18 }
 0xa2c   :  { %v4394_v16 = vpop.xlane.xlu1 %4393  ;;  %8714 = vmatmul.mubr.msk.f32.gmra.mrb[170].mxu0 %vm1131_vm4, %v4444_v27  ;;  %v4427_v10 = vmul.f32 %v9657_v63, %v12155_v56  ;;  %v9331_v63 = vpack.c.bf16 %v7048_v40, %v7047_v26 }
 0xa2d   :  { %9662 = vrcp.f32 %v4394_v16  ;;  %8716 = vmatprep.mubr.msk.f32.mxu0 %vm9899_vm1, %v13127_v54 }
 0xa2e   :  { %8787 = vmatmul.mubr.msk.f32.gmra.mrb[230].mxu1 %vm130_vm0, %v9859_v21  ;;  %v4445_v11 = vmul.f32 %v13135_v62, %v4427_v10 }
 0xa2f   :  { %v9659_v37 = vpop.eup %9658  ;;  %8789 = vmatprep.mubr.msk.f32.mxu1 %vm130_vm0, %v9860_v44 }
 0xa30   :  { %8717 = vmatmul.mubr.msk.f32.gmra.mrb[172].mxu0 %vm1131_vm4, %v4445_v11  ;;  %v4428_v56 = vmul.f32 %v9659_v37, %v12159_v35 }
 0xa31   :  { %8719 = vmatprep.mubr.msk.f32.mxu0 %vm9899_vm1, %v13127_v54 }
 0xa32   :  { %8790 = vmatmul.mubr.msk.f32.gmra.mrb[232].mxu1 %vm130_vm0, %v9861_v0  ;;  %v4446_v14 = vmul.f32 %v13136_v13, %v4428_v56 }
 0xa33   :  { %v9661_v29 = vpop.eup %9660  ;;  %8800 = vmatprep.mubr.msk.f32.mxu1 %vm130_vm0, %v9862_v57 }
 0xa34   :  { %8720 = vmatmul.mubr.msk.f32.gmra.mrb[174].mxu0 %vm1131_vm4, %v4446_v14  ;;  %v4429_v35 = vmul.f32 %v9661_v29, %v12163_v4 }
 0xa35   :  { %8722 = vmatprep.mubr.msk.f32.mxu0 %vm9899_vm1, %v13127_v54 }
 0xa36   :  { %8801 = vmatmul.mubr.msk.f32.vlgmr.msra.gmra.mrb[234].mxu1 %vm130_vm0, %v9863_v59  ;;  %v4447_v19 = vmul.f32 %v13137_v24, %v4429_v35 }
 0xa37   :  { %v9663_v2 = vpop.eup %9662  ;;  %8803 = vmatprep.mubr.msk.f32.mxu1 %vm130_vm0, %v9864_v30 }
 0xa38   :  { %8723 = vmatmul.mubr.msk.f32.gmra.mrb[176].mxu0 %vm1131_vm4, %v4447_v19  ;;  %v4430_v4 = vmul.f32 %v9663_v2, %v12167_v6  ;;  %v9867_v6 = vld [vmem:[%s13094_s1 + $0x28] sm:$0xff] }
 0xa39   :  { %8725 = vmatprep.mubr.msk.f32.mxu0 %vm9899_vm1, %v13127_v54 }
 0xa3a   :  { %8804 = vmatmul.mubr.msk.f32.gmra.mrb[236].mxu1 %vm130_vm0, %v9865_v43  ;;  %v4448_v8 = vmul.f32 %v13138_v1, %v4430_v4 }
 0xa3b   :  { %8806 = vmatprep.mubr.msk.f32.mxu1 %vm130_vm0, %v9866_v51 }
 0xa3c   :  { %8726 = vmatmul.mubr.msk.f32.gmra.mrb[178].mxu0 %vm1131_vm4, %v4448_v8 }
 0xa3e   :  { %8807 = vmatmul.mubr.msk.f32.gmra.mrb[238].mxu1 %vm130_vm0, %v9867_v6 }
 0xa3f   :  { %8809 = vmatprep.mubr.msk.f32.mxu1 %vm130_vm0, %v9868_v49 }
 0xa42   :  { %8810 = vmatmul.mubr.msk.f32.gmra.mrb[240].mxu1 %vm130_vm0, %v9869_v58 }
 0xa43   :  { %8812 = vmatprep.mubr.msk.f32.mxu1 %vm130_vm0, %v9870_v53 }
 0xa46   :  { %8813 = vmatmul.mubr.msk.f32.gmra.mrb[242].mxu1 %vm130_vm0, %v9871_v20 }
 0xa47   :  { %8815 = vmatprep.mubr.msk.f32.mxu1 %vm130_vm0, %v9872_v55 }
 0xa4a   :  { %8816 = vmatmul.mubr.msk.f32.gmra.mrb[244].mxu1 %vm130_vm0, %v9873_v50 }
 0xa4b   :  { %8818 = vmatprep.mubr.msk.f32.mxu1 %vm130_vm0, %v9874_v48 }
 0xa4e   :  { %8819 = vmatmul.mubr.msk.f32.gmra.mrb[246].mxu1 %vm130_vm0, %v9875_v31 }
 0xa4f   :  { %8821 = vmatprep.mubr.msk.f32.mxu1 %vm130_vm0, %v9876_v23 }
 0xa52   :  { %8822 = vmatmul.mubr.msk.f32.gmra.mrb[248].mxu1 %vm130_vm0, %v9877_v60 }
 0xa53   :  { %8824 = vmatprep.mubr.msk.f32.mxu1 %vm130_vm0, %v9878_v41 }
 0xa56   :  { %8825 = vmatmul.mubr.msk.f32.gmra.mrb[250].mxu1 %vm130_vm0, %v9879_v52 }
 0xa57   :  { %8880 = vmatprep.mubr.msk.f32.mxu1 %vm9899_vm1, %v13127_v54 }
 0xac1   :  { %v4542_v46 = vpop.f32.mrb[198].mxu1 }
 0xac2   :  { %v8658_v27 = vpop.f32.mrb[199].mxu1  ;;  %8730 = vmatprep.mubr.msk.f32.mxu0 %vm784_vm2, %v4542_v46 }
 0xac5   :  { %v4547_v36 = vpop.f32.mrb[200].mxu1 }
 0xac6   :  { %v8661_v16 = vpop.f32.mrb[201].mxu1  ;;  %8731 = vmatmul.mubr.msk.f32.vlgmr.msra.gmra.mrb[108].mxu0 %vm784_vm2, %v4547_v36 }
 0xac7   :  { %9330 = vmatpush3.bf16.msra.mxu0 %v9327_v18 }
 0xac8   :  { %9332 = vmatprep.subr.bf16.mxu0 %v9331_v63 }
 0xac9   :  { %v4552_v10 = vpop.f32.mrb[202].mxu1 }
 0xaca   :  { %v8664_v21 = vpop.f32.mrb[203].mxu1  ;;  %8733 = vmatprep.mubr.msk.f32.mxu0 %vm784_vm2, %v4552_v10 }
 0xacb   :  { %9334 = vmatpush3.bf16.msra.mxu0 %v9331_v63 }
 0xacc   :  { %9351 = vmatprep.subr.bf16.mxu0 %v13128_v38 }
 0xacd   :  { %v4557_v11 = vpop.f32.mrb[204].mxu1 }
 0xace   :  { %v8667_v37 = vpop.f32.mrb[205].mxu1  ;;  %8734 = vmatmul.mubr.msk.f32.gmra.mrb[110].mxu0 %vm784_vm2, %v4557_v11  ;;  %v12493_v11 = vld [vmem:[%s13096_s5 + $0x7] ss:$0 sm:$0xff] }
 0xad1   :  { %v4562_v44 = vpop.f32.mrb[206].mxu1 }
 0xad2   :  { %v8670_v56 = vpop.f32.mrb[207].mxu1  ;;  %8736 = vmatprep.mubr.msk.f32.mxu0 %vm784_vm2, %v4562_v44 }
 0xad5   :  { %v4567_v0 = vpop.f32.mrb[208].mxu1 }
 0xad6   :  { %v8673_v14 = vpop.f32.mrb[209].mxu1  ;;  %8737 = vmatmul.mubr.msk.f32.gmra.mrb[112].mxu0 %vm784_vm2, %v4567_v0 }
 0xad9   :  { %v4572_v29 = vpop.f32.mrb[210].mxu1 }
 0xada   :  { %v8676_v57 = vpop.f32.mrb[211].mxu1  ;;  %8739 = vmatprep.mubr.msk.f32.mxu0 %vm784_vm2, %v4572_v29 }
 0xadd   :  { %v4577_v35 = vpop.f32.mrb[212].mxu1 }
 0xade   :  { %v8679_v59 = vpop.f32.mrb[213].mxu1  ;;  %8740 = vmatmul.mubr.msk.f32.gmra.mrb[114].mxu0 %vm784_vm2, %v4577_v35 }
 0xae1   :  { %v4582_v19 = vpop.f32.mrb[214].mxu1 }
 0xae2   :  { %v8682_v2 = vpop.f32.mrb[215].mxu1  ;;  %8742 = vmatprep.mubr.msk.f32.mxu0 %vm784_vm2, %v4582_v19 }
 0xae5   :  { %v12448_v30 = vpop.f32.mrb[216].mxu1 }
 0xae6   :  { %v12450_v4 = vpop.f32.mrb[217].mxu1 }
 0xae9   :  { %v12452_v43 = vpop.f32.mrb[218].mxu1 }
 0xaea   :  { %v12454_v8 = vpop.f32.mrb[219].mxu1 }
 0xaed   :  { %v12456_v51 = vpop.f32.mrb[220].mxu1 }
 0xaee   :  { %v12458_v6 = vpop.f32.mrb[221].mxu1 }
 0xaef   :  { %v4679_v49 = vpop.f32.mrb[162].mxu0 }
 0xaf0   :  { %v8703_v58 = vpop.f32.mrb[163].mxu0  ;;  %8743 = vmatmul.mubr.msk.f32.gmra.mrb[116].mxu0 %vm784_vm2, %v4679_v49 }
 0xaf1   :  { %v12461_v15 = vpop.f32.mrb[222].mxu1 }
 0xaf2   :  { %v12463_v53 = vpop.f32.mrb[223].mxu1 }
 0xaf3   :  { %v4684_v20 = vpop.f32.mrb[164].mxu0 }
 0xaf4   :  { %v8706_v55 = vpop.f32.mrb[165].mxu0  ;;  %8745 = vmatprep.mubr.msk.f32.mxu0 %vm784_vm2, %v4684_v20 }
 0xaf5   :  { %v12466_v50 = vpop.f32.mrb[224].mxu1 }
 0xaf6   :  { %v12468_v48 = vpop.f32.mrb[225].mxu1 }
 0xaf7   :  { %v4689_v31 = vpop.f32.mrb[166].mxu0 }
 0xaf8   :  { %v8709_v23 = vpop.f32.mrb[167].mxu0  ;;  %8746 = vmatmul.mubr.msk.f32.gmra.mrb[118].mxu0 %vm784_vm2, %v4689_v31 }
 0xaf9   :  { %v12471_v60 = vpop.f32.mrb[226].mxu1  ;;  %v9880_v23 = vld [vmem:[%s13095_s2] sm:$0xff] }
 0xafa   :  { %v12473_v41 = vpop.f32.mrb[227].mxu1 }
 0xafb   :  { %v4694_v52 = vpop.f32.mrb[168].mxu0 }
 0xafc   :  { %v8712_v5 = vpop.f32.mrb[169].mxu0  ;;  %8748 = vmatprep.mubr.msk.f32.mxu0 %vm784_vm2, %v4694_v52 }
 0xafd   :  { %v12476_v3 = vpop.f32.mrb[228].mxu1 }
 0xafe   :  { %v12478_v18 = vpop.f32.mrb[229].mxu1 }
 0xaff   :  { %v4699_v46 = vpop.f32.mrb[170].mxu0 }
 0xb00   :  { %v8715_v26 = vpop.f32.mrb[171].mxu0  ;;  %8749 = vmatmul.mubr.msk.f32.gmra.mrb[120].mxu0 %vm784_vm2, %v4699_v46 }
 0xb01   :  { %v12481_v40 = vpop.f32.mrb[230].mxu1  ;;  %v9881_v26 = vld [vmem:[%s13095_s2 + $0x8] sm:$0xff] }
 0xb02   :  { %v12483_v27 = vpop.f32.mrb[231].mxu1 }
 0xb03   :  { %v4704_v63 = vpop.f32.mrb[172].mxu0 }
 0xb04   :  { %v8718_v36 = vpop.f32.mrb[173].mxu0  ;;  %8751 = vmatprep.mubr.msk.f32.mxu0 %vm784_vm2, %v4704_v63 }
 0xb05   :  { %v12486_v16 = vpop.f32.mrb[232].mxu1 }
 0xb06   :  { %v12488_v10 = vpop.f32.mrb[233].mxu1 }
 0xb07   :  { %v4709_v21 = vpop.f32.mrb[174].mxu0 }
 0xb08   :  { %v8721_v37 = vpop.f32.mrb[175].mxu0  ;;  %8752 = vmatmul.mubr.msk.f32.gmra.mrb[122].mxu0 %vm784_vm2, %v4709_v21  ;;  %v9882_v21 = vld [vmem:[%s13095_s2 + $0x10] sm:$0xff] }
 0xb09   :  { %v8802_v44 = vpop.f32.mrb[234].mxu1 }
 0xb0a   :  { %v5205_v56 = vadd.f32 %v8802_v44, %v12493_v11  ;;  %v5199_v0 = vpop.f32.mrb[235].mxu1 }
 0xb0b   :  { %v4714_v14 = vpop.f32.mrb[176].mxu0  ;;  %v5200_v29 = vadd.f32 %v12493_v11, %v5199_v0  ;;  %v9883_v0 = vld [vmem:[%s13095_s2 + $0x18] sm:$0xff] }
 0xb0c   :  { %v8724_v57 = vpop.f32.mrb[177].mxu0  ;;  %8754 = vmatprep.mubr.msk.f32.mxu0 %vm784_vm2, %v4714_v14 }
 0xb0d   :  { %v9336_v35 = vpack.c.bf16 %v5205_v56, %v5200_v29  ;;  %v8805_v59 = vpop.f32.mrb[236].mxu1  ;;  %v9884_v57 = vld [vmem:[%s13095_s2 + $0x20] sm:$0xff] }
 0xb0e   :  { %v5215_v19 = vadd.f32 %v8805_v59, %v12493_v11  ;;  %v5209_v2 = vpop.f32.mrb[237].mxu1  ;;  %v9885_v59 = vld [vmem:[%s13095_s2 + $0x28] sm:$0xff] }
 0xb0f   :  { %v4719_v49 = vpop.f32.mrb[178].mxu0  ;;  %v5210_v58 = vadd.f32 %v12493_v11, %v5209_v2  ;;  %9338 = vmatpush3.bf16.xpose.msk.msra.mxu1 %vm10249_vm3, %v9336_v35  ;;  %v9886_v2 = vld [vmem:[%s13095_s2 + $0x30] sm:$0xff] }
 0xb10   :  { %v8727_v20 = vpop.f32.mrb[179].mxu0  ;;  %8755 = vmatmul.mubr.msk.f32.gmra.mrb[124].mxu0 %vm784_vm2, %v4719_v49  ;;  %9339 = vmatprep.subr.bf16.mxu1 %v13128_v38 }
 0xb11   :  { %v9340_v55 = vpack.c.bf16 %v5215_v19, %v5210_v58  ;;  %v8808_v31 = vpop.f32.mrb[238].mxu1  ;;  %8835 = vmatprep.mubr.msk.f32.mxu0 %vm130_vm0, %v9880_v23 }
 0xb12   :  { %v5225_v52 = vadd.f32 %v8808_v31, %v12493_v11  ;;  %v5219_v5 = vpop.f32.mrb[239].mxu1 }
 0xb13   :  { %v5220_v46 = vadd.f32 %v12493_v11, %v5219_v5 }
 0xb14   :  { %8836 = vmatmul.mubr.msk.f32.vlgmr.msra.gmra.mrb[180].mxu0 %vm130_vm0, %v9881_v26 }
 0xb15   :  { %v9344_v63 = vpack.c.bf16 %v5225_v52, %v5220_v46  ;;  %v8811_v36 = vpop.f32.mrb[240].mxu1  ;;  %8838 = vmatprep.mubr.msk.f32.mxu0 %vm130_vm0, %v9882_v21  ;;  %v9888_v52 = vld [vmem:[%s13095_s2 + $0x40] sm:$0xff] }
 0xb16   :  { %v5235_v37 = vadd.f32 %v8811_v36, %v12493_v11  ;;  %v5229_v44 = vpop.f32.mrb[241].mxu1 }
 0xb17   :  { %v5230_v56 = vadd.f32 %v12493_v11, %v5229_v44  ;;  %9342 = vmatpush3.bf16.xpose.msk.msra.mxu1 %vm10249_vm3, %v9340_v55  ;;  %v9887_v55 = vld [vmem:[%s13095_s2 + $0x38] sm:$0xff]  ;;  %v9890_v44 = vld [vmem:[%s13095_s2 + $0x50] sm:$0xff] }
 0xb18   :  { %9343 = vmatprep.subr.bf16.mxu1 %v13128_v38  ;;  %8839 = vmatmul.mubr.msk.f32.gmra.mrb[182].mxu0 %vm130_vm0, %v9883_v0 }
 0xb19   :  { %v9348_v14 = vpack.c.bf16 %v5235_v37, %v5230_v56  ;;  %v8814_v29 = vpop.f32.mrb[242].mxu1  ;;  %8841 = vmatprep.mubr.msk.f32.mxu0 %vm130_vm0, %v9884_v57 }
 0xb1a   :  { %v5239_v35 = vpop.f32.mrb[243].mxu1  ;;  %v5245_v58 = vadd.f32 %v8814_v29, %v12493_v11  ;;  %v9891_v29 = vld [vmem:[%s13095_s2 + $0x58] sm:$0xff] }
 0xb1c   :  { %8842 = vmatmul.mubr.msk.f32.gmra.mrb[184].mxu0 %vm130_vm0, %v9885_v59 }
 0xb1d   :  { %v8817_v19 = vpop.f32.mrb[244].mxu1  ;;  %8844 = vmatprep.mubr.msk.f32.mxu0 %vm130_vm0, %v9886_v2  ;;  %v9892_v2 = vld [vmem:[%s13095_s2 + $0x60] sm:$0xff] }
 0xb1e   :  { %v5249_v49 = vpop.f32.mrb[245].mxu1  ;;  %v5255_v46 = vadd.f32 %v8817_v19, %v12493_v11 }
 0xb1f   :  { %v5250_v20 = vadd.f32 %v12493_v11, %v5249_v49  ;;  %9346 = vmatpush3.bf16.xpose.msk.msra.mxu1 %vm10249_vm3, %v9344_v63  ;;  %v9889_v63 = vld [vmem:[%s13095_s2 + $0x48] sm:$0xff] }
 0xb20   :  { %9347 = vmatprep.subr.bf16.mxu1 %v13128_v38  ;;  %8845 = vmatmul.mubr.msk.f32.gmra.mrb[186].mxu0 %vm130_vm0, %v9887_v55  ;;  %v5240_v55 = vadd.f32 %v12493_v11, %v5239_v35  ;;  %v9896_v35 = vld [vmem:[%s13095_s2 + $0x80] sm:$0xff] }
 0xb21   :  { %v9352_v31 = vpack.c.bf16 %v5250_v20, %v5245_v58  ;;  %v8820_v23 = vpop.f32.mrb[246].mxu1  ;;  %8847 = vmatprep.mubr.msk.f32.mxu0 %vm130_vm0, %v9888_v52  ;;  %v9893_v58 = vld [vmem:[%s13095_s2 + $0x68] sm:$0xff]  ;;  %v12591_v20 = vld [vmem:[%s13096_s5 + $0x3] ss:$0 sm:$0xff] }
 0xb22   :  { %v5259_v5 = vpop.f32.mrb[247].mxu1  ;;  %v5265_v36 = vadd.f32 %v8820_v23, %v12493_v11  ;;  %v9894_v23 = vld [vmem:[%s13095_s2 + $0x70] sm:$0xff]  ;;  %v5032_v52 = vadd.f32 %v12591_v20, %v12450_v4  ;;  %v5037_v4 = vadd.f32 %v12448_v30, %v12591_v20  ;;  %v5047_v30 = vadd.f32 %v12452_v43, %v12591_v20 }
 0xb23   :  { %v5260_v26 = vadd.f32 %v12493_v11, %v5259_v5  ;;  %9354 = vmatpush3.bf16.xpose.msk.msra.mxu0 %vm10249_vm3, %v9352_v31  ;;  %v9895_v5 = vld [vmem:[%s13095_s2 + $0x78] sm:$0xff]  ;;  %v5057_v33 = vadd.f32 %v12456_v51, %v12591_v20  ;;  %v5077_v43 = vadd.f32 %v12466_v50, %v12591_v20  ;;  %v5082_v51 = vadd.f32 %v12591_v20, %v12473_v41 }
 0xb24   :  { %9355 = vmatprep.subr.bf16.mxu0 %v13128_v38  ;;  %8848 = vmatmul.mubr.msk.f32.gmra.mrb[188].mxu0 %vm130_vm0, %v9889_v63  ;;  %v5067_v50 = vadd.f32 %v12461_v15, %v12591_v20  ;;  %v5092_v41 = vadd.f32 %v12591_v20, %v12478_v18  ;;  %v5097_v15 = vadd.f32 %v12476_v3, %v12591_v20 }
 0xb25   :  { %v9356_v21 = vpack.c.bf16 %v5260_v26, %v5255_v46  ;;  %v8823_v37 = vpop.f32.mrb[248].mxu1  ;;  %8850 = vmatprep.mubr.msk.f32.mxu0 %vm130_vm0, %v9890_v44  ;;  %v9897_v46 = vld [vmem:[%s13095_s2 + $0x88] sm:$0xff]  ;;  %v5042_v26 = vadd.f32 %v12591_v20, %v12454_v8  ;;  %v5052_v8 = vadd.f32 %v12591_v20, %v12458_v6  ;;  %v5062_v6 = vadd.f32 %v12591_v20, %v12463_v53 }
 0xb26   :  { %v5269_v56 = vpop.f32.mrb[249].mxu1  ;;  %v5275_v57 = vadd.f32 %v8823_v37, %v12493_v11  ;;  %v5072_v53 = vadd.f32 %v12591_v20, %v12468_v48  ;;  %v5102_v48 = vadd.f32 %v12591_v20, %v12483_v27  ;;  %v5112_v3 = vadd.f32 %v12591_v20, %v12488_v10 }
 0xb27   :  { %v5270_v0 = vadd.f32 %v12493_v11, %v5269_v56  ;;  %9350 = vmatpush3.bf16.xpose.msk.msra.mxu1 %vm10249_vm3, %v9348_v14  ;;  %v5117_v18 = vadd.f32 %v12486_v16, %v12591_v20 }
 0xb28   :  { %8878 = vmatprep.subr.mxu1 %v13127_v54  ;;  %8851 = vmatmul.mubr.msk.f32.gmra.mrb[190].mxu0 %vm130_vm0, %v9891_v29 }
 0xb29   :  { %v9360_v59 = vpack.c.bf16 %v5270_v0, %v5265_v36  ;;  %v8826_v19 = vpop.f32.mrb[250].mxu1  ;;  %8853 = vmatprep.mubr.msk.f32.mxu0 %vm130_vm0, %v9892_v2 }
 0xb2a   :  { %v5279_v49 = vpop.f32.mrb[251].mxu1  ;;  %v5285_v63 = vadd.f32 %v8826_v19, %v12493_v11 }
 0xb2b   :  { %9358 = vmatpush3.bf16.xpose.msk.msra.mxu0 %vm10249_vm3, %v9356_v21  ;;  %v5280_v14 = vadd.f32 %v12493_v11, %v5279_v49  ;;  %v5087_v11 = vadd.f32 %v12471_v60, %v12591_v20  ;;  %v5107_v60 = vadd.f32 %v12481_v40, %v12591_v20  ;;  %v12716_v40 = vld [vmem:[%s13096_s5 + $0xb] ss:$0 sm:$0xff] }
 0xb2c   :  { %9359 = vmatprep.subr.bf16.mxu0 %v13128_v38  ;;  %8854 = vmatmul.mubr.msk.f32.gmra.mrb[192].mxu0 %vm130_vm0, %v9893_v58 }
 0xb2d   :  { %v9364_v31 = vpack.c.bf16 %v5280_v14, %v5275_v57  ;;  %8856 = vmatprep.mubr.msk.f32.mxu0 %vm130_vm0, %v9894_v23 }
 0xb2f   :  { %8879 = vmatpush3.xpose.msk.msra.mxu1 %vm784_vm2, %v5240_v55 }
 0xb30   :  { %8857 = vmatmul.mubr.msk.f32.gmra.mrb[194].mxu0 %vm130_vm0, %v9895_v5  ;;  %9367 = vmatprep.subr.bf16.mxu1 %v13128_v38 }
 0xb31   :  { %8859 = vmatprep.mubr.msk.f32.mxu0 %vm130_vm0, %v9896_v35 }
 0xb32   :  { %8881 = vmatmul.mubr.msk.f32.vlgmr.msra.gmra.mrb[252].mxu1 %vm784_vm2, %v5032_v52 }
 0xb33   :  { %9362 = vmatpush3.bf16.xpose.msk.msra.mxu0 %vm10249_vm3, %v9360_v59  ;;  %8883 = vmatprep.mubr.msk.f32.mxu1 %vm9899_vm1, %v13127_v54 }
 0xb34   :  { %9363 = vmatprep.subr.bf16.mxu0 %v13128_v38  ;;  %8860 = vmatmul.mubr.msk.f32.gmra.mrb[196].mxu0 %vm130_vm0, %v9897_v46 }
 0xb35   :  { %8925 = vmatprep.mubr.msk.f32.mxu0 %vm9899_vm1, %v13127_v54 }
 0xb36   :  { %8884 = vmatmul.mubr.msk.f32.gmra.mrb[254].mxu1 %vm784_vm2, %v5037_v4 }
 0xb37   :  { %8886 = vmatprep.mubr.msk.f32.mxu1 %vm9899_vm1, %v13127_v54 }
 0xb3a   :  { %8887 = vmatmul.mubr.msk.f32.gmra.mrb[0].mxu1 %vm784_vm2, %v5042_v26 }
 0xb3b   :  { %9366 = vmatpush3.bf16.xpose.msk.msra.mxu0 %vm10249_vm3, %v9364_v31  ;;  %8889 = vmatprep.mubr.msk.f32.mxu1 %vm9899_vm1, %v13127_v54 }
 0xb3c   :  { %8923 = vmatprep.subr.mxu0 %v13127_v54 }
 0xb3e   :  { %8890 = vmatmul.mubr.msk.f32.gmra.mrb[2].mxu1 %vm784_vm2, %v5047_v30 }
 0xb3f   :  { %8892 = vmatprep.mubr.msk.f32.mxu1 %vm9899_vm1, %v13127_v54 }
 0xb42   :  { %8893 = vmatmul.mubr.msk.f32.gmra.mrb[4].mxu1 %vm784_vm2, %v5052_v8 }
 0xb43   :  { %8924 = vmatpush3.xpose.msk.msra.mxu0 %vm784_vm2, %v5285_v63  ;;  %8895 = vmatprep.mubr.msk.f32.mxu1 %vm9899_vm1, %v13127_v54 }
 0xb44   :  { %9379 = vmatprep.subr.bf16.mxu0 %v13128_v38 }
 0xb46   :  { %8896 = vmatmul.mubr.msk.f32.gmra.mrb[6].mxu1 %vm784_vm2, %v5057_v33  ;;  %8926 = vmatmul.mubr.msk.f32.vlgmr.msra.gmra.mrb[198].mxu0 %vm784_vm2, %v5077_v43 }
 0xb47   :  { %8898 = vmatprep.mubr.msk.f32.mxu1 %vm9899_vm1, %v13127_v54  ;;  %8928 = vmatprep.mubr.msk.f32.mxu0 %vm9899_vm1, %v13127_v54 }
 0xb4a   :  { %8899 = vmatmul.mubr.msk.f32.gmra.mrb[8].mxu1 %vm784_vm2, %v5062_v6  ;;  %8929 = vmatmul.mubr.msk.f32.gmra.mrb[200].mxu0 %vm784_vm2, %v5082_v51 }
 0xb4b   :  { %8901 = vmatprep.mubr.msk.f32.mxu1 %vm9899_vm1, %v13127_v54  ;;  %8931 = vmatprep.mubr.msk.f32.mxu0 %vm9899_vm1, %v13127_v54 }
 0xb4e   :  { %8902 = vmatmul.mubr.msk.f32.gmra.mrb[10].mxu1 %vm784_vm2, %v5067_v50  ;;  %8932 = vmatmul.mubr.msk.f32.gmra.mrb[202].mxu0 %vm784_vm2, %v5087_v11 }
 0xb4f   :  { %8904 = vmatprep.mubr.msk.f32.mxu1 %vm9899_vm1, %v13127_v54  ;;  %8934 = vmatprep.mubr.msk.f32.mxu0 %vm9899_vm1, %v13127_v54 }
 0xb52   :  { %8905 = vmatmul.mubr.msk.f32.gmra.mrb[12].mxu1 %vm784_vm2, %v5072_v53  ;;  %8935 = vmatmul.mubr.msk.f32.gmra.mrb[204].mxu0 %vm784_vm2, %v5092_v41 }
 0xb53   :  { %8937 = vmatprep.mubr.msk.f32.mxu0 %vm9899_vm1, %v13127_v54  ;;  %8970 = vmatprep.mubr.msk.f32.mxu1 %vm9899_vm1, %v13127_v54 }
 0xb56   :  { %8938 = vmatmul.mubr.msk.f32.gmra.mrb[206].mxu0 %vm784_vm2, %v5097_v15 }
 0xb57   :  { %8940 = vmatprep.mubr.msk.f32.mxu0 %vm9899_vm1, %v13127_v54 }
 0xb5a   :  { %8941 = vmatmul.mubr.msk.f32.gmra.mrb[208].mxu0 %vm784_vm2, %v5102_v48 }
 0xb5b   :  { %8943 = vmatprep.mubr.msk.f32.mxu0 %vm9899_vm1, %v13127_v54 }
 0xb5e   :  { %8944 = vmatmul.mubr.msk.f32.gmra.mrb[210].mxu0 %vm784_vm2, %v5107_v60 }
 0xb5f   :  { %8946 = vmatprep.mubr.msk.f32.mxu0 %vm9899_vm1, %v13127_v54 }
 0xb62   :  { %8947 = vmatmul.mubr.msk.f32.gmra.mrb[212].mxu0 %vm784_vm2, %v5112_v3 }
 0xb63   :  { %8949 = vmatprep.mubr.msk.f32.mxu0 %vm9899_vm1, %v13127_v54 }
 0xb66   :  { %8950 = vmatmul.mubr.msk.f32.gmra.mrb[214].mxu0 %vm784_vm2, %v5117_v18 }
 0xb67   :  { %9015 = vmatprep.mubr.msk.f32.mxu0 %vm9899_vm1, %v13127_v54 }
 0xbe7   :  { %v8837_v27 = vpop.f32.mrb[180].mxu0 }
 0xbe8   :  { %v5373_v10 = vadd.f32 %v8837_v27, %v12716_v40  ;;  %v5367_v36 = vpop.f32.mrb[181].mxu0 }
 0xbe9   :  { %v5368_v21 = vadd.f32 %v12716_v40, %v5367_v36 }
 0xbeb   :  { %v9368_v37 = vpack.c.bf16 %v5373_v10, %v5368_v21  ;;  %v8840_v44 = vpop.f32.mrb[182].mxu0 }
 0xbec   :  { %v5383_v16 = vadd.f32 %v8840_v44, %v12716_v40  ;;  %v5377_v56 = vpop.f32.mrb[183].mxu0 }
 0xbed   :  { %v5378_v0 = vadd.f32 %v12716_v40, %v5377_v56  ;;  %9369 = vmatpush3.bf16.msra.mxu1 %v9368_v37 }
 0xbee   :  { %9370 = vmatprep.subr.bf16.mxu1 %v13128_v38 }
 0xbef   :  { %v9371_v29 = vpack.c.bf16 %v5383_v16, %v5378_v0  ;;  %v8843_v57 = vpop.f32.mrb[184].mxu0 }
 0xbf0   :  { %v5393_v59 = vadd.f32 %v8843_v57, %v12716_v40  ;;  %v5387_v19 = vpop.f32.mrb[185].mxu0 }
 0xbf1   :  { %v5388_v2 = vadd.f32 %v12716_v40, %v5387_v19  ;;  %9372 = vmatpush3.bf16.msra.mxu1 %v9371_v29 }
 0xbf2   :  { %9373 = vmatprep.subr.bf16.mxu1 %v13128_v38 }
 0xbf3   :  { %v9374_v49 = vpack.c.bf16 %v5393_v59, %v5388_v2  ;;  %v8846_v14 = vpop.f32.mrb[186].mxu0 }
 0xbf4   :  { %v5403_v58 = vadd.f32 %v8846_v14, %v12716_v40  ;;  %v5397_v20 = vpop.f32.mrb[187].mxu0 }
 0xbf5   :  { %v5398_v55 = vadd.f32 %v12716_v40, %v5397_v20  ;;  %9375 = vmatpush3.bf16.msra.mxu1 %v9374_v49 }
 0xbf6   :  { %9376 = vmatprep.subr.bf16.mxu1 %v13128_v38 }
 0xbf7   :  { %v9377_v31 = vpack.c.bf16 %v5403_v58, %v5398_v55  ;;  %v8849_v23 = vpop.f32.mrb[188].mxu0 }
 0xbf8   :  { %v5407_v52 = vpop.f32.mrb[189].mxu0  ;;  %v5413_v35 = vadd.f32 %v8849_v23, %v12716_v40 }
 0xbf9   :  { %v5408_v5 = vadd.f32 %v12716_v40, %v5407_v52  ;;  %9378 = vmatpush3.bf16.msra.mxu1 %v9377_v31 }
 0xbfa   :  { %8968 = vmatprep.subr.mxu1 %v13127_v54 }
 0xbfb   :  { %v8852_v4 = vpop.f32.mrb[190].mxu0 }
 0xbfc   :  { %v5417_v46 = vpop.f32.mrb[191].mxu0  ;;  %v5423_v30 = vadd.f32 %v8852_v4, %v12716_v40 }
 0xbfd   :  { %v5418_v26 = vadd.f32 %v12716_v40, %v5417_v46  ;;  %8969 = vmatpush3.msra.mxu1 %v5408_v5 }
 0xbff   :  { %v9380_v8 = vpack.c.bf16 %v5418_v26, %v5413_v35  ;;  %v8855_v63 = vpop.f32.mrb[192].mxu0 }
 0xc00   :  { %v5427_v33 = vpop.f32.mrb[193].mxu0  ;;  %v5433_v6 = vadd.f32 %v8855_v63, %v12716_v40 }
 0xc01   :  { %v5428_v43 = vadd.f32 %v12716_v40, %v5427_v33  ;;  %9381 = vmatpush3.bf16.msra.mxu0 %v9380_v8 }
 0xc02   :  { %9382 = vmatprep.subr.bf16.mxu0 %v13128_v38 }
 0xc03   :  { %v9383_v51 = vpack.c.bf16 %v5428_v43, %v5423_v30  ;;  %v8858_v50 = vpop.f32.mrb[194].mxu0 }
 0xc04   :  { %v5437_v11 = vpop.f32.mrb[195].mxu0  ;;  %v5443_v60 = vadd.f32 %v8858_v50, %v12716_v40 }
 0xc05   :  { %v5576_v53 = vpop.f32.mrb[252].mxu1  ;;  %v5438_v41 = vadd.f32 %v12716_v40, %v5437_v11  ;;  %9384 = vmatpush3.bf16.msra.mxu0 %v9383_v51 }
 0xc06   :  { %v12738_v15 = vmul.f32 0.35355338, %v5576_v53  ;;  %v8882_v48 = vpop.f32.mrb[253].mxu1  ;;  %9385 = vmatprep.subr.bf16.mxu0 %v13128_v38 }
 0xc07   :  { %v9386_v3 = vpack.c.bf16 %v5438_v41, %v5433_v6  ;;  %v8861_v18 = vpop.f32.mrb[196].mxu0 }
 0xc08   :  { %v5802_v27 = vsel %vm1131_vm4, %v12738_v15, -inf  ;;  %v5447_v10 = vpop.f32.mrb[197].mxu0  ;;  %v5453_v29 = vadd.f32 %v8861_v18, %v12716_v40 }
 0xc09   :  { %5803 = vmax.xlane.f32.xlu0 %v5802_v27  ;;  %v5581_v36 = vpop.f32.mrb[254].mxu1  ;;  %v5448_v21 = vadd.f32 %v12716_v40, %v5447_v10  ;;  %9387 = vmatpush3.bf16.msra.mxu0 %v9386_v3 }
 0xc0a   :  { %v12745_v37 = vmul.f32 0.35355338, %v5581_v36  ;;  %v8885_v44 = vpop.f32.mrb[255].mxu1  ;;  %9388 = vmatprep.subr.bf16.mxu0 %v13128_v38 }
 0xc0b   :  { %v9389_v16 = vpack.c.bf16 %v5448_v21, %v5443_v60 }
 0xc0c   :  { %v5805_v56 = vsel %vm1131_vm4, %v12745_v37, -inf }
 0xc0d   :  { %5806 = vmax.xlane.f32.xlu1 %v5805_v56  ;;  %v5586_v0 = vpop.f32.mrb[0].mxu1  ;;  %9390 = vmatpush3.bf16.msra.mxu0 %v9389_v16 }
 0xc0e   :  { %v12751_v57 = vmul.f32 0.35355338, %v5586_v0  ;;  %v8888_v59 = vpop.f32.mrb[1].mxu1  ;;  %9013 = vmatprep.subr.mxu0 %v13127_v54 }
 0xc10   :  { %v5808_v19 = vsel %vm1131_vm4, %v12751_v57, -inf }
 0xc11   :  { %5809 = vmax.xlane.f32.xlu0 %v5808_v19  ;;  %v5591_v2 = vpop.f32.mrb[2].mxu1  ;;  %9014 = vmatpush3.msra.mxu0 %v5453_v29 }
 0xc12   :  { %v12756_v38 = vmul.f32 0.35355338, %v5591_v2  ;;  %v8891_v49 = vpop.f32.mrb[3].mxu1 }
 0xc14   :  { %v5811_v14 = vsel %vm1131_vm4, %v12756_v38, -inf }
 0xc15   :  { %5812 = vmax.xlane.f32.xlu1 %v5811_v14  ;;  %v5596_v40 = vpop.f32.mrb[4].mxu1 }
 0xc16   :  { %v12760_v58 = vmul.f32 0.35355338, %v5596_v40  ;;  %v8894_v20 = vpop.f32.mrb[5].mxu1 }
 0xc18   :  { %v5814_v55 = vsel %vm1131_vm4, %v12760_v58, -inf }
 0xc19   :  { %v5740_v31 = vpop.f32.mrb[198].mxu0  ;;  %5815 = vmax.xlane.f32.xlu0 %v5814_v55  ;;  %v5601_v23 = vpop.f32.mrb[6].mxu1 }
 0xc1a   :  { %v12764_v52 = vmul.f32 0.35355338, %v5740_v31  ;;  %v12766_v5 = vmul.f32 0.35355338, %v5601_v23  ;;  %v8897_v35 = vpop.f32.mrb[7].mxu1  ;;  %v8927_v4 = vpop.f32.mrb[199].mxu0 }
 0xc1c   :  { %v5829_v46 = vsel %vm1131_vm4, %v12764_v52, -inf  ;;  %v5817_v26 = vsel %vm1131_vm4, %v12766_v5, -inf }
 0xc1d   :  { %v5745_v30 = vpop.f32.mrb[200].mxu0  ;;  %5830 = vmax.xlane.f32.xlu1 %v5829_v46  ;;  %5818 = vmax.xlane.f32.xlu0 %v5817_v26  ;;  %v5606_v8 = vpop.f32.mrb[8].mxu1 }
 0xc1e   :  { %v12772_v63 = vmul.f32 0.35355338, %v5745_v30  ;;  %v12774_v33 = vmul.f32 0.35355338, %v5606_v8  ;;  %v8900_v43 = vpop.f32.mrb[9].mxu1  ;;  %v8930_v6 = vpop.f32.mrb[201].mxu0 }
 0xc20   :  { %v5832_v51 = vsel %vm1131_vm4, %v12772_v63, -inf  ;;  %v5820_v50 = vsel %vm1131_vm4, %v12774_v33, -inf }
 0xc21   :  { %v5750_v11 = vpop.f32.mrb[202].mxu0  ;;  %5833 = vmax.xlane.f32.xlu1 %v5832_v51  ;;  %5821 = vmax.xlane.f32.xlu0 %v5820_v50  ;;  %v5611_v53 = vpop.f32.mrb[10].mxu1 }
 0xc22   :  { %v12780_v41 = vmul.f32 0.35355338, %v5750_v11  ;;  %v12782_v48 = vmul.f32 0.35355338, %v5611_v53  ;;  %v8903_v60 = vpop.f32.mrb[11].mxu1  ;;  %v8933_v3 = vpop.f32.mrb[203].mxu0 }
 0xc24   :  { %v5835_v18 = vsel %vm1131_vm4, %v12780_v41, -inf  ;;  %v5823_v27 = vsel %vm1131_vm4, %v12782_v48, -inf }
 0xc25   :  { %v5755_v10 = vpop.f32.mrb[204].mxu0  ;;  %5836 = vmax.xlane.f32.xlu1 %v5835_v18  ;;  %5824 = vmax.xlane.f32.xlu0 %v5823_v27  ;;  %v5616_v36 = vpop.f32.mrb[12].mxu1 }
 0xc26   :  { %v12788_v21 = vmul.f32 0.35355338, %v5755_v10  ;;  %v12790_v44 = vmul.f32 0.35355338, %v5616_v36  ;;  %v8906_v16 = vpop.f32.mrb[13].mxu1  ;;  %v8936_v56 = vpop.f32.mrb[205].mxu0 }
 0xc28   :  { %v5838_v0 = vsel %vm1131_vm4, %v12788_v21, -inf  ;;  %v5826_v29 = vsel %vm1131_vm4, %v12790_v44, -inf }
 0xc29   :  { %v5760_v59 = vpop.f32.mrb[206].mxu0  ;;  %5839 = vmax.xlane.f32.xlu1 %v5838_v0  ;;  %5827 = vmax.xlane.f32.xlu0 %v5826_v29 }
 0xc2a   :  { %v12796_v19 = vmul.f32 0.35355338, %v5760_v59  ;;  %v8939_v2 = vpop.f32.mrb[207].mxu0 }
 0xc2c   :  { %v5841_v49 = vsel %vm1131_vm4, %v12796_v19, -inf }
 0xc2d   :  { %v5765_v14 = vpop.f32.mrb[208].mxu0  ;;  %5842 = vmax.xlane.f32.xlu1 %v5841_v49 }
 0xc2e   :  { %v12800_v40 = vmul.f32 0.35355338, %v5765_v14  ;;  %v8942_v20 = vpop.f32.mrb[209].mxu0 }
 0xc30   :  { %v5844_v55 = vsel %vm1131_vm4, %v12800_v40, -inf }
 0xc31   :  { %v5770_v31 = vpop.f32.mrb[210].mxu0  ;;  %5845 = vmax.xlane.f32.xlu0 %v5844_v55 }
 0xc32   :  { %v12804_v23 = vmul.f32 0.35355338, %v5770_v31  ;;  %v8945_v35 = vpop.f32.mrb[211].mxu0 }
 0xc34   :  { %v5847_v4 = vsel %vm1131_vm4, %v12804_v23, -inf }
 0xc35   :  { %v5775_v46 = vpop.f32.mrb[212].mxu0  ;;  %5848 = vmax.xlane.f32.xlu1 %v5847_v4 }
 0xc36   :  { %v12808_v26 = vmul.f32 0.35355338, %v5775_v46  ;;  %v8948_v30 = vpop.f32.mrb[213].mxu0 }
 0xc38   :  { %v5850_v8 = vsel %vm1131_vm4, %v12808_v26, -inf }
 0xc39   :  { %v5780_v43 = vpop.f32.mrb[214].mxu0  ;;  %5851 = vmax.xlane.f32.xlu0 %v5850_v8 }
 0xc3a   :  { %v12812_v6 = vmul.f32 0.35355338, %v5780_v43  ;;  %v8951_v51 = vpop.f32.mrb[215].mxu0 }
 0xc3c   :  { %v5853_v50 = vsel %vm1131_vm4, %v12812_v6, -inf }
 0xc3d   :  { %5854 = vmax.xlane.f32.xlu1 %v5853_v50 }
 0xc96   :  { %v5804_v11 = vpop.xlane.xlu0 %5803 }
 0xc97   :  { %v5856_v53 = vsub.f32 %v12738_v15, %v5804_v11 }
 0xc99   :  { %v5874_v60 = vmul.f32 1.442695, %v5856_v53 }
 0xc9a   :  { %v5807_v3 = vpop.xlane.xlu1 %5806 }
 0xc9b   :  { %9664 = vpow2.f32 %v5874_v60  ;;  %v5857_v18 = vsub.f32 %v12745_v37, %v5807_v3 }
 0xc9d   :  { %v5876_v27 = vmul.f32 1.442695, %v5857_v18 }
 0xc9e   :  { %v5810_v10 = vpop.xlane.xlu0 %5809 }
 0xc9f   :  { %9666 = vpow2.f32 %v5876_v27  ;;  %v5858_v36 = vsub.f32 %v12751_v57, %v5810_v10 }
 0xca1   :  { %v5878_v16 = vmul.f32 1.442695, %v5858_v36 }
 0xca2   :  { %v5813_v56 = vpop.xlane.xlu1 %5812 }
 0xca3   :  { %9668 = vpow2.f32 %v5878_v16  ;;  %v5859_v0 = vsub.f32 %v12756_v38, %v5813_v56 }
 0xca5   :  { %v12820_v29 = vpop.eup %9664  ;;  %v5880_v59 = vmul.f32 1.442695, %v5859_v0 }
 0xca6   :  { %v5816_v2 = vpop.xlane.xlu0 %5815  ;;  %v5910_v15 = vsel %vm1131_vm4, %v12820_v29, 0.0 }
 0xca7   :  { %9670 = vpow2.f32 %v5880_v59  ;;  %v5860_v37 = vsub.f32 %v12760_v58, %v5816_v2  ;;  %5911 = vadd.xlane.f32.xlu0 %v5910_v15 }
 0xca9   :  { %v12825_v49 = vpop.eup %9666  ;;  %v5882_v14 = vmul.f32 1.442695, %v5860_v37 }
 0xcaa   :  { %v5831_v57 = vpop.xlane.xlu1 %5830  ;;  %v5819_v20 = vpop.xlane.xlu0 %5818  ;;  %v5913_v55 = vsel %vm1131_vm4, %v12825_v49, 0.0 }
 0xcab   :  { %9672 = vpow2.f32 %v5882_v14  ;;  %v5865_v38 = vsub.f32 %v12764_v52, %v5831_v57  ;;  %v5861_v31 = vsub.f32 %v12766_v5, %v5819_v20  ;;  %5914 = vadd.xlane.f32.xlu1 %v5913_v55 }
 0xcad   :  { %v12831_v35 = vpop.eup %9668  ;;  %v5892_v4 = vmul.f32 1.442695, %v5865_v38  ;;  %v5884_v46 = vmul.f32 1.442695, %v5861_v31 }
 0xcae   :  { %v5834_v58 = vpop.xlane.xlu1 %5833  ;;  %v5822_v30 = vpop.xlane.xlu0 %5821  ;;  %v5916_v8 = vsel %vm1131_vm4, %v12831_v35, 0.0 }
 0xcaf   :  { %9674 = vpow2.f32 %v5892_v4  ;;  %v5866_v43 = vsub.f32 %v12772_v63, %v5834_v58  ;;  %v5862_v51 = vsub.f32 %v12774_v33, %v5822_v30  ;;  %5917 = vadd.xlane.f32.xlu0 %v5916_v8 }
 0xcb0   :  { %9676 = vpow2.f32 %v5884_v46 }
 0xcb1   :  { %v12837_v52 = vpop.eup %9670  ;;  %v5894_v5 = vmul.f32 1.442695, %v5866_v43  ;;  %v5886_v50 = vmul.f32 1.442695, %v5862_v51 }
 0xcb2   :  { %v5837_v11 = vpop.xlane.xlu1 %5836  ;;  %v5825_v53 = vpop.xlane.xlu0 %5824  ;;  %v5919_v60 = vsel %vm1131_vm4, %v12837_v52, 0.0 }
 0xcb3   :  { %9678 = vpow2.f32 %v5894_v5  ;;  %v5867_v3 = vsub.f32 %v12780_v41, %v5837_v11  ;;  %v5863_v18 = vsub.f32 %v12782_v48, %v5825_v53  ;;  %5920 = vadd.xlane.f32.xlu1 %v5919_v60 }
 0xcb4   :  { %9680 = vpow2.f32 %v5886_v50 }
 0xcb5   :  { %v12843_v63 = vpop.eup %9672  ;;  %v5896_v33 = vmul.f32 1.442695, %v5867_v3  ;;  %v5888_v27 = vmul.f32 1.442695, %v5863_v18 }
 0xcb6   :  { %v5840_v10 = vpop.xlane.xlu1 %5839  ;;  %v5828_v36 = vpop.xlane.xlu0 %5827  ;;  %v5922_v16 = vsel %vm1131_vm4, %v12843_v63, 0.0 }
 0xcb7   :  { %9682 = vpow2.f32 %v5896_v33  ;;  %v5868_v56 = vsub.f32 %v12788_v21, %v5840_v10  ;;  %v5864_v0 = vsub.f32 %v12790_v44, %v5828_v36  ;;  %5923 = vadd.xlane.f32.xlu0 %v5922_v16 }
 0xcb8   :  { %9684 = vpow2.f32 %v5888_v27 }
 0xcb9   :  { %v12849_v41 = vpop.eup %9674  ;;  %v5898_v48 = vmul.f32 1.442695, %v5868_v56  ;;  %v5890_v59 = vmul.f32 1.442695, %v5864_v0 }
 0xcba   :  { %v12851_v2 = vpop.eup %9676  ;;  %v5843_v15 = vpop.xlane.xlu1 %5842  ;;  %v5937_v37 = vsel %vm1131_vm4, %v12849_v41, 0.0 }
 0xcbb   :  { %9686 = vpow2.f32 %v5898_v48  ;;  %v5869_v14 = vsub.f32 %v12796_v19, %v5843_v15  ;;  %5938 = vadd.xlane.f32.xlu1 %v5937_v37  ;;  %v5925_v21 = vsel %vm1131_vm4, %v12851_v2, 0.0  ;;  %v12909_v37 = vld [vmem:[%s13098_s6 + $0x18] sm:$0xff] }
 0xcbc   :  { %9688 = vpow2.f32 %v5890_v59  ;;  %5926 = vadd.xlane.f32.xlu0 %v5925_v21  ;;  %9042 = vmatprep.subr.mxu0 %v12909_v37 }
 0xcbd   :  { %v12858_v44 = vpop.eup %9678  ;;  %v5900_v57 = vmul.f32 1.442695, %v5869_v14 }
 0xcbe   :  { %v12860_v20 = vpop.eup %9680  ;;  %v5846_v55 = vpop.xlane.xlu0 %5845  ;;  %v5940_v38 = vsel %vm1131_vm4, %v12858_v44, 0.0 }
 0xcbf   :  { %9690 = vpow2.f32 %v5900_v57  ;;  %v5870_v31 = vsub.f32 %v12800_v40, %v5846_v55  ;;  %5941 = vadd.xlane.f32.xlu1 %v5940_v38  ;;  %v5928_v19 = vsel %vm1131_vm4, %v12860_v20, 0.0 }
 0xcc0   :  { %5929 = vadd.xlane.f32.xlu0 %v5928_v19 }
 0xcc1   :  { %v12867_v4 = vpop.eup %9682  ;;  %v5902_v46 = vmul.f32 1.442695, %v5870_v31 }
 0xcc2   :  { %v12869_v58 = vpop.eup %9684  ;;  %v5849_v30 = vpop.xlane.xlu1 %5848  ;;  %v5943_v8 = vsel %vm1131_vm4, %v12867_v4, 0.0 }
 0xcc3   :  { %9692 = vpow2.f32 %v5902_v46  ;;  %v5871_v43 = vsub.f32 %v12804_v23, %v5849_v30  ;;  %5944 = vadd.xlane.f32.xlu1 %v5943_v8  ;;  %v5931_v40 = vsel %vm1131_vm4, %v12869_v58, 0.0 }
 0xcc4   :  { %5932 = vadd.xlane.f32.xlu0 %v5931_v40 }
 0xcc5   :  { %v12876_v51 = vpop.eup %9686  ;;  %v5904_v5 = vmul.f32 1.442695, %v5871_v43 }
 0xcc6   :  { %v12878_v50 = vpop.eup %9688  ;;  %v5852_v11 = vpop.xlane.xlu0 %5851  ;;  %v5946_v53 = vsel %vm1131_vm4, %v12876_v51, 0.0 }
 0xcc7   :  { %9694 = vpow2.f32 %v5904_v5  ;;  %v5872_v60 = vsub.f32 %v12808_v26, %v5852_v11  ;;  %5947 = vadd.xlane.f32.xlu1 %v5946_v53  ;;  %v5934_v23 = vsel %vm1131_vm4, %v12878_v50, 0.0 }
 0xcc8   :  { %5935 = vadd.xlane.f32.xlu0 %v5934_v23 }
 0xcc9   :  { %v12885_v3 = vpop.eup %9690  ;;  %v5906_v18 = vmul.f32 1.442695, %v5872_v60 }
 0xcca   :  { %v5855_v33 = vpop.xlane.xlu1 %5854  ;;  %v5949_v27 = vsel %vm1131_vm4, %v12885_v3, 0.0 }
 0xccb   :  { %9696 = vpow2.f32 %v5906_v18  ;;  %v5873_v10 = vsub.f32 %v12812_v6, %v5855_v33  ;;  %5950 = vadd.xlane.f32.xlu1 %v5949_v27 }
 0xccd   :  { %v12890_v36 = vpop.eup %9692  ;;  %v5908_v16 = vmul.f32 1.442695, %v5873_v10 }
 0xcce   :  { %v5952_v26 = vsel %vm1131_vm4, %v12890_v36, 0.0 }
 0xccf   :  { %9698 = vpow2.f32 %v5908_v16  ;;  %5953 = vadd.xlane.f32.xlu0 %v5952_v26 }
 0xcd1   :  { %v12894_v56 = vpop.eup %9694 }
 0xcd2   :  { %v5955_v0 = vsel %vm1131_vm4, %v12894_v56, 0.0 }
 0xcd3   :  { %5956 = vadd.xlane.f32.xlu1 %v5955_v0 }
 0xcd5   :  { %v12898_v48 = vpop.eup %9696 }
 0xcd6   :  { %v5958_v6 = vsel %vm1131_vm4, %v12898_v48, 0.0 }
 0xcd7   :  { %5959 = vadd.xlane.f32.xlu0 %v5958_v6 }
 0xcd9   :  { %v12902_v59 = vpop.eup %9698 }
 0xcda   :  { %v5961_v15 = vsel %vm1131_vm4, %v12902_v59, 0.0 }
 0xcdb   :  { %5962 = vadd.xlane.f32.xlu1 %v5961_v15 }
 0xd34   :  { %v5912_v14 = vpop.xlane.xlu0 %5911 }
 0xd35   :  { %9700 = vrcp.f32 %v5912_v14 }
 0xd38   :  { %v5915_v21 = vpop.xlane.xlu1 %5914 }
 0xd39   :  { %9702 = vrcp.f32 %v5915_v21 }
 0xd3c   :  { %v5918_v57 = vpop.xlane.xlu0 %5917 }
 0xd3d   :  { %9704 = vrcp.f32 %v5918_v57 }
 0xd3f   :  { %v9701_v55 = vpop.eup %9700 }
 0xd40   :  { %v5982_v38 = vmul.f32 %v9701_v55, %v12820_v29  ;;  %v5921_v31 = vpop.xlane.xlu1 %5920 }
 0xd41   :  { %9706 = vrcp.f32 %v5921_v31 }
 0xd42   :  { %v6000_v19 = vmul.f32 %v10670_v17, %v5982_v38 }
 0xd43   :  { %v9703_v46 = vpop.eup %9702 }
 0xd44   :  { %v5983_v30 = vmul.f32 %v9703_v46, %v12825_v49  ;;  %8971 = vmatmul.mubr.msk.f32.vlgmr.msra.gmra.mrb[14].mxu1 %vm1131_vm4, %v6000_v19  ;;  %v5924_v8 = vpop.xlane.xlu0 %5923 }
 0xd45   :  { %9708 = vrcp.f32 %v5924_v8  ;;  %8973 = vmatprep.mubr.msk.f32.mxu1 %vm9899_vm1, %v13127_v54 }
 0xd46   :  { %v6001_v43 = vmul.f32 %v10684_v42, %v5983_v30 }
 0xd47   :  { %v9705_v40 = vpop.eup %9704 }
 0xd48   :  { %v5984_v5 = vmul.f32 %v9705_v40, %v12831_v35  ;;  %v5939_v29 = vpop.xlane.xlu1 %5938  ;;  %8974 = vmatmul.mubr.msk.f32.gmra.mrb[16].mxu1 %vm1131_vm4, %v6001_v43 }
 0xd49   :  { %9710 = vrcp.f32 %v5939_v29  ;;  %v5927_v17 = vpop.xlane.xlu0 %5926  ;;  %8976 = vmatprep.mubr.msk.f32.mxu1 %vm9899_vm1, %v13127_v54 }
 0xd4a   :  { %v6002_v49 = vmul.f32 %v10701_v34, %v5984_v5  ;;  %9712 = vrcp.f32 %v5927_v17 }
 0xd4b   :  { %v9707_v11 = vpop.eup %9706 }
 0xd4c   :  { %v5985_v53 = vmul.f32 %v9707_v11, %v12837_v52  ;;  %v5942_v60 = vpop.xlane.xlu1 %5941  ;;  %8977 = vmatmul.mubr.msk.f32.gmra.mrb[18].mxu1 %vm1131_vm4, %v6002_v49 }
 0xd4d   :  { %9714 = vrcp.f32 %v5942_v60  ;;  %v5930_v42 = vpop.xlane.xlu0 %5929  ;;  %8979 = vmatprep.mubr.msk.f32.mxu1 %vm9899_vm1, %v13127_v54 }
 0xd4e   :  { %v6003_v35 = vmul.f32 %v10716_v47, %v5985_v53  ;;  %9716 = vrcp.f32 %v5930_v42 }
 0xd4f   :  { %v9709_v23 = vpop.eup %9708 }
 0xd50   :  { %v5986_v18 = vmul.f32 %v9709_v23, %v12843_v63  ;;  %v5945_v33 = vpop.xlane.xlu1 %5944  ;;  %8980 = vmatmul.mubr.msk.f32.gmra.mrb[20].mxu1 %vm1131_vm4, %v6003_v35 }
 0xd51   :  { %9718 = vrcp.f32 %v5945_v33  ;;  %v5933_v34 = vpop.xlane.xlu0 %5932  ;;  %8982 = vmatprep.mubr.msk.f32.mxu1 %vm9899_vm1, %v13127_v54 }
 0xd52   :  { %v6004_v52 = vmul.f32 %v10734_v61, %v5986_v18  ;;  %9720 = vrcp.f32 %v5933_v34 }
 0xd53   :  { %v9711_v27 = vpop.eup %9710 }
 0xd54   :  { %v9713_v10 = vpop.eup %9712  ;;  %v5991_v16 = vmul.f32 %v9711_v27, %v12849_v41  ;;  %v5948_v47 = vpop.xlane.xlu1 %5947  ;;  %8983 = vmatmul.mubr.msk.f32.gmra.mrb[22].mxu1 %vm1131_vm4, %v6004_v52 }
 0xd55   :  { %v5987_v63 = vmul.f32 %v9713_v10, %v12851_v2  ;;  %9722 = vrcp.f32 %v5948_v47  ;;  %v5936_v26 = vpop.xlane.xlu0 %5935  ;;  %8985 = vmatprep.mubr.msk.f32.mxu1 %vm9899_vm1, %v13127_v54 }
 0xd56   :  { %v6009_v0 = vmul.f32 %v10592_v12, %v5991_v16  ;;  %9724 = vrcp.f32 %v5936_v26 }
 0xd57   :  { %v9715_v6 = vpop.eup %9714  ;;  %v6005_v61 = vmul.f32 %v10749_v7, %v5987_v63 }
 0xd58   :  { %v9717_v15 = vpop.eup %9716  ;;  %9016 = vmatmul.mubr.msk.f32.vlgmr.msra.gmra.mrb[216].mxu0 %vm1131_vm4, %v6009_v0  ;;  %v5951_v41 = vpop.xlane.xlu1 %5950  ;;  %v5992_v14 = vmul.f32 %v9715_v6, %v12858_v44 }
 0xd59   :  { %v5988_v21 = vmul.f32 %v9717_v15, %v12860_v20  ;;  %9726 = vrcp.f32 %v5951_v41  ;;  %8986 = vmatmul.mubr.msk.f32.gmra.mrb[24].mxu1 %vm1131_vm4, %v6005_v61  ;;  %9018 = vmatprep.mubr.msk.f32.mxu0 %vm9899_vm1, %v13127_v54 }
 0xd5a   :  { %8988 = vmatprep.mubr.msk.f32.mxu1 %vm9899_vm1, %v13127_v54  ;;  %v6010_v12 = vmul.f32 %v10605_v9, %v5992_v14  ;;  %9043 = vmatpush3.msra.mxu0 %v12909_v37 }
 0xd5b   :  { %v9719_v7 = vpop.eup %9718  ;;  %v6006_v2 = vmul.f32 %v10767_v28, %v5988_v21 }
 0xd5c   :  { %v9721_v57 = vpop.eup %9720  ;;  %9019 = vmatmul.mubr.msk.f32.gmra.mrb[218].mxu0 %vm1131_vm4, %v6010_v12  ;;  %v5954_v44 = vpop.xlane.xlu0 %5953  ;;  %v5993_v20 = vmul.f32 %v9719_v7, %v12867_v4 }
 0xd5d   :  { %v5989_v55 = vmul.f32 %v9721_v57, %v12869_v58  ;;  %8989 = vmatmul.mubr.msk.f32.gmra.mrb[26].mxu1 %vm1131_vm4, %v6006_v2  ;;  %9728 = vrcp.f32 %v5954_v44  ;;  %9021 = vmatprep.mubr.msk.f32.mxu0 %vm9899_vm1, %v13127_v54 }
 0xd5e   :  { %8991 = vmatprep.mubr.msk.f32.mxu1 %vm9899_vm1, %v13127_v54  ;;  %v6011_v9 = vmul.f32 %v10613_v25, %v5993_v20  ;;  %v7142_v20 = vld [vmem:[%s13099_s7] ss:$0 sm:$0xff] }
 0xd5f   :  { %v9723_v28 = vpop.eup %9722  ;;  %v6007_v37 = vmul.f32 %v10782_v22, %v5989_v55 }
 0xd60   :  { %v9725_v38 = vpop.eup %9724  ;;  %9022 = vmatmul.mubr.msk.f32.gmra.mrb[220].mxu0 %vm1131_vm4, %v6011_v9  ;;  %v5957_v4 = vpop.xlane.xlu1 %5956  ;;  %v5994_v58 = vmul.f32 %v9723_v28, %v12876_v51 }
 0xd61   :  { %v5990_v31 = vmul.f32 %v9725_v38, %v12878_v50  ;;  %9730 = vrcp.f32 %v5957_v4  ;;  %8992 = vmatmul.mubr.msk.f32.gmra.mrb[28].mxu1 %vm1131_vm4, %v6007_v37  ;;  %9024 = vmatprep.mubr.msk.f32.mxu0 %vm9899_vm1, %v13127_v54 }
 0xd62   :  { %8994 = vmatprep.mubr.msk.f32.mxu1 %vm9899_vm1, %v13127_v54  ;;  %v6012_v25 = vmul.f32 %v10623_v39, %v5994_v58 }
 0xd63   :  { %v9727_v22 = vpop.eup %9726  ;;  %v6008_v19 = vmul.f32 %v10798_v32, %v5990_v31 }
 0xd64   :  { %9025 = vmatmul.mubr.msk.f32.gmra.mrb[222].mxu0 %vm1131_vm4, %v6012_v25  ;;  %v5960_v46 = vpop.xlane.xlu0 %5959  ;;  %v5995_v51 = vmul.f32 %v9727_v22, %v12885_v3 }
 0xd65   :  { %8995 = vmatmul.mubr.msk.f32.gmra.mrb[30].mxu1 %vm1131_vm4, %v6008_v19  ;;  %9732 = vrcp.f32 %v5960_v46  ;;  %9027 = vmatprep.mubr.msk.f32.mxu0 %vm9899_vm1, %v13127_v54 }
 0xd66   :  { %v6013_v50 = vmul.f32 %v13134_v45, %v5995_v51 }
 0xd67   :  { %v9729_v30 = vpop.eup %9728 }
 0xd68   :  { %9028 = vmatmul.mubr.msk.f32.gmra.mrb[224].mxu0 %vm1131_vm4, %v6013_v50  ;;  %v5963_v39 = vpop.xlane.xlu1 %5962  ;;  %v5996_v8 = vmul.f32 %v9729_v30, %v12890_v36 }
 0xd69   :  { %9734 = vrcp.f32 %v5963_v39  ;;  %9030 = vmatprep.mubr.msk.f32.mxu0 %vm9899_vm1, %v13127_v54 }
 0xd6a   :  { %v6014_v32 = vmul.f32 %v13135_v62, %v5996_v8 }
 0xd6b   :  { %v9731_v3 = vpop.eup %9730 }
 0xd6c   :  { %9031 = vmatmul.mubr.msk.f32.gmra.mrb[226].mxu0 %vm1131_vm4, %v6014_v32  ;;  %v5997_v43 = vmul.f32 %v9731_v3, %v12894_v56 }
 0xd6d   :  { %9033 = vmatprep.mubr.msk.f32.mxu0 %vm9899_vm1, %v13127_v54 }
 0xd6e   :  { %v6015_v45 = vmul.f32 %v13136_v13, %v5997_v43 }
 0xd6f   :  { %v9733_v40 = vpop.eup %9732 }
 0xd70   :  { %9034 = vmatmul.mubr.msk.f32.gmra.mrb[228].mxu0 %vm1131_vm4, %v6015_v45  ;;  %v5998_v36 = vmul.f32 %v9733_v40, %v12898_v48 }
 0xd71   :  { %9036 = vmatprep.mubr.msk.f32.mxu0 %vm9899_vm1, %v13127_v54 }
 0xd72   :  { %v6016_v62 = vmul.f32 %v13137_v24, %v5998_v36 }
 0xd73   :  { %v9735_v5 = vpop.eup %9734 }
 0xd74   :  { %9037 = vmatmul.mubr.msk.f32.gmra.mrb[230].mxu0 %vm1131_vm4, %v6016_v62  ;;  %v5999_v56 = vmul.f32 %v9735_v5, %v12902_v59 }
 0xd75   :  { %9039 = vmatprep.mubr.msk.f32.mxu0 %vm9899_vm1, %v13127_v54 }
 0xd76   :  { %v6017_v13 = vmul.f32 %v13138_v1, %v5999_v56 }
 0xd78   :  { %9040 = vmatmul.mubr.msk.f32.gmra.mrb[232].mxu0 %vm1131_vm4, %v6017_v13 }
 0xe17   :  { %v6111_v29 = vpop.f32.mrb[14].mxu1 }
 0xe18   :  { %v8972_v17 = vpop.f32.mrb[15].mxu1  ;;  %9044 = vmatprep.mubr.msk.f32.mxu0 %vm784_vm2, %v6111_v29 }
 0xe1b   :  { %v6116_v48 = vpop.f32.mrb[16].mxu1 }
 0xe1c   :  { %v8975_v49 = vpop.f32.mrb[17].mxu1  ;;  %9045 = vmatmul.mubr.msk.f32.vlgmr.msra.gmra.mrb[108].mxu0 %vm784_vm2, %v6116_v48 }
 0xe1f   :  { %v6121_v24 = vpop.f32.mrb[18].mxu1 }
 0xe20   :  { %v8978_v11 = vpop.f32.mrb[19].mxu1  ;;  %9047 = vmatprep.mubr.msk.f32.mxu0 %vm784_vm2, %v6121_v24 }
 0xe23   :  { %v6126_v59 = vpop.f32.mrb[20].mxu1 }
 0xe24   :  { %v8981_v53 = vpop.f32.mrb[21].mxu1  ;;  %9048 = vmatmul.mubr.msk.f32.gmra.mrb[110].mxu0 %vm784_vm2, %v6126_v59 }
 0xe27   :  { %v6131_v54 = vpop.f32.mrb[22].mxu1 }
 0xe28   :  { %v8984_v1 = vpop.f32.mrb[23].mxu1  ;;  %9050 = vmatprep.mubr.msk.f32.mxu0 %vm784_vm2, %v6131_v54 }
 0xe2b   :  { %v6248_v60 = vpop.f32.mrb[216].mxu0 }
 0xe2c   :  { %v6136_v42 = vpop.f32.mrb[24].mxu1  ;;  %v9017_v35 = vpop.f32.mrb[217].mxu0 }
 0xe2d   :  { %v8987_v23 = vpop.f32.mrb[25].mxu1  ;;  %9051 = vmatmul.mubr.msk.f32.gmra.mrb[112].mxu0 %vm784_vm2, %v6136_v42 }
 0xe2f   :  { %v6253_v18 = vpop.f32.mrb[218].mxu0 }
 0xe30   :  { %v6141_v33 = vpop.f32.mrb[26].mxu1  ;;  %v9020_v34 = vpop.f32.mrb[219].mxu0 }
 0xe31   :  { %v8990_v52 = vpop.f32.mrb[27].mxu1  ;;  %9053 = vmatprep.mubr.msk.f32.mxu0 %vm784_vm2, %v6141_v33 }
 0xe33   :  { %v6258_v27 = vpop.f32.mrb[220].mxu0 }
 0xe34   :  { %v6146_v10 = vpop.f32.mrb[28].mxu1  ;;  %v9023_v16 = vpop.f32.mrb[221].mxu0 }
 0xe35   :  { %v8993_v47 = vpop.f32.mrb[29].mxu1  ;;  %9054 = vmatmul.mubr.msk.f32.gmra.mrb[114].mxu0 %vm784_vm2, %v6146_v10 }
 0xe37   :  { %v6263_v63 = vpop.f32.mrb[222].mxu0 }
 0xe38   :  { %v6151_v26 = vpop.f32.mrb[30].mxu1  ;;  %v9026_v0 = vpop.f32.mrb[223].mxu0 }
 0xe39   :  { %v8996_v6 = vpop.f32.mrb[31].mxu1  ;;  %9056 = vmatprep.mubr.msk.f32.mxu0 %vm784_vm2, %v6151_v26 }
 0xe3a   :  { %9057 = vmatmul.mubr.msk.f32.gmra.mrb[116].mxu0 %vm784_vm2, %v6248_v60 }
 0xe3b   :  { %9059 = vmatprep.mubr.msk.f32.mxu0 %vm784_vm2, %v6253_v18  ;;  %v6268_v61 = vpop.f32.mrb[224].mxu0 }
 0xe3c   :  { %v9029_v15 = vpop.f32.mrb[225].mxu0 }
 0xe3e   :  { %9060 = vmatmul.mubr.msk.f32.gmra.mrb[118].mxu0 %vm784_vm2, %v6258_v27 }
 0xe3f   :  { %9062 = vmatprep.mubr.msk.f32.mxu0 %vm784_vm2, %v6263_v63  ;;  %v6273_v41 = vpop.f32.mrb[226].mxu0 }
 0xe40   :  { %v9032_v14 = vpop.f32.mrb[227].mxu0 }
 0xe42   :  { %9063 = vmatmul.mubr.msk.f32.gmra.mrb[120].mxu0 %vm784_vm2, %v6268_v61 }
 0xe43   :  { %9065 = vmatprep.mubr.msk.f32.mxu0 %vm784_vm2, %v6273_v41  ;;  %v6278_v21 = vpop.f32.mrb[228].mxu0 }
 0xe44   :  { %v9035_v12 = vpop.f32.mrb[229].mxu0 }
 0xe46   :  { %9066 = vmatmul.mubr.msk.f32.gmra.mrb[122].mxu0 %vm784_vm2, %v6278_v21 }
 0xe47   :  { %v6283_v7 = vpop.f32.mrb[230].mxu0 }
 0xe48   :  { %v9038_v2 = vpop.f32.mrb[231].mxu0  ;;  %9068 = vmatprep.mubr.msk.f32.mxu0 %vm784_vm2, %v6283_v7 }
 0xe4b   :  { %v6288_v57 = vpop.f32.mrb[232].mxu0 }
 0xe4c   :  { %v9041_v44 = vpop.f32.mrb[233].mxu0  ;;  %9069 = vmatmul.mubr.msk.f32.gmra.mrb[124].mxu0 %vm784_vm2, %v6288_v57 }
 0xeef   :  { %v9046_v55 = vpop.f32.mrb[108].mxu0 }
 0xef0   :  { %v6529_v9 = vadd.f32 %v9046_v55, %v7142_v20  ;;  %v6414_v28 = vpop.f32.mrb[109].mxu0 }
 0xef1   :  { %v6528_v37 = vadd.f32 %v7142_v20, %v6414_v28 }
 0xef2   :  { %6547 = vst.msk [vmem:[%s13100_s8 + $0x8] sm:$0xff] %vm130_vm0, %v6529_v9 }
 0xef3   :  { %6546 = vst.msk [vmem:[%s13100_s8] sm:$0xff] %vm130_vm0, %v6528_v37 }
 0xef7   :  { %v9049_v38 = vpop.f32.mrb[110].mxu0 }
 0xef8   :  { %v6531_v4 = vadd.f32 %v9049_v38, %v7142_v20  ;;  %v6424_v58 = vpop.f32.mrb[111].mxu0 }
 0xef9   :  { %v6530_v31 = vadd.f32 %v7142_v20, %v6424_v58 }
 0xefa   :  { %6549 = vst.msk [vmem:[%s13100_s8 + $0x18] sm:$0xff] %vm130_vm0, %v6531_v4 }
 0xefb   :  { %6548 = vst.msk [vmem:[%s13100_s8 + $0x10] sm:$0xff] %vm130_vm0, %v6530_v31 }
 0xf00   :  { %v9052_v25 = vpop.f32.mrb[112].mxu0 }
 0xf01   :  { %v6533_v22 = vadd.f32 %v9052_v25, %v7142_v20  ;;  %v6434_v19 = vpop.f32.mrb[113].mxu0 }
 0xf02   :  { %v6532_v46 = vadd.f32 %v7142_v20, %v6434_v19 }
 0xf03   :  { %6551 = vst.msk [vmem:[%s13100_s8 + $0x28] sm:$0xff] %vm130_vm0, %v6533_v22 }
 0xf04   :  { %6550 = vst.msk [vmem:[%s13100_s8 + $0x20] sm:$0xff] %vm130_vm0, %v6532_v46 }
 0xf08   :  { %v9055_v51 = vpop.f32.mrb[114].mxu0 }
 0xf09   :  { %v6535_v50 = vadd.f32 %v9055_v51, %v7142_v20  ;;  %v6444_v30 = vpop.f32.mrb[115].mxu0 }
 0xf0a   :  { %v6534_v39 = vadd.f32 %v7142_v20, %v6444_v30 }
 0xf0b   :  { %6553 = vst.msk [vmem:[%s13100_s8 + $0x38] sm:$0xff] %vm130_vm0, %v6535_v50 }
 0xf0c   :  { %6552 = vst.msk [vmem:[%s13100_s8 + $0x30] sm:$0xff] %vm130_vm0, %v6534_v39 }
 0xf0d   :  { %v9058_v8 = vpop.f32.mrb[116].mxu0 }
 0xf0e   :  { %v6537_v32 = vadd.f32 %v9058_v8, %v7142_v20  ;;  %v6454_v3 = vpop.f32.mrb[117].mxu0 }
 0xf0f   :  { %v6536_v43 = vadd.f32 %v7142_v20, %v6454_v3 }
 0xf10   :  { %6555 = vst.msk [vmem:[%s13100_s8 + $0x48] sm:$0xff] %vm130_vm0, %v6537_v32 }
 0xf11   :  { %6554 = vst.msk [vmem:[%s13100_s8 + $0x40] sm:$0xff] %vm130_vm0, %v6536_v43  ;;  %v9061_v45 = vpop.f32.mrb[118].mxu0 }
 0xf12   :  { %v6539_v40 = vadd.f32 %v9061_v45, %v7142_v20  ;;  %v6464_v36 = vpop.f32.mrb[119].mxu0 }
 0xf13   :  { %v6538_v62 = vadd.f32 %v7142_v20, %v6464_v36 }
 0xf14   :  { %6557 = vst.msk [vmem:[%s13100_s8 + $0x58] sm:$0xff] %vm130_vm0, %v6539_v40 }
 0xf15   :  { %6556 = vst.msk [vmem:[%s13100_s8 + $0x50] sm:$0xff] %vm130_vm0, %v6538_v62  ;;  %v9064_v5 = vpop.f32.mrb[120].mxu0 }
 0xf16   :  { %v6541_v56 = vadd.f32 %v9064_v5, %v7142_v20  ;;  %v6474_v13 = vpop.f32.mrb[121].mxu0 }
 0xf17   :  { %v6540_v29 = vadd.f32 %v7142_v20, %v6474_v13 }
 0xf18   :  { %6559 = vst.msk [vmem:[%s13100_s8 + $0x68] sm:$0xff] %vm130_vm0, %v6541_v56 }
 0xf19   :  { %6558 = vst.msk [vmem:[%s13100_s8 + $0x60] sm:$0xff] %vm130_vm0, %v6540_v29  ;;  %v9067_v17 = vpop.f32.mrb[122].mxu0 }
 0xf1a   :  { %v6543_v48 = vadd.f32 %v9067_v17, %v7142_v20  ;;  %v6484_v49 = vpop.f32.mrb[123].mxu0 }
 0xf1b   :  { %v6542_v24 = vadd.f32 %v7142_v20, %v6484_v49 }
 0xf1c   :  { %6561 = vst.msk [vmem:[%s13100_s8 + $0x78] sm:$0xff] %vm130_vm0, %v6543_v48 }
 0xf1d   :  { %6560 = vst.msk [vmem:[%s13100_s8 + $0x70] sm:$0xff] %vm130_vm0, %v6542_v24 }
 0xf1f   :  { %v9070_v11 = vpop.f32.mrb[124].mxu0 }
 0xf20   :  { %v6545_v59 = vadd.f32 %v9070_v11, %v7142_v20  ;;  %v6494_v53 = vpop.f32.mrb[125].mxu0 }
 0xf21   :  { %v6544_v54 = vadd.f32 %v7142_v20, %v6494_v53 }
 0xf22   :  { %6563 = vst.msk [vmem:[%s13100_s8 + $0x88] sm:$0xff] %vm130_vm0, %v6545_v59 }
 0xf23   :  { %6562 = vst.msk [vmem:[%s13100_s8 + $0x80] sm:$0xff] %vm130_vm0, %v6544_v54 }

</bundles_post_ra>
